<compile_context>
chip_gen: v6e
topology: v6e:2x2x1
jax: 0.10.0
libtpu: 0.0.40
codegen_flags: <defaults>
</compile_context>

<pallas_src>
import functools

import jax
import jax.numpy as jnp
from jax import lax
from jax.experimental import pallas as pl
from jax.experimental.pallas import tpu as pltpu

B = 2               # batch
S = 16              # sequence length (args.max_text_length)
H = 32              # config.hidden_size
FF = 64             # feed-forward intermediate size
NH = 4              # attention heads
HD = H // NH
Q = 8               # args.num_generated_triples
NUM_CLASSES = 4
C1 = NUM_CLASSES + 1
NUM_DEC_LAYERS = 2  # args.num_decoder_layers
VOCAB = 64
LN_EPS = 1e-12
NEG_INF = -10000.0

PACK = 128          # packed output lane width
HEAD_W = 160        # packed head projection width (4*H metric_1 | C1 class | pad)
HID_OFF = PACK - H  # lane offset of v_logits inside the packed output


# ---------------------------------------------------------------------------
# helpers (pure jnp — usable both inside the Pallas kernel and in the wrapper)
# ---------------------------------------------------------------------------
def _layer_norm(x, g, b):
    mu = jnp.mean(x, axis=-1, keepdims=True)
    var = jnp.mean(jnp.square(x - mu), axis=-1, keepdims=True)
    return (x - mu) * lax.rsqrt(var + LN_EPS) * g + b


def _attn(q, k, v, o_w, o_b, bias):
    """Multi-head attention core.  q:[Nq,H], k/v:[Nk,H], o_w:[H,H], o_b:[1,H]."""
    scale = 1.0 / (HD ** 0.5)
    ctx_parts = []
    for hh in range(NH):                        # static unroll over heads
        sl = slice(hh * HD, (hh + 1) * HD)      # static lane slices
        sc = lax.dot_general(q[:, sl], k[:, sl], (((1,), (1,)), ((), ())),
                             preferred_element_type=jnp.float32) * scale + bias
        m = jnp.max(sc, axis=-1, keepdims=True)
        e = jnp.exp(sc - m)
        denom = jnp.sum(e, axis=-1, keepdims=True)
        a = e * pl.reciprocal(denom, approx=True)
        ctx_parts.append(jnp.dot(a, v[:, sl], preferred_element_type=jnp.float32))
    ctx = jnp.concatenate(ctx_parts, axis=-1)   # [Nq, H]
    return jnp.dot(ctx, o_w, preferred_element_type=jnp.float32) + o_b


# ---------------------------------------------------------------------------
# the single fused Pallas kernel (one batch element per grid step)
# ---------------------------------------------------------------------------
def fused_kernel(emb_ref, mask_ref, q0_ref,
                 eqkv_ref, eo_ref, ewi_ref, ewo_ref, evec_ref,
                 dsaqkv_ref, dsao_ref, dcaqkv_ref, dcao_ref,
                 dwi_ref, dwo_ref, dvec_ref,
                 hhw_ref, hew_ref, hvec_ref,
                 out_ref):
    x = emb_ref[0]                      # [S, H] embedded + LayerNorm'd input
    mask = mask_ref[0]                  # [1, S] float 0/1
    enc_bias = (1.0 - mask) * NEG_INF   # additive attention bias

    # ---------------- encoder layer (BERT-style) ----------------
    ev = evec_ref[...]                  # [8, 128] packed vectors
    qkv = jnp.dot(x, eqkv_ref[...], preferred_element_type=jnp.float32) + ev[0:1, :3 * H]
    attn = _attn(qkv[:, :H], qkv[:, H:2 * H], qkv[:, 2 * H:3 * H],
                 eo_ref[...], ev[1:2, :H], enc_bias)
    x = _layer_norm(x + attn, ev[2:3, :H], ev[3:4, :H])
    inter = jax.nn.gelu(jnp.dot(x, ewi_ref[...], preferred_element_type=jnp.float32)
                        + ev[4:5, :FF], approximate=True)
    ff = jnp.dot(inter, ewo_ref[...], preferred_element_type=jnp.float32) + ev[5:6, :H]
    enc = _layer_norm(x + ff, ev[6:7, :H], ev[7:8, :H])        # [S, H]

    # ---------------- decoder stack (static unroll over layers) ----------------
    h = q0_ref[...]                     # [Q, H] LayerNorm'd query embeddings
    for l in range(NUM_DEC_LAYERS):
        dv = dvec_ref[l]                # [12, 128] packed vectors for layer l
        # self-attention over the generated-triple queries (no mask)
        qkv = jnp.dot(h, dsaqkv_ref[l], preferred_element_type=jnp.float32) + dv[0:1, :3 * H]
        sa = _attn(qkv[:, :H], qkv[:, H:2 * H], qkv[:, 2 * H:3 * H],
                   dsao_ref[l], dv[1:2, :H], 0.0)
        h = _layer_norm(h + sa, dv[2:3, :H], dv[3:4, :H])
        # cross-attention to the encoder hidden states (masked)
        caw = dcaqkv_ref[l]             # [H, 3H]
        q = jnp.dot(h, caw[:, :H], preferred_element_type=jnp.float32) + dv[4:5, :H]
        kv = jnp.dot(enc, caw[:, H:3 * H], preferred_element_type=jnp.float32) + dv[4:5, H:3 * H]
        ca = _attn(q, kv[:, :H], kv[:, H:2 * H], dcao_ref[l], dv[5:6, :H], enc_bias)
        h = _layer_norm(h + ca, dv[6:7, :H], dv[7:8, :H])
        # feed-forward
        inter = jax.nn.gelu(jnp.dot(h, dwi_ref[l], preferred_element_type=jnp.float32)
                            + dv[8:9, :FF], approximate=True)
        ff = jnp.dot(inter, dwo_ref[l], preferred_element_type=jnp.float32) + dv[9:10, :H]
        h = _layer_norm(h + ff, dv[10:11, :H], dv[11:12, :H])

    # ---------------- prediction heads ----------------
    hv = hvec_ref[...]                  # [3, HEAD_W] packed head vectors
    # one lane-dense matmul gives all 4 metric_1 projections + class logits
    hproj = jnp.dot(h, hhw_ref[...], preferred_element_type=jnp.float32) + hv[0:1, :]
    a_all = hproj[:, :4 * H]            # [Q, 128]
    cls = hproj[:, 4 * H:4 * H + C1]    # [Q, C1]
    # one lane-dense matmul gives all 4 metric_2 projections of the encoder states
    e_all = jnp.dot(enc, hew_ref[...], preferred_element_type=jnp.float32) + hv[1:2, :4 * H]
    m3 = hv[2:3, :4 * H]                # [1, 128] metric_3 weights (no bias)
    t = jnp.tanh(a_all[:, None, :] + e_all[None, :, :]) * m3[None, :, :]   # [Q, S, 128]

    spans = []
    for i in range(4):                  # aspect_start, aspect_end, opinion_start, opinion_end
        g = jnp.sum(t[:, :, i * H:(i + 1) * H], axis=-1)    # [Q, S]
        # masked_fill((1 - attention_mask).bool(), -10000.0)
        g = jnp.where(mask == 0.0, NEG_INF, g)
        spans.append(g)

    pad = jnp.zeros((Q, PACK - 4 * S - C1 - H), jnp.float32)
    out_ref[0] = jnp.concatenate(spans + [cls, pad, h], axis=-1)   # [Q, 128] lane-dense


# ---------------------------------------------------------------------------
# pallas_call wrapper
# ---------------------------------------------------------------------------
def _b3(shape):
    return pl.BlockSpec(shape, lambda b: (b, 0, 0))


def _f2(shape):
    return pl.BlockSpec(shape, lambda b: (0, 0))


def _f3(shape):
    return pl.BlockSpec(shape, lambda b: (0, 0, 0))


def run_fused(emb, mask3, q0, fp):
    return pl.pallas_call(
        fused_kernel,
        out_shape=jax.ShapeDtypeStruct((B, Q, PACK), jnp.float32),
        grid=(B,),
        in_specs=[
            _b3((1, S, H)), _b3((1, 1, S)), _f2((Q, H)),
            _f2((H, 3 * H)), _f2((H, H)), _f2((H, FF)), _f2((FF, H)), _f2((8, 128)),
            _f3((NUM_DEC_LAYERS, H, 3 * H)), _f3((NUM_DEC_LAYERS, H, H)),
            _f3((NUM_DEC_LAYERS, H, 3 * H)), _f3((NUM_DEC_LAYERS, H, H)),
            _f3((NUM_DEC_LAYERS, H, FF)), _f3((NUM_DEC_LAYERS, FF, H)),
            _f3((NUM_DEC_LAYERS, 12, 128)),
            _f2((H, HEAD_W)), _f2((H, 4 * H)), _f2((3, HEAD_W)),
        ],
        out_specs=_b3((1, Q, PACK)),
        compiler_params=pltpu.CompilerParams(dimension_semantics=("parallel",)),
    )(emb, mask3, q0,
      fp["enc_qkv_w"], fp["enc_o_w"], fp["enc_wi"], fp["enc_wo"], fp["enc_vec"],
      fp["dec_sa_qkv_w"], fp["dec_sa_o_w"], fp["dec_ca_qkv_w"], fp["dec_ca_o_w"],
      fp["dec_wi"], fp["dec_wo"], fp["dec_vec"],
      fp["head_hw"], fp["head_ew"], fp["head_vec"])


# ---------------------------------------------------------------------------
# parameters (deterministic synthetic init, pre-packed for the fused kernel)
# ---------------------------------------------------------------------------
def init_params(key):
    keys = iter(jax.random.split(key, 64))

    def w(shape, scale=0.02):
        return (scale * jax.random.normal(next(keys), shape)).astype(jnp.float32)

    zeros = lambda *s: jnp.zeros(s, jnp.float32)
    ones = lambda *s: jnp.ones(s, jnp.float32)

    def pack_rows(rows, width):
        out = jnp.zeros((len(rows), width), jnp.float32)
        for i, r in enumerate(rows):
            r = jnp.asarray(r, jnp.float32).reshape(-1)
            out = out.at[i, : r.shape[0]].set(r)
        return out

    # encoder layer vector bank: qkv_b | o_b | ln1_g | ln1_b | ffn_bi | ffn_bo | ln2_g | ln2_b
    enc_vec = pack_rows([zeros(3 * H), zeros(H), ones(H), zeros(H),
                         zeros(FF), zeros(H), ones(H), zeros(H)], 128)

    def dec_layer_vec():
        # sa_qkv_b | sa_o_b | sa_ln_g | sa_ln_b | ca_qkv_b | ca_o_b | ca_ln_g | ca_ln_b
        # | ffn_bi | ffn_bo | ff_ln_g | ff_ln_b
        return pack_rows([zeros(3 * H), zeros(H), ones(H), zeros(H),
                          zeros(3 * H), zeros(H), ones(H), zeros(H),
                          zeros(FF), zeros(H), ones(H), zeros(H)], 128)

    dec_sa_qkv_w = jnp.stack([w((H, 3 * H)) for _ in range(NUM_DEC_LAYERS)])
    dec_sa_o_w = jnp.stack([w((H, H)) for _ in range(NUM_DEC_LAYERS)])
    dec_ca_qkv_w = jnp.stack([w((H, 3 * H)) for _ in range(NUM_DEC_LAYERS)])
    dec_ca_o_w = jnp.stack([w((H, H)) for _ in range(NUM_DEC_LAYERS)])
    dec_wi = jnp.stack([w((H, FF)) for _ in range(NUM_DEC_LAYERS)])
    dec_wo = jnp.stack([w((FF, H)) for _ in range(NUM_DEC_LAYERS)])
    dec_vec = jnp.stack([dec_layer_vec() for _ in range(NUM_DEC_LAYERS)])

    # heads: metric_1 / metric_2 / metric_3 for the 4 span heads + class head
    m1_w, m2_w, m3_w = w((4, H, H)), w((4, H, H)), w((4, H))
    wc, bc = w((H, C1)), zeros(C1)
    head_hw = jnp.zeros((H, HEAD_W), jnp.float32)
    head_hw = head_hw.at[:, : 4 * H].set(jnp.concatenate([m1_w[i] for i in range(4)], axis=1))
    head_hw = head_hw.at[:, 4 * H: 4 * H + C1].set(wc)
    head_ew = jnp.concatenate([m2_w[i] for i in range(4)], axis=1)        # [H, 4H]
    head_vec = pack_rows([jnp.concatenate([zeros(4 * H), bc]),            # m1 biases | class bias
                          zeros(4 * H),                                   # m2 biases
                          m3_w.reshape(-1)],                              # metric_3 weights
                         HEAD_W)

    return dict(
        word_emb=w((VOCAB, H)), pos_emb=w((S, H)),
        emb_ln_g=ones(1, H), emb_ln_b=zeros(1, H),
        query_embed=w((Q, H)), dec_ln_g=ones(1, H), dec_ln_b=zeros(1, H),
        pooler_w=w((H, H)), pooler_b=zeros(H),   # pooler output is unused by forward()
        linear_w=w((H, S)),                      # self.linear: declared in __init__, unused in forward
        fused=dict(
            enc_qkv_w=w((H, 3 * H)), enc_o_w=w((H, H)),
            enc_wi=w((H, FF)), enc_wo=w((FF, H)), enc_vec=enc_vec,
            dec_sa_qkv_w=dec_sa_qkv_w, dec_sa_o_w=dec_sa_o_w,
            dec_ca_qkv_w=dec_ca_qkv_w, dec_ca_o_w=dec_ca_o_w,
            dec_wi=dec_wi, dec_wo=dec_wo, dec_vec=dec_vec,
            head_hw=head_hw, head_ew=head_ew, head_vec=head_vec,
        ),
    )


# ---------------------------------------------------------------------------
# forward (JAX glue: embedding lookup + query LN, then one fused Pallas call)
# ---------------------------------------------------------------------------
def setpred4re_absa_forward(params, input_ids, attention_mask):
    # TODO(synk): SeqEncoder wraps a pretrained BERT in the reference; here it is a
    # deterministic single-layer transformer stand-in with the same interface.
    emb = params["word_emb"][input_ids] + params["pos_emb"][None, :, :]
    emb = _layer_norm(emb, params["emb_ln_g"], params["emb_ln_b"])
    mask3 = attention_mask[:, None, :].astype(jnp.float32)
    # The reference calls the encoder a second time (pooler_output2) and also computes
    # a pooled output; both are unused by the eval forward, so they are skipped.
    q0 = _layer_norm(params["query_embed"], params["dec_ln_g"], params["dec_ln_b"])

    packed = run_fused(emb, mask3, q0, params["fused"])   # [B, Q, 128] lane-dense slab

    spans = packed[:, :, : 4 * S]
    return {
        "pred_rel_logits": packed[:, :, 4 * S: 4 * S + C1],
        "aspect_start_logits": spans[:, :, 0 * S: 1 * S],
        "aspect_end_logits": spans[:, :, 1 * S: 2 * S],
        "opinion_start_logits": spans[:, :, 2 * S: 3 * S],
        "opinion_end_logits": spans[:, :, 3 * S: 4 * S],
        "v_logits": packed[:, :, HID_OFF:],
    }


if __name__ == "__main__":
    root = jax.random.PRNGKey(0)
    k_params, k_ids = jax.random.split(root)
    params = init_params(k_params)

    input_ids = jax.random.randint(k_ids, (B, S), 0, VOCAB, dtype=jnp.int32)
    lengths = jnp.array([S, S - 5], dtype=jnp.int32)
    attention_mask = (jnp.arange(S)[None, :] < lengths[:, None]).astype(jnp.float32)

    fwd = jax.jit(functools.partial(setpred4re_absa_forward, params))
    outputs = fwd(input_ids, attention_mask)
    outputs = jax.block_until_ready(outputs)

    assert outputs["pred_rel_logits"].shape == (B, Q, C1)
    assert outputs["v_logits"].shape == (B, Q, H)
    for k in ("aspect_start_logits", "aspect_end_logits",
              "opinion_start_logits", "opinion_end_logits"):
        assert outputs[k].shape == (B, Q, S)
        assert bool(jnp.all(outputs[k][1, :, S - 5:] == NEG_INF))   # masked positions
    assert bool(jnp.all(jnp.isfinite(outputs["pred_rel_logits"])))
    assert bool(jnp.all(jnp.isfinite(outputs["v_logits"])))
    print("KERNEL_OK")
</pallas_src>

<mosaic_0001>
module attributes {stable_mosaic.version = 11 : i64} {
  func.func @fused_kernel(%arg0: i32, %arg1: memref<1x16x32xf32, #tpu.memory_space<vmem>>, %arg2: memref<1x1x16xf32, #tpu.memory_space<vmem>>, %arg3: memref<8x32xf32, #tpu.memory_space<vmem>>, %arg4: memref<32x96xf32, #tpu.memory_space<vmem>>, %arg5: memref<32x32xf32, #tpu.memory_space<vmem>>, %arg6: memref<32x64xf32, #tpu.memory_space<vmem>>, %arg7: memref<64x32xf32, #tpu.memory_space<vmem>>, %arg8: memref<8x128xf32, #tpu.memory_space<vmem>>, %arg9: memref<2x32x96xf32, #tpu.memory_space<vmem>>, %arg10: memref<2x32x32xf32, #tpu.memory_space<vmem>>, %arg11: memref<2x32x96xf32, #tpu.memory_space<vmem>>, %arg12: memref<2x32x32xf32, #tpu.memory_space<vmem>>, %arg13: memref<2x32x64xf32, #tpu.memory_space<vmem>>, %arg14: memref<2x64x32xf32, #tpu.memory_space<vmem>>, %arg15: memref<2x12x128xf32, #tpu.memory_space<vmem>>, %arg16: memref<32x160xf32, #tpu.memory_space<vmem>>, %arg17: memref<32x128xf32, #tpu.memory_space<vmem>>, %arg18: memref<3x160xf32, #tpu.memory_space<vmem>>, %arg19: memref<1x8x128xf32, #tpu.memory_space<vmem>>) attributes {dimension_semantics = [#tpu.dimension_semantics<parallel>], iteration_bounds = array<i64: 2>, scalar_prefetch = 0 : i64, scratch_operands = 0 : i64, tpu.core_type = #tpu.core_type<tc>, window_params = [{transform_indices = @transform_0, window_bounds = array<i64: 1, 16, 32>}, {transform_indices = @transform_1, window_bounds = array<i64: 1, 1, 16>}, {pipeline_mode = #tpu.pipeline_mode<synchronous>, transform_indices = @transform_2, window_bounds = array<i64: 8, 32>}, {pipeline_mode = #tpu.pipeline_mode<synchronous>, transform_indices = @transform_3, window_bounds = array<i64: 32, 96>}, {pipeline_mode = #tpu.pipeline_mode<synchronous>, transform_indices = @transform_4, window_bounds = array<i64: 32, 32>}, {pipeline_mode = #tpu.pipeline_mode<synchronous>, transform_indices = @transform_5, window_bounds = array<i64: 32, 64>}, {pipeline_mode = #tpu.pipeline_mode<synchronous>, transform_indices = @transform_6, window_bounds = array<i64: 64, 32>}, {pipeline_mode = #tpu.pipeline_mode<synchronous>, transform_indices = @transform_7, window_bounds = array<i64: 8, 128>}, {pipeline_mode = #tpu.pipeline_mode<synchronous>, transform_indices = @transform_8, window_bounds = array<i64: 2, 32, 96>}, {pipeline_mode = #tpu.pipeline_mode<synchronous>, transform_indices = @transform_9, window_bounds = array<i64: 2, 32, 32>}, {pipeline_mode = #tpu.pipeline_mode<synchronous>, transform_indices = @transform_10, window_bounds = array<i64: 2, 32, 96>}, {pipeline_mode = #tpu.pipeline_mode<synchronous>, transform_indices = @transform_11, window_bounds = array<i64: 2, 32, 32>}, {pipeline_mode = #tpu.pipeline_mode<synchronous>, transform_indices = @transform_12, window_bounds = array<i64: 2, 32, 64>}, {pipeline_mode = #tpu.pipeline_mode<synchronous>, transform_indices = @transform_13, window_bounds = array<i64: 2, 64, 32>}, {pipeline_mode = #tpu.pipeline_mode<synchronous>, transform_indices = @transform_14, window_bounds = array<i64: 2, 12, 128>}, {pipeline_mode = #tpu.pipeline_mode<synchronous>, transform_indices = @transform_15, window_bounds = array<i64: 32, 160>}, {pipeline_mode = #tpu.pipeline_mode<synchronous>, transform_indices = @transform_16, window_bounds = array<i64: 32, 128>}, {pipeline_mode = #tpu.pipeline_mode<synchronous>, transform_indices = @transform_17, window_bounds = array<i64: 3, 160>}, {transform_indices = @transform_18, window_bounds = array<i64: 1, 8, 128>}]} {
    %c0 = arith.constant 0 : index
    %c0_0 = arith.constant 0 : index
    %c0_1 = arith.constant 0 : index
    %0 = vector.load %arg1[%c0, %c0_0, %c0_1] : memref<1x16x32xf32, #tpu.memory_space<vmem>>, vector<1x16x32xf32>
    %1 = vector.shape_cast %0 : vector<1x16x32xf32> to vector<16x32xf32>
    %c0_2 = arith.constant 0 : index
    %c0_3 = arith.constant 0 : index
    %c0_4 = arith.constant 0 : index
    %2 = vector.load %arg2[%c0_2, %c0_3, %c0_4] : memref<1x1x16xf32, #tpu.memory_space<vmem>>, vector<1x1x16xf32>
    %3 = vector.shape_cast %2 : vector<1x1x16xf32> to vector<1x16xf32>
    %cst = arith.constant 1.000000e+00 : f32
    %4 = vector.broadcast %cst : f32 to vector<1x16xf32>
    %5 = arith.subf %4, %3 : vector<1x16xf32>
    %cst_5 = arith.constant -1.000000e+04 : f32
    %6 = vector.broadcast %cst_5 : f32 to vector<1x16xf32>
    %7 = arith.mulf %5, %6 : vector<1x16xf32>
    %c0_6 = arith.constant 0 : index
    %c0_7 = arith.constant 0 : index
    %8 = vector.load %arg8[%c0_6, %c0_7] : memref<8x128xf32, #tpu.memory_space<vmem>>, vector<8x128xf32>
    %c0_8 = arith.constant 0 : index
    %c0_9 = arith.constant 0 : index
    %9 = vector.load %arg4[%c0_8, %c0_9] : memref<32x96xf32, #tpu.memory_space<vmem>>, vector<32x96xf32>
    %cst_10 = arith.constant dense<0.000000e+00> : vector<16x96xf32>
    %10 = tpu.matmul %1, %9, %cst_10 {dimension_numbers = #tpu.dot_dimension_numbers<[1], [0], [0], [1], [0, 0, 1, 1], [], []>} : vector<16x32xf32>, vector<32x96xf32>, vector<16x96xf32> -> vector<16x96xf32>
    %11 = vector.extract_strided_slice %8 {offsets = [0, 0], sizes = [1, 96], strides = [1, 1]} : vector<8x128xf32> to vector<1x96xf32>
    %12 = vector.broadcast %11 : vector<1x96xf32> to vector<16x96xf32>
    %13 = arith.addf %10, %12 : vector<16x96xf32>
    %14 = vector.extract_strided_slice %13 {offsets = [0, 0], sizes = [16, 32], strides = [1, 1]} : vector<16x96xf32> to vector<16x32xf32>
    %15 = vector.extract_strided_slice %13 {offsets = [0, 32], sizes = [16, 32], strides = [1, 1]} : vector<16x96xf32> to vector<16x32xf32>
    %16 = vector.extract_strided_slice %13 {offsets = [0, 64], sizes = [16, 32], strides = [1, 1]} : vector<16x96xf32> to vector<16x32xf32>
    %c0_11 = arith.constant 0 : index
    %c0_12 = arith.constant 0 : index
    %17 = vector.load %arg5[%c0_11, %c0_12] : memref<32x32xf32, #tpu.memory_space<vmem>>, vector<32x32xf32>
    %18 = vector.extract_strided_slice %8 {offsets = [1, 0], sizes = [1, 32], strides = [1, 1]} : vector<8x128xf32> to vector<1x32xf32>
    %19 = vector.extract_strided_slice %14 {offsets = [0, 0], sizes = [16, 8], strides = [1, 1]} : vector<16x32xf32> to vector<16x8xf32>
    %20 = vector.extract_strided_slice %15 {offsets = [0, 0], sizes = [16, 8], strides = [1, 1]} : vector<16x32xf32> to vector<16x8xf32>
    %cst_13 = arith.constant dense<0.000000e+00> : vector<16x16xf32>
    %21 = tpu.matmul %19, %20, %cst_13 {dimension_numbers = #tpu.dot_dimension_numbers<[1], [1], [0], [0], [0, 0, 1, 0], [], []>} : vector<16x8xf32>, vector<16x8xf32>, vector<16x16xf32> -> vector<16x16xf32>
    %cst_14 = arith.constant 0.353553385 : f32
    %22 = vector.broadcast %cst_14 : f32 to vector<16x16xf32>
    %23 = arith.mulf %21, %22 : vector<16x16xf32>
    %24 = vector.broadcast %7 : vector<1x16xf32> to vector<16x16xf32>
    %25 = arith.addf %23, %24 : vector<16x16xf32>
    %cst_15 = arith.constant dense<0xFF800000> : vector<16xf32>
    %26 = vector.multi_reduction <maximumf>, %25, %cst_15 [1] : vector<16x16xf32> to vector<16xf32>
    %27 = vector.shape_cast %26 : vector<16xf32> to vector<16x1xf32>
    %28 = vector.broadcast %27 : vector<16x1xf32> to vector<16x16xf32>
    %29 = arith.subf %25, %28 : vector<16x16xf32>
    %30 = math.exp %29 : vector<16x16xf32>
    %cst_16 = arith.constant dense<0.000000e+00> : vector<16xf32>
    %31 = vector.multi_reduction <add>, %30, %cst_16 [1] : vector<16x16xf32> to vector<16xf32>
    %32 = vector.shape_cast %31 : vector<16xf32> to vector<16x1xf32>
    %33 = tpu.reciprocal %32 {approx = true} : vector<16x1xf32> -> vector<16x1xf32>
    %34 = vector.broadcast %33 : vector<16x1xf32> to vector<16x16xf32>
    %35 = arith.mulf %30, %34 : vector<16x16xf32>
    %36 = vector.extract_strided_slice %16 {offsets = [0, 0], sizes = [16, 8], strides = [1, 1]} : vector<16x32xf32> to vector<16x8xf32>
    %cst_17 = arith.constant dense<0.000000e+00> : vector<16x8xf32>
    %37 = tpu.matmul %35, %36, %cst_17 {dimension_numbers = #tpu.dot_dimension_numbers<[1], [0], [0], [1], [0, 0, 1, 1], [], []>} : vector<16x16xf32>, vector<16x8xf32>, vector<16x8xf32> -> vector<16x8xf32>
    %38 = vector.extract_strided_slice %14 {offsets = [0, 8], sizes = [16, 8], strides = [1, 1]} : vector<16x32xf32> to vector<16x8xf32>
    %39 = vector.extract_strided_slice %15 {offsets = [0, 8], sizes = [16, 8], strides = [1, 1]} : vector<16x32xf32> to vector<16x8xf32>
    %cst_18 = arith.constant dense<0.000000e+00> : vector<16x16xf32>
    %40 = tpu.matmul %38, %39, %cst_18 {dimension_numbers = #tpu.dot_dimension_numbers<[1], [1], [0], [0], [0, 0, 1, 0], [], []>} : vector<16x8xf32>, vector<16x8xf32>, vector<16x16xf32> -> vector<16x16xf32>
    %cst_19 = arith.constant 0.353553385 : f32
    %41 = vector.broadcast %cst_19 : f32 to vector<16x16xf32>
    %42 = arith.mulf %40, %41 : vector<16x16xf32>
    %43 = vector.broadcast %7 : vector<1x16xf32> to vector<16x16xf32>
    %44 = arith.addf %42, %43 : vector<16x16xf32>
    %cst_20 = arith.constant dense<0xFF800000> : vector<16xf32>
    %45 = vector.multi_reduction <maximumf>, %44, %cst_20 [1] : vector<16x16xf32> to vector<16xf32>
    %46 = vector.shape_cast %45 : vector<16xf32> to vector<16x1xf32>
    %47 = vector.broadcast %46 : vector<16x1xf32> to vector<16x16xf32>
    %48 = arith.subf %44, %47 : vector<16x16xf32>
    %49 = math.exp %48 : vector<16x16xf32>
    %cst_21 = arith.constant dense<0.000000e+00> : vector<16xf32>
    %50 = vector.multi_reduction <add>, %49, %cst_21 [1] : vector<16x16xf32> to vector<16xf32>
    %51 = vector.shape_cast %50 : vector<16xf32> to vector<16x1xf32>
    %52 = tpu.reciprocal %51 {approx = true} : vector<16x1xf32> -> vector<16x1xf32>
    %53 = vector.broadcast %52 : vector<16x1xf32> to vector<16x16xf32>
    %54 = arith.mulf %49, %53 : vector<16x16xf32>
    %55 = vector.extract_strided_slice %16 {offsets = [0, 8], sizes = [16, 8], strides = [1, 1]} : vector<16x32xf32> to vector<16x8xf32>
    %cst_22 = arith.constant dense<0.000000e+00> : vector<16x8xf32>
    %56 = tpu.matmul %54, %55, %cst_22 {dimension_numbers = #tpu.dot_dimension_numbers<[1], [0], [0], [1], [0, 0, 1, 1], [], []>} : vector<16x16xf32>, vector<16x8xf32>, vector<16x8xf32> -> vector<16x8xf32>
    %57 = vector.extract_strided_slice %14 {offsets = [0, 16], sizes = [16, 8], strides = [1, 1]} : vector<16x32xf32> to vector<16x8xf32>
    %58 = vector.extract_strided_slice %15 {offsets = [0, 16], sizes = [16, 8], strides = [1, 1]} : vector<16x32xf32> to vector<16x8xf32>
    %cst_23 = arith.constant dense<0.000000e+00> : vector<16x16xf32>
    %59 = tpu.matmul %57, %58, %cst_23 {dimension_numbers = #tpu.dot_dimension_numbers<[1], [1], [0], [0], [0, 0, 1, 0], [], []>} : vector<16x8xf32>, vector<16x8xf32>, vector<16x16xf32> -> vector<16x16xf32>
    %cst_24 = arith.constant 0.353553385 : f32
    %60 = vector.broadcast %cst_24 : f32 to vector<16x16xf32>
    %61 = arith.mulf %59, %60 : vector<16x16xf32>
    %62 = vector.broadcast %7 : vector<1x16xf32> to vector<16x16xf32>
    %63 = arith.addf %61, %62 : vector<16x16xf32>
    %cst_25 = arith.constant dense<0xFF800000> : vector<16xf32>
    %64 = vector.multi_reduction <maximumf>, %63, %cst_25 [1] : vector<16x16xf32> to vector<16xf32>
    %65 = vector.shape_cast %64 : vector<16xf32> to vector<16x1xf32>
    %66 = vector.broadcast %65 : vector<16x1xf32> to vector<16x16xf32>
    %67 = arith.subf %63, %66 : vector<16x16xf32>
    %68 = math.exp %67 : vector<16x16xf32>
    %cst_26 = arith.constant dense<0.000000e+00> : vector<16xf32>
    %69 = vector.multi_reduction <add>, %68, %cst_26 [1] : vector<16x16xf32> to vector<16xf32>
    %70 = vector.shape_cast %69 : vector<16xf32> to vector<16x1xf32>
    %71 = tpu.reciprocal %70 {approx = true} : vector<16x1xf32> -> vector<16x1xf32>
    %72 = vector.broadcast %71 : vector<16x1xf32> to vector<16x16xf32>
    %73 = arith.mulf %68, %72 : vector<16x16xf32>
    %74 = vector.extract_strided_slice %16 {offsets = [0, 16], sizes = [16, 8], strides = [1, 1]} : vector<16x32xf32> to vector<16x8xf32>
    %cst_27 = arith.constant dense<0.000000e+00> : vector<16x8xf32>
    %75 = tpu.matmul %73, %74, %cst_27 {dimension_numbers = #tpu.dot_dimension_numbers<[1], [0], [0], [1], [0, 0, 1, 1], [], []>} : vector<16x16xf32>, vector<16x8xf32>, vector<16x8xf32> -> vector<16x8xf32>
    %76 = vector.extract_strided_slice %14 {offsets = [0, 24], sizes = [16, 8], strides = [1, 1]} : vector<16x32xf32> to vector<16x8xf32>
    %77 = vector.extract_strided_slice %15 {offsets = [0, 24], sizes = [16, 8], strides = [1, 1]} : vector<16x32xf32> to vector<16x8xf32>
    %cst_28 = arith.constant dense<0.000000e+00> : vector<16x16xf32>
    %78 = tpu.matmul %76, %77, %cst_28 {dimension_numbers = #tpu.dot_dimension_numbers<[1], [1], [0], [0], [0, 0, 1, 0], [], []>} : vector<16x8xf32>, vector<16x8xf32>, vector<16x16xf32> -> vector<16x16xf32>
    %cst_29 = arith.constant 0.353553385 : f32
    %79 = vector.broadcast %cst_29 : f32 to vector<16x16xf32>
    %80 = arith.mulf %78, %79 : vector<16x16xf32>
    %81 = vector.broadcast %7 : vector<1x16xf32> to vector<16x16xf32>
    %82 = arith.addf %80, %81 : vector<16x16xf32>
    %cst_30 = arith.constant dense<0xFF800000> : vector<16xf32>
    %83 = vector.multi_reduction <maximumf>, %82, %cst_30 [1] : vector<16x16xf32> to vector<16xf32>
    %84 = vector.shape_cast %83 : vector<16xf32> to vector<16x1xf32>
    %85 = vector.broadcast %84 : vector<16x1xf32> to vector<16x16xf32>
    %86 = arith.subf %82, %85 : vector<16x16xf32>
    %87 = math.exp %86 : vector<16x16xf32>
    %cst_31 = arith.constant dense<0.000000e+00> : vector<16xf32>
    %88 = vector.multi_reduction <add>, %87, %cst_31 [1] : vector<16x16xf32> to vector<16xf32>
    %89 = vector.shape_cast %88 : vector<16xf32> to vector<16x1xf32>
    %90 = tpu.reciprocal %89 {approx = true} : vector<16x1xf32> -> vector<16x1xf32>
    %91 = vector.broadcast %90 : vector<16x1xf32> to vector<16x16xf32>
    %92 = arith.mulf %87, %91 : vector<16x16xf32>
    %93 = vector.extract_strided_slice %16 {offsets = [0, 24], sizes = [16, 8], strides = [1, 1]} : vector<16x32xf32> to vector<16x8xf32>
    %cst_32 = arith.constant dense<0.000000e+00> : vector<16x8xf32>
    %94 = tpu.matmul %92, %93, %cst_32 {dimension_numbers = #tpu.dot_dimension_numbers<[1], [0], [0], [1], [0, 0, 1, 1], [], []>} : vector<16x16xf32>, vector<16x8xf32>, vector<16x8xf32> -> vector<16x8xf32>
    %95 = tpu.concatenate %37, %56, %75, %94 in 1 : vector<16x8xf32>, vector<16x8xf32>, vector<16x8xf32>, vector<16x8xf32> -> vector<16x32xf32>
    %cst_33 = arith.constant dense<0.000000e+00> : vector<16x32xf32>
    %96 = tpu.matmul %95, %17, %cst_33 {dimension_numbers = #tpu.dot_dimension_numbers<[1], [0], [0], [1], [0, 0, 1, 1], [], []>} : vector<16x32xf32>, vector<32x32xf32>, vector<16x32xf32> -> vector<16x32xf32>
    %97 = vector.broadcast %18 : vector<1x32xf32> to vector<16x32xf32>
    %98 = arith.addf %96, %97 : vector<16x32xf32>
    %99 = arith.addf %1, %98 : vector<16x32xf32>
    %100 = vector.extract_strided_slice %8 {offsets = [2, 0], sizes = [1, 32], strides = [1, 1]} : vector<8x128xf32> to vector<1x32xf32>
    %101 = vector.extract_strided_slice %8 {offsets = [3, 0], sizes = [1, 32], strides = [1, 1]} : vector<8x128xf32> to vector<1x32xf32>
    %cst_34 = arith.constant dense<0.000000e+00> : vector<16xf32>
    %102 = vector.multi_reduction <add>, %99, %cst_34 [1] : vector<16x32xf32> to vector<16xf32>
    %103 = vector.shape_cast %102 : vector<16xf32> to vector<16x1xf32>
    %cst_35 = arith.constant 3.200000e+01 : f32
    %104 = vector.broadcast %cst_35 : f32 to vector<16x1xf32>
    %105 = arith.divf %103, %104 : vector<16x1xf32>
    %106 = vector.broadcast %105 : vector<16x1xf32> to vector<16x32xf32>
    %107 = arith.subf %99, %106 : vector<16x32xf32>
    %108 = arith.mulf %107, %107 : vector<16x32xf32>
    %cst_36 = arith.constant dense<0.000000e+00> : vector<16xf32>
    %109 = vector.multi_reduction <add>, %108, %cst_36 [1] : vector<16x32xf32> to vector<16xf32>
    %110 = vector.shape_cast %109 : vector<16xf32> to vector<16x1xf32>
    %cst_37 = arith.constant 3.200000e+01 : f32
    %111 = vector.broadcast %cst_37 : f32 to vector<16x1xf32>
    %112 = arith.divf %110, %111 : vector<16x1xf32>
    %113 = vector.broadcast %105 : vector<16x1xf32> to vector<16x32xf32>
    %114 = arith.subf %99, %113 : vector<16x32xf32>
    %cst_38 = arith.constant 9.99999996E-13 : f32
    %115 = vector.broadcast %cst_38 : f32 to vector<16x1xf32>
    %116 = arith.addf %112, %115 : vector<16x1xf32>
    %117 = math.rsqrt %116 : vector<16x1xf32>
    %118 = vector.broadcast %117 : vector<16x1xf32> to vector<16x32xf32>
    %119 = arith.mulf %114, %118 : vector<16x32xf32>
    %120 = vector.broadcast %100 : vector<1x32xf32> to vector<16x32xf32>
    %121 = arith.mulf %119, %120 : vector<16x32xf32>
    %122 = vector.broadcast %101 : vector<1x32xf32> to vector<16x32xf32>
    %123 = arith.addf %121, %122 : vector<16x32xf32>
    %c0_39 = arith.constant 0 : index
    %c0_40 = arith.constant 0 : index
    %124 = vector.load %arg6[%c0_39, %c0_40] : memref<32x64xf32, #tpu.memory_space<vmem>>, vector<32x64xf32>
    %cst_41 = arith.constant dense<0.000000e+00> : vector<16x64xf32>
    %125 = tpu.matmul %123, %124, %cst_41 {dimension_numbers = #tpu.dot_dimension_numbers<[1], [0], [0], [1], [0, 0, 1, 1], [], []>} : vector<16x32xf32>, vector<32x64xf32>, vector<16x64xf32> -> vector<16x64xf32>
    %126 = vector.extract_strided_slice %8 {offsets = [4, 0], sizes = [1, 64], strides = [1, 1]} : vector<8x128xf32> to vector<1x64xf32>
    %127 = vector.broadcast %126 : vector<1x64xf32> to vector<16x64xf32>
    %128 = arith.addf %125, %127 : vector<16x64xf32>
    %129 = arith.mulf %128, %128 : vector<16x64xf32>
    %130 = arith.mulf %128, %129 : vector<16x64xf32>
    %cst_42 = arith.constant 4.471500e-02 : f32
    %131 = vector.broadcast %cst_42 : f32 to vector<16x64xf32>
    %132 = arith.mulf %131, %130 : vector<16x64xf32>
    %133 = arith.addf %128, %132 : vector<16x64xf32>
    %cst_43 = arith.constant 0.797884583 : f32
    %134 = vector.broadcast %cst_43 : f32 to vector<16x64xf32>
    %135 = arith.mulf %134, %133 : vector<16x64xf32>
    %136 = math.tanh %135 : vector<16x64xf32>
    %cst_44 = arith.constant 1.000000e+00 : f32
    %137 = vector.broadcast %cst_44 : f32 to vector<16x64xf32>
    %138 = arith.addf %137, %136 : vector<16x64xf32>
    %cst_45 = arith.constant 5.000000e-01 : f32
    %139 = vector.broadcast %cst_45 : f32 to vector<16x64xf32>
    %140 = arith.mulf %139, %138 : vector<16x64xf32>
    %141 = arith.mulf %128, %140 : vector<16x64xf32>
    %c0_46 = arith.constant 0 : index
    %c0_47 = arith.constant 0 : index
    %142 = vector.load %arg7[%c0_46, %c0_47] : memref<64x32xf32, #tpu.memory_space<vmem>>, vector<64x32xf32>
    %cst_48 = arith.constant dense<0.000000e+00> : vector<16x32xf32>
    %143 = tpu.matmul %141, %142, %cst_48 {dimension_numbers = #tpu.dot_dimension_numbers<[1], [0], [0], [1], [0, 0, 1, 1], [], []>} : vector<16x64xf32>, vector<64x32xf32>, vector<16x32xf32> -> vector<16x32xf32>
    %144 = vector.extract_strided_slice %8 {offsets = [5, 0], sizes = [1, 32], strides = [1, 1]} : vector<8x128xf32> to vector<1x32xf32>
    %145 = vector.broadcast %144 : vector<1x32xf32> to vector<16x32xf32>
    %146 = arith.addf %143, %145 : vector<16x32xf32>
    %147 = arith.addf %123, %146 : vector<16x32xf32>
    %148 = vector.extract_strided_slice %8 {offsets = [6, 0], sizes = [1, 32], strides = [1, 1]} : vector<8x128xf32> to vector<1x32xf32>
    %149 = vector.extract_strided_slice %8 {offsets = [7, 0], sizes = [1, 32], strides = [1, 1]} : vector<8x128xf32> to vector<1x32xf32>
    %cst_49 = arith.constant dense<0.000000e+00> : vector<16xf32>
    %150 = vector.multi_reduction <add>, %147, %cst_49 [1] : vector<16x32xf32> to vector<16xf32>
    %151 = vector.shape_cast %150 : vector<16xf32> to vector<16x1xf32>
    %cst_50 = arith.constant 3.200000e+01 : f32
    %152 = vector.broadcast %cst_50 : f32 to vector<16x1xf32>
    %153 = arith.divf %151, %152 : vector<16x1xf32>
    %154 = vector.broadcast %153 : vector<16x1xf32> to vector<16x32xf32>
    %155 = arith.subf %147, %154 : vector<16x32xf32>
    %156 = arith.mulf %155, %155 : vector<16x32xf32>
    %cst_51 = arith.constant dense<0.000000e+00> : vector<16xf32>
    %157 = vector.multi_reduction <add>, %156, %cst_51 [1] : vector<16x32xf32> to vector<16xf32>
    %158 = vector.shape_cast %157 : vector<16xf32> to vector<16x1xf32>
    %cst_52 = arith.constant 3.200000e+01 : f32
    %159 = vector.broadcast %cst_52 : f32 to vector<16x1xf32>
    %160 = arith.divf %158, %159 : vector<16x1xf32>
    %161 = vector.broadcast %153 : vector<16x1xf32> to vector<16x32xf32>
    %162 = arith.subf %147, %161 : vector<16x32xf32>
    %cst_53 = arith.constant 9.99999996E-13 : f32
    %163 = vector.broadcast %cst_53 : f32 to vector<16x1xf32>
    %164 = arith.addf %160, %163 : vector<16x1xf32>
    %165 = math.rsqrt %164 : vector<16x1xf32>
    %166 = vector.broadcast %165 : vector<16x1xf32> to vector<16x32xf32>
    %167 = arith.mulf %162, %166 : vector<16x32xf32>
    %168 = vector.broadcast %148 : vector<1x32xf32> to vector<16x32xf32>
    %169 = arith.mulf %167, %168 : vector<16x32xf32>
    %170 = vector.broadcast %149 : vector<1x32xf32> to vector<16x32xf32>
    %171 = arith.addf %169, %170 : vector<16x32xf32>
    %c0_54 = arith.constant 0 : index
    %c0_55 = arith.constant 0 : index
    %172 = vector.load %arg3[%c0_54, %c0_55] : memref<8x32xf32, #tpu.memory_space<vmem>>, vector<8x32xf32>
    %c0_56 = arith.constant 0 : index
    %c0_57 = arith.constant 0 : index
    %c0_58 = arith.constant 0 : index
    %173 = vector.load %arg15[%c0_56, %c0_57, %c0_58] : memref<2x12x128xf32, #tpu.memory_space<vmem>>, vector<1x12x128xf32>
    %174 = vector.shape_cast %173 : vector<1x12x128xf32> to vector<12x128xf32>
    %c0_59 = arith.constant 0 : index
    %c0_60 = arith.constant 0 : index
    %c0_61 = arith.constant 0 : index
    %175 = vector.load %arg9[%c0_59, %c0_60, %c0_61] : memref<2x32x96xf32, #tpu.memory_space<vmem>>, vector<1x32x96xf32>
    %176 = vector.shape_cast %175 : vector<1x32x96xf32> to vector<32x96xf32>
    %cst_62 = arith.constant dense<0.000000e+00> : vector<8x96xf32>
    %177 = tpu.matmul %172, %176, %cst_62 {dimension_numbers = #tpu.dot_dimension_numbers<[1], [0], [0], [1], [0, 0, 1, 1], [], []>} : vector<8x32xf32>, vector<32x96xf32>, vector<8x96xf32> -> vector<8x96xf32>
    %178 = vector.extract_strided_slice %174 {offsets = [0, 0], sizes = [1, 96], strides = [1, 1]} : vector<12x128xf32> to vector<1x96xf32>
    %179 = vector.broadcast %178 : vector<1x96xf32> to vector<8x96xf32>
    %180 = arith.addf %177, %179 : vector<8x96xf32>
    %181 = vector.extract_strided_slice %180 {offsets = [0, 0], sizes = [8, 32], strides = [1, 1]} : vector<8x96xf32> to vector<8x32xf32>
    %182 = vector.extract_strided_slice %180 {offsets = [0, 32], sizes = [8, 32], strides = [1, 1]} : vector<8x96xf32> to vector<8x32xf32>
    %183 = vector.extract_strided_slice %180 {offsets = [0, 64], sizes = [8, 32], strides = [1, 1]} : vector<8x96xf32> to vector<8x32xf32>
    %c0_63 = arith.constant 0 : index
    %c0_64 = arith.constant 0 : index
    %c0_65 = arith.constant 0 : index
    %184 = vector.load %arg10[%c0_63, %c0_64, %c0_65] : memref<2x32x32xf32, #tpu.memory_space<vmem>>, vector<1x32x32xf32>
    %185 = vector.shape_cast %184 : vector<1x32x32xf32> to vector<32x32xf32>
    %186 = vector.extract_strided_slice %174 {offsets = [1, 0], sizes = [1, 32], strides = [1, 1]} : vector<12x128xf32> to vector<1x32xf32>
    %187 = vector.extract_strided_slice %181 {offsets = [0, 0], sizes = [8, 8], strides = [1, 1]} : vector<8x32xf32> to vector<8x8xf32>
    %188 = vector.extract_strided_slice %182 {offsets = [0, 0], sizes = [8, 8], strides = [1, 1]} : vector<8x32xf32> to vector<8x8xf32>
    %cst_66 = arith.constant dense<0.000000e+00> : vector<8x8xf32>
    %189 = tpu.matmul %187, %188, %cst_66 {dimension_numbers = #tpu.dot_dimension_numbers<[1], [1], [0], [0], [0, 0, 1, 0], [], []>} : vector<8x8xf32>, vector<8x8xf32>, vector<8x8xf32> -> vector<8x8xf32>
    %cst_67 = arith.constant 0.353553385 : f32
    %190 = vector.broadcast %cst_67 : f32 to vector<8x8xf32>
    %191 = arith.mulf %189, %190 : vector<8x8xf32>
    %cst_68 = arith.constant 0.000000e+00 : f32
    %192 = vector.broadcast %cst_68 : f32 to vector<8x8xf32>
    %193 = arith.addf %191, %192 : vector<8x8xf32>
    %cst_69 = arith.constant dense<0xFF800000> : vector<8xf32>
    %194 = vector.multi_reduction <maximumf>, %193, %cst_69 [1] : vector<8x8xf32> to vector<8xf32>
    %195 = vector.shape_cast %194 : vector<8xf32> to vector<8x1xf32>
    %196 = vector.broadcast %195 : vector<8x1xf32> to vector<8x8xf32>
    %197 = arith.subf %193, %196 : vector<8x8xf32>
    %198 = math.exp %197 : vector<8x8xf32>
    %cst_70 = arith.constant dense<0.000000e+00> : vector<8xf32>
    %199 = vector.multi_reduction <add>, %198, %cst_70 [1] : vector<8x8xf32> to vector<8xf32>
    %200 = vector.shape_cast %199 : vector<8xf32> to vector<8x1xf32>
    %201 = tpu.reciprocal %200 {approx = true} : vector<8x1xf32> -> vector<8x1xf32>
    %202 = vector.broadcast %201 : vector<8x1xf32> to vector<8x8xf32>
    %203 = arith.mulf %198, %202 : vector<8x8xf32>
    %204 = vector.extract_strided_slice %183 {offsets = [0, 0], sizes = [8, 8], strides = [1, 1]} : vector<8x32xf32> to vector<8x8xf32>
    %cst_71 = arith.constant dense<0.000000e+00> : vector<8x8xf32>
    %205 = tpu.matmul %203, %204, %cst_71 {dimension_numbers = #tpu.dot_dimension_numbers<[1], [0], [0], [1], [0, 0, 1, 1], [], []>} : vector<8x8xf32>, vector<8x8xf32>, vector<8x8xf32> -> vector<8x8xf32>
    %206 = vector.extract_strided_slice %181 {offsets = [0, 8], sizes = [8, 8], strides = [1, 1]} : vector<8x32xf32> to vector<8x8xf32>
    %207 = vector.extract_strided_slice %182 {offsets = [0, 8], sizes = [8, 8], strides = [1, 1]} : vector<8x32xf32> to vector<8x8xf32>
    %cst_72 = arith.constant dense<0.000000e+00> : vector<8x8xf32>
    %208 = tpu.matmul %206, %207, %cst_72 {dimension_numbers = #tpu.dot_dimension_numbers<[1], [1], [0], [0], [0, 0, 1, 0], [], []>} : vector<8x8xf32>, vector<8x8xf32>, vector<8x8xf32> -> vector<8x8xf32>
    %cst_73 = arith.constant 0.353553385 : f32
    %209 = vector.broadcast %cst_73 : f32 to vector<8x8xf32>
    %210 = arith.mulf %208, %209 : vector<8x8xf32>
    %cst_74 = arith.constant 0.000000e+00 : f32
    %211 = vector.broadcast %cst_74 : f32 to vector<8x8xf32>
    %212 = arith.addf %210, %211 : vector<8x8xf32>
    %cst_75 = arith.constant dense<0xFF800000> : vector<8xf32>
    %213 = vector.multi_reduction <maximumf>, %212, %cst_75 [1] : vector<8x8xf32> to vector<8xf32>
    %214 = vector.shape_cast %213 : vector<8xf32> to vector<8x1xf32>
    %215 = vector.broadcast %214 : vector<8x1xf32> to vector<8x8xf32>
    %216 = arith.subf %212, %215 : vector<8x8xf32>
    %217 = math.exp %216 : vector<8x8xf32>
    %cst_76 = arith.constant dense<0.000000e+00> : vector<8xf32>
    %218 = vector.multi_reduction <add>, %217, %cst_76 [1] : vector<8x8xf32> to vector<8xf32>
    %219 = vector.shape_cast %218 : vector<8xf32> to vector<8x1xf32>
    %220 = tpu.reciprocal %219 {approx = true} : vector<8x1xf32> -> vector<8x1xf32>
    %221 = vector.broadcast %220 : vector<8x1xf32> to vector<8x8xf32>
    %222 = arith.mulf %217, %221 : vector<8x8xf32>
    %223 = vector.extract_strided_slice %183 {offsets = [0, 8], sizes = [8, 8], strides = [1, 1]} : vector<8x32xf32> to vector<8x8xf32>
    %cst_77 = arith.constant dense<0.000000e+00> : vector<8x8xf32>
    %224 = tpu.matmul %222, %223, %cst_77 {dimension_numbers = #tpu.dot_dimension_numbers<[1], [0], [0], [1], [0, 0, 1, 1], [], []>} : vector<8x8xf32>, vector<8x8xf32>, vector<8x8xf32> -> vector<8x8xf32>
    %225 = vector.extract_strided_slice %181 {offsets = [0, 16], sizes = [8, 8], strides = [1, 1]} : vector<8x32xf32> to vector<8x8xf32>
    %226 = vector.extract_strided_slice %182 {offsets = [0, 16], sizes = [8, 8], strides = [1, 1]} : vector<8x32xf32> to vector<8x8xf32>
    %cst_78 = arith.constant dense<0.000000e+00> : vector<8x8xf32>
    %227 = tpu.matmul %225, %226, %cst_78 {dimension_numbers = #tpu.dot_dimension_numbers<[1], [1], [0], [0], [0, 0, 1, 0], [], []>} : vector<8x8xf32>, vector<8x8xf32>, vector<8x8xf32> -> vector<8x8xf32>
    %cst_79 = arith.constant 0.353553385 : f32
    %228 = vector.broadcast %cst_79 : f32 to vector<8x8xf32>
    %229 = arith.mulf %227, %228 : vector<8x8xf32>
    %cst_80 = arith.constant 0.000000e+00 : f32
    %230 = vector.broadcast %cst_80 : f32 to vector<8x8xf32>
    %231 = arith.addf %229, %230 : vector<8x8xf32>
    %cst_81 = arith.constant dense<0xFF800000> : vector<8xf32>
    %232 = vector.multi_reduction <maximumf>, %231, %cst_81 [1] : vector<8x8xf32> to vector<8xf32>
    %233 = vector.shape_cast %232 : vector<8xf32> to vector<8x1xf32>
    %234 = vector.broadcast %233 : vector<8x1xf32> to vector<8x8xf32>
    %235 = arith.subf %231, %234 : vector<8x8xf32>
    %236 = math.exp %235 : vector<8x8xf32>
    %cst_82 = arith.constant dense<0.000000e+00> : vector<8xf32>
    %237 = vector.multi_reduction <add>, %236, %cst_82 [1] : vector<8x8xf32> to vector<8xf32>
    %238 = vector.shape_cast %237 : vector<8xf32> to vector<8x1xf32>
    %239 = tpu.reciprocal %238 {approx = true} : vector<8x1xf32> -> vector<8x1xf32>
    %240 = vector.broadcast %239 : vector<8x1xf32> to vector<8x8xf32>
    %241 = arith.mulf %236, %240 : vector<8x8xf32>
    %242 = vector.extract_strided_slice %183 {offsets = [0, 16], sizes = [8, 8], strides = [1, 1]} : vector<8x32xf32> to vector<8x8xf32>
    %cst_83 = arith.constant dense<0.000000e+00> : vector<8x8xf32>
    %243 = tpu.matmul %241, %242, %cst_83 {dimension_numbers = #tpu.dot_dimension_numbers<[1], [0], [0], [1], [0, 0, 1, 1], [], []>} : vector<8x8xf32>, vector<8x8xf32>, vector<8x8xf32> -> vector<8x8xf32>
    %244 = vector.extract_strided_slice %181 {offsets = [0, 24], sizes = [8, 8], strides = [1, 1]} : vector<8x32xf32> to vector<8x8xf32>
    %245 = vector.extract_strided_slice %182 {offsets = [0, 24], sizes = [8, 8], strides = [1, 1]} : vector<8x32xf32> to vector<8x8xf32>
    %cst_84 = arith.constant dense<0.000000e+00> : vector<8x8xf32>
    %246 = tpu.matmul %244, %245, %cst_84 {dimension_numbers = #tpu.dot_dimension_numbers<[1], [1], [0], [0], [0, 0, 1, 0], [], []>} : vector<8x8xf32>, vector<8x8xf32>, vector<8x8xf32> -> vector<8x8xf32>
    %cst_85 = arith.constant 0.353553385 : f32
    %247 = vector.broadcast %cst_85 : f32 to vector<8x8xf32>
    %248 = arith.mulf %246, %247 : vector<8x8xf32>
    %cst_86 = arith.constant 0.000000e+00 : f32
    %249 = vector.broadcast %cst_86 : f32 to vector<8x8xf32>
    %250 = arith.addf %248, %249 : vector<8x8xf32>
    %cst_87 = arith.constant dense<0xFF800000> : vector<8xf32>
    %251 = vector.multi_reduction <maximumf>, %250, %cst_87 [1] : vector<8x8xf32> to vector<8xf32>
    %252 = vector.shape_cast %251 : vector<8xf32> to vector<8x1xf32>
    %253 = vector.broadcast %252 : vector<8x1xf32> to vector<8x8xf32>
    %254 = arith.subf %250, %253 : vector<8x8xf32>
    %255 = math.exp %254 : vector<8x8xf32>
    %cst_88 = arith.constant dense<0.000000e+00> : vector<8xf32>
    %256 = vector.multi_reduction <add>, %255, %cst_88 [1] : vector<8x8xf32> to vector<8xf32>
    %257 = vector.shape_cast %256 : vector<8xf32> to vector<8x1xf32>
    %258 = tpu.reciprocal %257 {approx = true} : vector<8x1xf32> -> vector<8x1xf32>
    %259 = vector.broadcast %258 : vector<8x1xf32> to vector<8x8xf32>
    %260 = arith.mulf %255, %259 : vector<8x8xf32>
    %261 = vector.extract_strided_slice %183 {offsets = [0, 24], sizes = [8, 8], strides = [1, 1]} : vector<8x32xf32> to vector<8x8xf32>
    %cst_89 = arith.constant dense<0.000000e+00> : vector<8x8xf32>
    %262 = tpu.matmul %260, %261, %cst_89 {dimension_numbers = #tpu.dot_dimension_numbers<[1], [0], [0], [1], [0, 0, 1, 1], [], []>} : vector<8x8xf32>, vector<8x8xf32>, vector<8x8xf32> -> vector<8x8xf32>
    %263 = tpu.concatenate %205, %224, %243, %262 in 1 : vector<8x8xf32>, vector<8x8xf32>, vector<8x8xf32>, vector<8x8xf32> -> vector<8x32xf32>
    %cst_90 = arith.constant dense<0.000000e+00> : vector<8x32xf32>
    %264 = tpu.matmul %263, %185, %cst_90 {dimension_numbers = #tpu.dot_dimension_numbers<[1], [0], [0], [1], [0, 0, 1, 1], [], []>} : vector<8x32xf32>, vector<32x32xf32>, vector<8x32xf32> -> vector<8x32xf32>
    %265 = vector.broadcast %186 : vector<1x32xf32> to vector<8x32xf32>
    %266 = arith.addf %264, %265 : vector<8x32xf32>
    %267 = arith.addf %172, %266 : vector<8x32xf32>
    %268 = vector.extract_strided_slice %174 {offsets = [2, 0], sizes = [1, 32], strides = [1, 1]} : vector<12x128xf32> to vector<1x32xf32>
    %269 = vector.extract_strided_slice %174 {offsets = [3, 0], sizes = [1, 32], strides = [1, 1]} : vector<12x128xf32> to vector<1x32xf32>
    %cst_91 = arith.constant dense<0.000000e+00> : vector<8xf32>
    %270 = vector.multi_reduction <add>, %267, %cst_91 [1] : vector<8x32xf32> to vector<8xf32>
    %271 = vector.shape_cast %270 : vector<8xf32> to vector<8x1xf32>
    %cst_92 = arith.constant 3.200000e+01 : f32
    %272 = vector.broadcast %cst_92 : f32 to vector<8x1xf32>
    %273 = arith.divf %271, %272 : vector<8x1xf32>
    %274 = vector.broadcast %273 : vector<8x1xf32> to vector<8x32xf32>
    %275 = arith.subf %267, %274 : vector<8x32xf32>
    %276 = arith.mulf %275, %275 : vector<8x32xf32>
    %cst_93 = arith.constant dense<0.000000e+00> : vector<8xf32>
    %277 = vector.multi_reduction <add>, %276, %cst_93 [1] : vector<8x32xf32> to vector<8xf32>
    %278 = vector.shape_cast %277 : vector<8xf32> to vector<8x1xf32>
    %cst_94 = arith.constant 3.200000e+01 : f32
    %279 = vector.broadcast %cst_94 : f32 to vector<8x1xf32>
    %280 = arith.divf %278, %279 : vector<8x1xf32>
    %281 = vector.broadcast %273 : vector<8x1xf32> to vector<8x32xf32>
    %282 = arith.subf %267, %281 : vector<8x32xf32>
    %cst_95 = arith.constant 9.99999996E-13 : f32
    %283 = vector.broadcast %cst_95 : f32 to vector<8x1xf32>
    %284 = arith.addf %280, %283 : vector<8x1xf32>
    %285 = math.rsqrt %284 : vector<8x1xf32>
    %286 = vector.broadcast %285 : vector<8x1xf32> to vector<8x32xf32>
    %287 = arith.mulf %282, %286 : vector<8x32xf32>
    %288 = vector.broadcast %268 : vector<1x32xf32> to vector<8x32xf32>
    %289 = arith.mulf %287, %288 : vector<8x32xf32>
    %290 = vector.broadcast %269 : vector<1x32xf32> to vector<8x32xf32>
    %291 = arith.addf %289, %290 : vector<8x32xf32>
    %c0_96 = arith.constant 0 : index
    %c0_97 = arith.constant 0 : index
    %c0_98 = arith.constant 0 : index
    %292 = vector.load %arg11[%c0_96, %c0_97, %c0_98] : memref<2x32x96xf32, #tpu.memory_space<vmem>>, vector<1x32x96xf32>
    %293 = vector.shape_cast %292 : vector<1x32x96xf32> to vector<32x96xf32>
    %294 = vector.extract_strided_slice %293 {offsets = [0, 0], sizes = [32, 32], strides = [1, 1]} : vector<32x96xf32> to vector<32x32xf32>
    %cst_99 = arith.constant dense<0.000000e+00> : vector<8x32xf32>
    %295 = tpu.matmul %291, %294, %cst_99 {dimension_numbers = #tpu.dot_dimension_numbers<[1], [0], [0], [1], [0, 0, 1, 1], [], []>} : vector<8x32xf32>, vector<32x32xf32>, vector<8x32xf32> -> vector<8x32xf32>
    %296 = vector.extract_strided_slice %174 {offsets = [4, 0], sizes = [1, 32], strides = [1, 1]} : vector<12x128xf32> to vector<1x32xf32>
    %297 = vector.broadcast %296 : vector<1x32xf32> to vector<8x32xf32>
    %298 = arith.addf %295, %297 : vector<8x32xf32>
    %299 = vector.extract_strided_slice %293 {offsets = [0, 32], sizes = [32, 64], strides = [1, 1]} : vector<32x96xf32> to vector<32x64xf32>
    %cst_100 = arith.constant dense<0.000000e+00> : vector<16x64xf32>
    %300 = tpu.matmul %171, %299, %cst_100 {dimension_numbers = #tpu.dot_dimension_numbers<[1], [0], [0], [1], [0, 0, 1, 1], [], []>} : vector<16x32xf32>, vector<32x64xf32>, vector<16x64xf32> -> vector<16x64xf32>
    %301 = vector.extract_strided_slice %174 {offsets = [4, 32], sizes = [1, 64], strides = [1, 1]} : vector<12x128xf32> to vector<1x64xf32>
    %302 = vector.broadcast %301 : vector<1x64xf32> to vector<16x64xf32>
    %303 = arith.addf %300, %302 : vector<16x64xf32>
    %304 = vector.extract_strided_slice %303 {offsets = [0, 0], sizes = [16, 32], strides = [1, 1]} : vector<16x64xf32> to vector<16x32xf32>
    %305 = vector.extract_strided_slice %303 {offsets = [0, 32], sizes = [16, 32], strides = [1, 1]} : vector<16x64xf32> to vector<16x32xf32>
    %c0_101 = arith.constant 0 : index
    %c0_102 = arith.constant 0 : index
    %c0_103 = arith.constant 0 : index
    %306 = vector.load %arg12[%c0_101, %c0_102, %c0_103] : memref<2x32x32xf32, #tpu.memory_space<vmem>>, vector<1x32x32xf32>
    %307 = vector.shape_cast %306 : vector<1x32x32xf32> to vector<32x32xf32>
    %308 = vector.extract_strided_slice %174 {offsets = [5, 0], sizes = [1, 32], strides = [1, 1]} : vector<12x128xf32> to vector<1x32xf32>
    %309 = vector.extract_strided_slice %298 {offsets = [0, 0], sizes = [8, 8], strides = [1, 1]} : vector<8x32xf32> to vector<8x8xf32>
    %310 = vector.extract_strided_slice %304 {offsets = [0, 0], sizes = [16, 8], strides = [1, 1]} : vector<16x32xf32> to vector<16x8xf32>
    %cst_104 = arith.constant dense<0.000000e+00> : vector<8x16xf32>
    %311 = tpu.matmul %309, %310, %cst_104 {dimension_numbers = #tpu.dot_dimension_numbers<[1], [1], [0], [0], [0, 0, 1, 0], [], []>} : vector<8x8xf32>, vector<16x8xf32>, vector<8x16xf32> -> vector<8x16xf32>
    %cst_105 = arith.constant 0.353553385 : f32
    %312 = vector.broadcast %cst_105 : f32 to vector<8x16xf32>
    %313 = arith.mulf %311, %312 : vector<8x16xf32>
    %314 = vector.broadcast %7 : vector<1x16xf32> to vector<8x16xf32>
    %315 = arith.addf %313, %314 : vector<8x16xf32>
    %cst_106 = arith.constant dense<0xFF800000> : vector<8xf32>
    %316 = vector.multi_reduction <maximumf>, %315, %cst_106 [1] : vector<8x16xf32> to vector<8xf32>
    %317 = vector.shape_cast %316 : vector<8xf32> to vector<8x1xf32>
    %318 = vector.broadcast %317 : vector<8x1xf32> to vector<8x16xf32>
    %319 = arith.subf %315, %318 : vector<8x16xf32>
    %320 = math.exp %319 : vector<8x16xf32>
    %cst_107 = arith.constant dense<0.000000e+00> : vector<8xf32>
    %321 = vector.multi_reduction <add>, %320, %cst_107 [1] : vector<8x16xf32> to vector<8xf32>
    %322 = vector.shape_cast %321 : vector<8xf32> to vector<8x1xf32>
    %323 = tpu.reciprocal %322 {approx = true} : vector<8x1xf32> -> vector<8x1xf32>
    %324 = vector.broadcast %323 : vector<8x1xf32> to vector<8x16xf32>
    %325 = arith.mulf %320, %324 : vector<8x16xf32>
    %326 = vector.extract_strided_slice %305 {offsets = [0, 0], sizes = [16, 8], strides = [1, 1]} : vector<16x32xf32> to vector<16x8xf32>
    %cst_108 = arith.constant dense<0.000000e+00> : vector<8x8xf32>
    %327 = tpu.matmul %325, %326, %cst_108 {dimension_numbers = #tpu.dot_dimension_numbers<[1], [0], [0], [1], [0, 0, 1, 1], [], []>} : vector<8x16xf32>, vector<16x8xf32>, vector<8x8xf32> -> vector<8x8xf32>
    %328 = vector.extract_strided_slice %298 {offsets = [0, 8], sizes = [8, 8], strides = [1, 1]} : vector<8x32xf32> to vector<8x8xf32>
    %329 = vector.extract_strided_slice %304 {offsets = [0, 8], sizes = [16, 8], strides = [1, 1]} : vector<16x32xf32> to vector<16x8xf32>
    %cst_109 = arith.constant dense<0.000000e+00> : vector<8x16xf32>
    %330 = tpu.matmul %328, %329, %cst_109 {dimension_numbers = #tpu.dot_dimension_numbers<[1], [1], [0], [0], [0, 0, 1, 0], [], []>} : vector<8x8xf32>, vector<16x8xf32>, vector<8x16xf32> -> vector<8x16xf32>
    %cst_110 = arith.constant 0.353553385 : f32
    %331 = vector.broadcast %cst_110 : f32 to vector<8x16xf32>
    %332 = arith.mulf %330, %331 : vector<8x16xf32>
    %333 = vector.broadcast %7 : vector<1x16xf32> to vector<8x16xf32>
    %334 = arith.addf %332, %333 : vector<8x16xf32>
    %cst_111 = arith.constant dense<0xFF800000> : vector<8xf32>
    %335 = vector.multi_reduction <maximumf>, %334, %cst_111 [1] : vector<8x16xf32> to vector<8xf32>
    %336 = vector.shape_cast %335 : vector<8xf32> to vector<8x1xf32>
    %337 = vector.broadcast %336 : vector<8x1xf32> to vector<8x16xf32>
    %338 = arith.subf %334, %337 : vector<8x16xf32>
    %339 = math.exp %338 : vector<8x16xf32>
    %cst_112 = arith.constant dense<0.000000e+00> : vector<8xf32>
    %340 = vector.multi_reduction <add>, %339, %cst_112 [1] : vector<8x16xf32> to vector<8xf32>
    %341 = vector.shape_cast %340 : vector<8xf32> to vector<8x1xf32>
    %342 = tpu.reciprocal %341 {approx = true} : vector<8x1xf32> -> vector<8x1xf32>
    %343 = vector.broadcast %342 : vector<8x1xf32> to vector<8x16xf32>
    %344 = arith.mulf %339, %343 : vector<8x16xf32>
    %345 = vector.extract_strided_slice %305 {offsets = [0, 8], sizes = [16, 8], strides = [1, 1]} : vector<16x32xf32> to vector<16x8xf32>
    %cst_113 = arith.constant dense<0.000000e+00> : vector<8x8xf32>
    %346 = tpu.matmul %344, %345, %cst_113 {dimension_numbers = #tpu.dot_dimension_numbers<[1], [0], [0], [1], [0, 0, 1, 1], [], []>} : vector<8x16xf32>, vector<16x8xf32>, vector<8x8xf32> -> vector<8x8xf32>
    %347 = vector.extract_strided_slice %298 {offsets = [0, 16], sizes = [8, 8], strides = [1, 1]} : vector<8x32xf32> to vector<8x8xf32>
    %348 = vector.extract_strided_slice %304 {offsets = [0, 16], sizes = [16, 8], strides = [1, 1]} : vector<16x32xf32> to vector<16x8xf32>
    %cst_114 = arith.constant dense<0.000000e+00> : vector<8x16xf32>
    %349 = tpu.matmul %347, %348, %cst_114 {dimension_numbers = #tpu.dot_dimension_numbers<[1], [1], [0], [0], [0, 0, 1, 0], [], []>} : vector<8x8xf32>, vector<16x8xf32>, vector<8x16xf32> -> vector<8x16xf32>
    %cst_115 = arith.constant 0.353553385 : f32
    %350 = vector.broadcast %cst_115 : f32 to vector<8x16xf32>
    %351 = arith.mulf %349, %350 : vector<8x16xf32>
    %352 = vector.broadcast %7 : vector<1x16xf32> to vector<8x16xf32>
    %353 = arith.addf %351, %352 : vector<8x16xf32>
    %cst_116 = arith.constant dense<0xFF800000> : vector<8xf32>
    %354 = vector.multi_reduction <maximumf>, %353, %cst_116 [1] : vector<8x16xf32> to vector<8xf32>
    %355 = vector.shape_cast %354 : vector<8xf32> to vector<8x1xf32>
    %356 = vector.broadcast %355 : vector<8x1xf32> to vector<8x16xf32>
    %357 = arith.subf %353, %356 : vector<8x16xf32>
    %358 = math.exp %357 : vector<8x16xf32>
    %cst_117 = arith.constant dense<0.000000e+00> : vector<8xf32>
    %359 = vector.multi_reduction <add>, %358, %cst_117 [1] : vector<8x16xf32> to vector<8xf32>
    %360 = vector.shape_cast %359 : vector<8xf32> to vector<8x1xf32>
    %361 = tpu.reciprocal %360 {approx = true} : vector<8x1xf32> -> vector<8x1xf32>
    %362 = vector.broadcast %361 : vector<8x1xf32> to vector<8x16xf32>
    %363 = arith.mulf %358, %362 : vector<8x16xf32>
    %364 = vector.extract_strided_slice %305 {offsets = [0, 16], sizes = [16, 8], strides = [1, 1]} : vector<16x32xf32> to vector<16x8xf32>
    %cst_118 = arith.constant dense<0.000000e+00> : vector<8x8xf32>
    %365 = tpu.matmul %363, %364, %cst_118 {dimension_numbers = #tpu.dot_dimension_numbers<[1], [0], [0], [1], [0, 0, 1, 1], [], []>} : vector<8x16xf32>, vector<16x8xf32>, vector<8x8xf32> -> vector<8x8xf32>
    %366 = vector.extract_strided_slice %298 {offsets = [0, 24], sizes = [8, 8], strides = [1, 1]} : vector<8x32xf32> to vector<8x8xf32>
    %367 = vector.extract_strided_slice %304 {offsets = [0, 24], sizes = [16, 8], strides = [1, 1]} : vector<16x32xf32> to vector<16x8xf32>
    %cst_119 = arith.constant dense<0.000000e+00> : vector<8x16xf32>
    %368 = tpu.matmul %366, %367, %cst_119 {dimension_numbers = #tpu.dot_dimension_numbers<[1], [1], [0], [0], [0, 0, 1, 0], [], []>} : vector<8x8xf32>, vector<16x8xf32>, vector<8x16xf32> -> vector<8x16xf32>
    %cst_120 = arith.constant 0.353553385 : f32
    %369 = vector.broadcast %cst_120 : f32 to vector<8x16xf32>
    %370 = arith.mulf %368, %369 : vector<8x16xf32>
    %371 = vector.broadcast %7 : vector<1x16xf32> to vector<8x16xf32>
    %372 = arith.addf %370, %371 : vector<8x16xf32>
    %cst_121 = arith.constant dense<0xFF800000> : vector<8xf32>
    %373 = vector.multi_reduction <maximumf>, %372, %cst_121 [1] : vector<8x16xf32> to vector<8xf32>
    %374 = vector.shape_cast %373 : vector<8xf32> to vector<8x1xf32>
    %375 = vector.broadcast %374 : vector<8x1xf32> to vector<8x16xf32>
    %376 = arith.subf %372, %375 : vector<8x16xf32>
    %377 = math.exp %376 : vector<8x16xf32>
    %cst_122 = arith.constant dense<0.000000e+00> : vector<8xf32>
    %378 = vector.multi_reduction <add>, %377, %cst_122 [1] : vector<8x16xf32> to vector<8xf32>
    %379 = vector.shape_cast %378 : vector<8xf32> to vector<8x1xf32>
    %380 = tpu.reciprocal %379 {approx = true} : vector<8x1xf32> -> vector<8x1xf32>
    %381 = vector.broadcast %380 : vector<8x1xf32> to vector<8x16xf32>
    %382 = arith.mulf %377, %381 : vector<8x16xf32>
    %383 = vector.extract_strided_slice %305 {offsets = [0, 24], sizes = [16, 8], strides = [1, 1]} : vector<16x32xf32> to vector<16x8xf32>
    %cst_123 = arith.constant dense<0.000000e+00> : vector<8x8xf32>
    %384 = tpu.matmul %382, %383, %cst_123 {dimension_numbers = #tpu.dot_dimension_numbers<[1], [0], [0], [1], [0, 0, 1, 1], [], []>} : vector<8x16xf32>, vector<16x8xf32>, vector<8x8xf32> -> vector<8x8xf32>
    %385 = tpu.concatenate %327, %346, %365, %384 in 1 : vector<8x8xf32>, vector<8x8xf32>, vector<8x8xf32>, vector<8x8xf32> -> vector<8x32xf32>
    %cst_124 = arith.constant dense<0.000000e+00> : vector<8x32xf32>
    %386 = tpu.matmul %385, %307, %cst_124 {dimension_numbers = #tpu.dot_dimension_numbers<[1], [0], [0], [1], [0, 0, 1, 1], [], []>} : vector<8x32xf32>, vector<32x32xf32>, vector<8x32xf32> -> vector<8x32xf32>
    %387 = vector.broadcast %308 : vector<1x32xf32> to vector<8x32xf32>
    %388 = arith.addf %386, %387 : vector<8x32xf32>
    %389 = arith.addf %291, %388 : vector<8x32xf32>
    %390 = vector.extract_strided_slice %174 {offsets = [6, 0], sizes = [1, 32], strides = [1, 1]} : vector<12x128xf32> to vector<1x32xf32>
    %391 = vector.extract_strided_slice %174 {offsets = [7, 0], sizes = [1, 32], strides = [1, 1]} : vector<12x128xf32> to vector<1x32xf32>
    %cst_125 = arith.constant dense<0.000000e+00> : vector<8xf32>
    %392 = vector.multi_reduction <add>, %389, %cst_125 [1] : vector<8x32xf32> to vector<8xf32>
    %393 = vector.shape_cast %392 : vector<8xf32> to vector<8x1xf32>
    %cst_126 = arith.constant 3.200000e+01 : f32
    %394 = vector.broadcast %cst_126 : f32 to vector<8x1xf32>
    %395 = arith.divf %393, %394 : vector<8x1xf32>
    %396 = vector.broadcast %395 : vector<8x1xf32> to vector<8x32xf32>
    %397 = arith.subf %389, %396 : vector<8x32xf32>
    %398 = arith.mulf %397, %397 : vector<8x32xf32>
    %cst_127 = arith.constant dense<0.000000e+00> : vector<8xf32>
    %399 = vector.multi_reduction <add>, %398, %cst_127 [1] : vector<8x32xf32> to vector<8xf32>
    %400 = vector.shape_cast %399 : vector<8xf32> to vector<8x1xf32>
    %cst_128 = arith.constant 3.200000e+01 : f32
    %401 = vector.broadcast %cst_128 : f32 to vector<8x1xf32>
    %402 = arith.divf %400, %401 : vector<8x1xf32>
    %403 = vector.broadcast %395 : vector<8x1xf32> to vector<8x32xf32>
    %404 = arith.subf %389, %403 : vector<8x32xf32>
    %cst_129 = arith.constant 9.99999996E-13 : f32
    %405 = vector.broadcast %cst_129 : f32 to vector<8x1xf32>
    %406 = arith.addf %402, %405 : vector<8x1xf32>
    %407 = math.rsqrt %406 : vector<8x1xf32>
    %408 = vector.broadcast %407 : vector<8x1xf32> to vector<8x32xf32>
    %409 = arith.mulf %404, %408 : vector<8x32xf32>
    %410 = vector.broadcast %390 : vector<1x32xf32> to vector<8x32xf32>
    %411 = arith.mulf %409, %410 : vector<8x32xf32>
    %412 = vector.broadcast %391 : vector<1x32xf32> to vector<8x32xf32>
    %413 = arith.addf %411, %412 : vector<8x32xf32>
    %c0_130 = arith.constant 0 : index
    %c0_131 = arith.constant 0 : index
    %c0_132 = arith.constant 0 : index
    %414 = vector.load %arg13[%c0_130, %c0_131, %c0_132] : memref<2x32x64xf32, #tpu.memory_space<vmem>>, vector<1x32x64xf32>
    %415 = vector.shape_cast %414 : vector<1x32x64xf32> to vector<32x64xf32>
    %cst_133 = arith.constant dense<0.000000e+00> : vector<8x64xf32>
    %416 = tpu.matmul %413, %415, %cst_133 {dimension_numbers = #tpu.dot_dimension_numbers<[1], [0], [0], [1], [0, 0, 1, 1], [], []>} : vector<8x32xf32>, vector<32x64xf32>, vector<8x64xf32> -> vector<8x64xf32>
    %417 = vector.extract_strided_slice %174 {offsets = [8, 0], sizes = [1, 64], strides = [1, 1]} : vector<12x128xf32> to vector<1x64xf32>
    %418 = vector.broadcast %417 : vector<1x64xf32> to vector<8x64xf32>
    %419 = arith.addf %416, %418 : vector<8x64xf32>
    %420 = arith.mulf %419, %419 : vector<8x64xf32>
    %421 = arith.mulf %419, %420 : vector<8x64xf32>
    %cst_134 = arith.constant 4.471500e-02 : f32
    %422 = vector.broadcast %cst_134 : f32 to vector<8x64xf32>
    %423 = arith.mulf %422, %421 : vector<8x64xf32>
    %424 = arith.addf %419, %423 : vector<8x64xf32>
    %cst_135 = arith.constant 0.797884583 : f32
    %425 = vector.broadcast %cst_135 : f32 to vector<8x64xf32>
    %426 = arith.mulf %425, %424 : vector<8x64xf32>
    %427 = math.tanh %426 : vector<8x64xf32>
    %cst_136 = arith.constant 1.000000e+00 : f32
    %428 = vector.broadcast %cst_136 : f32 to vector<8x64xf32>
    %429 = arith.addf %428, %427 : vector<8x64xf32>
    %cst_137 = arith.constant 5.000000e-01 : f32
    %430 = vector.broadcast %cst_137 : f32 to vector<8x64xf32>
    %431 = arith.mulf %430, %429 : vector<8x64xf32>
    %432 = arith.mulf %419, %431 : vector<8x64xf32>
    %c0_138 = arith.constant 0 : index
    %c0_139 = arith.constant 0 : index
    %c0_140 = arith.constant 0 : index
    %433 = vector.load %arg14[%c0_138, %c0_139, %c0_140] : memref<2x64x32xf32, #tpu.memory_space<vmem>>, vector<1x64x32xf32>
    %434 = vector.shape_cast %433 : vector<1x64x32xf32> to vector<64x32xf32>
    %cst_141 = arith.constant dense<0.000000e+00> : vector<8x32xf32>
    %435 = tpu.matmul %432, %434, %cst_141 {dimension_numbers = #tpu.dot_dimension_numbers<[1], [0], [0], [1], [0, 0, 1, 1], [], []>} : vector<8x64xf32>, vector<64x32xf32>, vector<8x32xf32> -> vector<8x32xf32>
    %436 = vector.extract_strided_slice %174 {offsets = [9, 0], sizes = [1, 32], strides = [1, 1]} : vector<12x128xf32> to vector<1x32xf32>
    %437 = vector.broadcast %436 : vector<1x32xf32> to vector<8x32xf32>
    %438 = arith.addf %435, %437 : vector<8x32xf32>
    %439 = arith.addf %413, %438 : vector<8x32xf32>
    %440 = vector.extract_strided_slice %174 {offsets = [10, 0], sizes = [1, 32], strides = [1, 1]} : vector<12x128xf32> to vector<1x32xf32>
    %441 = vector.extract_strided_slice %174 {offsets = [11, 0], sizes = [1, 32], strides = [1, 1]} : vector<12x128xf32> to vector<1x32xf32>
    %cst_142 = arith.constant dense<0.000000e+00> : vector<8xf32>
    %442 = vector.multi_reduction <add>, %439, %cst_142 [1] : vector<8x32xf32> to vector<8xf32>
    %443 = vector.shape_cast %442 : vector<8xf32> to vector<8x1xf32>
    %cst_143 = arith.constant 3.200000e+01 : f32
    %444 = vector.broadcast %cst_143 : f32 to vector<8x1xf32>
    %445 = arith.divf %443, %444 : vector<8x1xf32>
    %446 = vector.broadcast %445 : vector<8x1xf32> to vector<8x32xf32>
    %447 = arith.subf %439, %446 : vector<8x32xf32>
    %448 = arith.mulf %447, %447 : vector<8x32xf32>
    %cst_144 = arith.constant dense<0.000000e+00> : vector<8xf32>
    %449 = vector.multi_reduction <add>, %448, %cst_144 [1] : vector<8x32xf32> to vector<8xf32>
    %450 = vector.shape_cast %449 : vector<8xf32> to vector<8x1xf32>
    %cst_145 = arith.constant 3.200000e+01 : f32
    %451 = vector.broadcast %cst_145 : f32 to vector<8x1xf32>
    %452 = arith.divf %450, %451 : vector<8x1xf32>
    %453 = vector.broadcast %445 : vector<8x1xf32> to vector<8x32xf32>
    %454 = arith.subf %439, %453 : vector<8x32xf32>
    %cst_146 = arith.constant 9.99999996E-13 : f32
    %455 = vector.broadcast %cst_146 : f32 to vector<8x1xf32>
    %456 = arith.addf %452, %455 : vector<8x1xf32>
    %457 = math.rsqrt %456 : vector<8x1xf32>
    %458 = vector.broadcast %457 : vector<8x1xf32> to vector<8x32xf32>
    %459 = arith.mulf %454, %458 : vector<8x32xf32>
    %460 = vector.broadcast %440 : vector<1x32xf32> to vector<8x32xf32>
    %461 = arith.mulf %459, %460 : vector<8x32xf32>
    %462 = vector.broadcast %441 : vector<1x32xf32> to vector<8x32xf32>
    %463 = arith.addf %461, %462 : vector<8x32xf32>
    %c1 = arith.constant 1 : index
    %c0_147 = arith.constant 0 : index
    %c0_148 = arith.constant 0 : index
    %464 = vector.load %arg15[%c1, %c0_147, %c0_148] : memref<2x12x128xf32, #tpu.memory_space<vmem>>, vector<1x12x128xf32>
    %465 = vector.shape_cast %464 : vector<1x12x128xf32> to vector<12x128xf32>
    %c1_149 = arith.constant 1 : index
    %c0_150 = arith.constant 0 : index
    %c0_151 = arith.constant 0 : index
    %466 = vector.load %arg9[%c1_149, %c0_150, %c0_151] : memref<2x32x96xf32, #tpu.memory_space<vmem>>, vector<1x32x96xf32>
    %467 = vector.shape_cast %466 : vector<1x32x96xf32> to vector<32x96xf32>
    %cst_152 = arith.constant dense<0.000000e+00> : vector<8x96xf32>
    %468 = tpu.matmul %463, %467, %cst_152 {dimension_numbers = #tpu.dot_dimension_numbers<[1], [0], [0], [1], [0, 0, 1, 1], [], []>} : vector<8x32xf32>, vector<32x96xf32>, vector<8x96xf32> -> vector<8x96xf32>
    %469 = vector.extract_strided_slice %465 {offsets = [0, 0], sizes = [1, 96], strides = [1, 1]} : vector<12x128xf32> to vector<1x96xf32>
    %470 = vector.broadcast %469 : vector<1x96xf32> to vector<8x96xf32>
    %471 = arith.addf %468, %470 : vector<8x96xf32>
    %472 = vector.extract_strided_slice %471 {offsets = [0, 0], sizes = [8, 32], strides = [1, 1]} : vector<8x96xf32> to vector<8x32xf32>
    %473 = vector.extract_strided_slice %471 {offsets = [0, 32], sizes = [8, 32], strides = [1, 1]} : vector<8x96xf32> to vector<8x32xf32>
    %474 = vector.extract_strided_slice %471 {offsets = [0, 64], sizes = [8, 32], strides = [1, 1]} : vector<8x96xf32> to vector<8x32xf32>
    %c1_153 = arith.constant 1 : index
    %c0_154 = arith.constant 0 : index
    %c0_155 = arith.constant 0 : index
    %475 = vector.load %arg10[%c1_153, %c0_154, %c0_155] : memref<2x32x32xf32, #tpu.memory_space<vmem>>, vector<1x32x32xf32>
    %476 = vector.shape_cast %475 : vector<1x32x32xf32> to vector<32x32xf32>
    %477 = vector.extract_strided_slice %465 {offsets = [1, 0], sizes = [1, 32], strides = [1, 1]} : vector<12x128xf32> to vector<1x32xf32>
    %478 = vector.extract_strided_slice %472 {offsets = [0, 0], sizes = [8, 8], strides = [1, 1]} : vector<8x32xf32> to vector<8x8xf32>
    %479 = vector.extract_strided_slice %473 {offsets = [0, 0], sizes = [8, 8], strides = [1, 1]} : vector<8x32xf32> to vector<8x8xf32>
    %cst_156 = arith.constant dense<0.000000e+00> : vector<8x8xf32>
    %480 = tpu.matmul %478, %479, %cst_156 {dimension_numbers = #tpu.dot_dimension_numbers<[1], [1], [0], [0], [0, 0, 1, 0], [], []>} : vector<8x8xf32>, vector<8x8xf32>, vector<8x8xf32> -> vector<8x8xf32>
    %cst_157 = arith.constant 0.353553385 : f32
    %481 = vector.broadcast %cst_157 : f32 to vector<8x8xf32>
    %482 = arith.mulf %480, %481 : vector<8x8xf32>
    %cst_158 = arith.constant 0.000000e+00 : f32
    %483 = vector.broadcast %cst_158 : f32 to vector<8x8xf32>
    %484 = arith.addf %482, %483 : vector<8x8xf32>
    %cst_159 = arith.constant dense<0xFF800000> : vector<8xf32>
    %485 = vector.multi_reduction <maximumf>, %484, %cst_159 [1] : vector<8x8xf32> to vector<8xf32>
    %486 = vector.shape_cast %485 : vector<8xf32> to vector<8x1xf32>
    %487 = vector.broadcast %486 : vector<8x1xf32> to vector<8x8xf32>
    %488 = arith.subf %484, %487 : vector<8x8xf32>
    %489 = math.exp %488 : vector<8x8xf32>
    %cst_160 = arith.constant dense<0.000000e+00> : vector<8xf32>
    %490 = vector.multi_reduction <add>, %489, %cst_160 [1] : vector<8x8xf32> to vector<8xf32>
    %491 = vector.shape_cast %490 : vector<8xf32> to vector<8x1xf32>
    %492 = tpu.reciprocal %491 {approx = true} : vector<8x1xf32> -> vector<8x1xf32>
    %493 = vector.broadcast %492 : vector<8x1xf32> to vector<8x8xf32>
    %494 = arith.mulf %489, %493 : vector<8x8xf32>
    %495 = vector.extract_strided_slice %474 {offsets = [0, 0], sizes = [8, 8], strides = [1, 1]} : vector<8x32xf32> to vector<8x8xf32>
    %cst_161 = arith.constant dense<0.000000e+00> : vector<8x8xf32>
    %496 = tpu.matmul %494, %495, %cst_161 {dimension_numbers = #tpu.dot_dimension_numbers<[1], [0], [0], [1], [0, 0, 1, 1], [], []>} : vector<8x8xf32>, vector<8x8xf32>, vector<8x8xf32> -> vector<8x8xf32>
    %497 = vector.extract_strided_slice %472 {offsets = [0, 8], sizes = [8, 8], strides = [1, 1]} : vector<8x32xf32> to vector<8x8xf32>
    %498 = vector.extract_strided_slice %473 {offsets = [0, 8], sizes = [8, 8], strides = [1, 1]} : vector<8x32xf32> to vector<8x8xf32>
    %cst_162 = arith.constant dense<0.000000e+00> : vector<8x8xf32>
    %499 = tpu.matmul %497, %498, %cst_162 {dimension_numbers = #tpu.dot_dimension_numbers<[1], [1], [0], [0], [0, 0, 1, 0], [], []>} : vector<8x8xf32>, vector<8x8xf32>, vector<8x8xf32> -> vector<8x8xf32>
    %cst_163 = arith.constant 0.353553385 : f32
    %500 = vector.broadcast %cst_163 : f32 to vector<8x8xf32>
    %501 = arith.mulf %499, %500 : vector<8x8xf32>
    %cst_164 = arith.constant 0.000000e+00 : f32
    %502 = vector.broadcast %cst_164 : f32 to vector<8x8xf32>
    %503 = arith.addf %501, %502 : vector<8x8xf32>
    %cst_165 = arith.constant dense<0xFF800000> : vector<8xf32>
    %504 = vector.multi_reduction <maximumf>, %503, %cst_165 [1] : vector<8x8xf32> to vector<8xf32>
    %505 = vector.shape_cast %504 : vector<8xf32> to vector<8x1xf32>
    %506 = vector.broadcast %505 : vector<8x1xf32> to vector<8x8xf32>
    %507 = arith.subf %503, %506 : vector<8x8xf32>
    %508 = math.exp %507 : vector<8x8xf32>
    %cst_166 = arith.constant dense<0.000000e+00> : vector<8xf32>
    %509 = vector.multi_reduction <add>, %508, %cst_166 [1] : vector<8x8xf32> to vector<8xf32>
    %510 = vector.shape_cast %509 : vector<8xf32> to vector<8x1xf32>
    %511 = tpu.reciprocal %510 {approx = true} : vector<8x1xf32> -> vector<8x1xf32>
    %512 = vector.broadcast %511 : vector<8x1xf32> to vector<8x8xf32>
    %513 = arith.mulf %508, %512 : vector<8x8xf32>
    %514 = vector.extract_strided_slice %474 {offsets = [0, 8], sizes = [8, 8], strides = [1, 1]} : vector<8x32xf32> to vector<8x8xf32>
    %cst_167 = arith.constant dense<0.000000e+00> : vector<8x8xf32>
    %515 = tpu.matmul %513, %514, %cst_167 {dimension_numbers = #tpu.dot_dimension_numbers<[1], [0], [0], [1], [0, 0, 1, 1], [], []>} : vector<8x8xf32>, vector<8x8xf32>, vector<8x8xf32> -> vector<8x8xf32>
    %516 = vector.extract_strided_slice %472 {offsets = [0, 16], sizes = [8, 8], strides = [1, 1]} : vector<8x32xf32> to vector<8x8xf32>
    %517 = vector.extract_strided_slice %473 {offsets = [0, 16], sizes = [8, 8], strides = [1, 1]} : vector<8x32xf32> to vector<8x8xf32>
    %cst_168 = arith.constant dense<0.000000e+00> : vector<8x8xf32>
    %518 = tpu.matmul %516, %517, %cst_168 {dimension_numbers = #tpu.dot_dimension_numbers<[1], [1], [0], [0], [0, 0, 1, 0], [], []>} : vector<8x8xf32>, vector<8x8xf32>, vector<8x8xf32> -> vector<8x8xf32>
    %cst_169 = arith.constant 0.353553385 : f32
    %519 = vector.broadcast %cst_169 : f32 to vector<8x8xf32>
    %520 = arith.mulf %518, %519 : vector<8x8xf32>
    %cst_170 = arith.constant 0.000000e+00 : f32
    %521 = vector.broadcast %cst_170 : f32 to vector<8x8xf32>
    %522 = arith.addf %520, %521 : vector<8x8xf32>
    %cst_171 = arith.constant dense<0xFF800000> : vector<8xf32>
    %523 = vector.multi_reduction <maximumf>, %522, %cst_171 [1] : vector<8x8xf32> to vector<8xf32>
    %524 = vector.shape_cast %523 : vector<8xf32> to vector<8x1xf32>
    %525 = vector.broadcast %524 : vector<8x1xf32> to vector<8x8xf32>
    %526 = arith.subf %522, %525 : vector<8x8xf32>
    %527 = math.exp %526 : vector<8x8xf32>
    %cst_172 = arith.constant dense<0.000000e+00> : vector<8xf32>
    %528 = vector.multi_reduction <add>, %527, %cst_172 [1] : vector<8x8xf32> to vector<8xf32>
    %529 = vector.shape_cast %528 : vector<8xf32> to vector<8x1xf32>
    %530 = tpu.reciprocal %529 {approx = true} : vector<8x1xf32> -> vector<8x1xf32>
    %531 = vector.broadcast %530 : vector<8x1xf32> to vector<8x8xf32>
    %532 = arith.mulf %527, %531 : vector<8x8xf32>
    %533 = vector.extract_strided_slice %474 {offsets = [0, 16], sizes = [8, 8], strides = [1, 1]} : vector<8x32xf32> to vector<8x8xf32>
    %cst_173 = arith.constant dense<0.000000e+00> : vector<8x8xf32>
    %534 = tpu.matmul %532, %533, %cst_173 {dimension_numbers = #tpu.dot_dimension_numbers<[1], [0], [0], [1], [0, 0, 1, 1], [], []>} : vector<8x8xf32>, vector<8x8xf32>, vector<8x8xf32> -> vector<8x8xf32>
    %535 = vector.extract_strided_slice %472 {offsets = [0, 24], sizes = [8, 8], strides = [1, 1]} : vector<8x32xf32> to vector<8x8xf32>
    %536 = vector.extract_strided_slice %473 {offsets = [0, 24], sizes = [8, 8], strides = [1, 1]} : vector<8x32xf32> to vector<8x8xf32>
    %cst_174 = arith.constant dense<0.000000e+00> : vector<8x8xf32>
    %537 = tpu.matmul %535, %536, %cst_174 {dimension_numbers = #tpu.dot_dimension_numbers<[1], [1], [0], [0], [0, 0, 1, 0], [], []>} : vector<8x8xf32>, vector<8x8xf32>, vector<8x8xf32> -> vector<8x8xf32>
    %cst_175 = arith.constant 0.353553385 : f32
    %538 = vector.broadcast %cst_175 : f32 to vector<8x8xf32>
    %539 = arith.mulf %537, %538 : vector<8x8xf32>
    %cst_176 = arith.constant 0.000000e+00 : f32
    %540 = vector.broadcast %cst_176 : f32 to vector<8x8xf32>
    %541 = arith.addf %539, %540 : vector<8x8xf32>
    %cst_177 = arith.constant dense<0xFF800000> : vector<8xf32>
    %542 = vector.multi_reduction <maximumf>, %541, %cst_177 [1] : vector<8x8xf32> to vector<8xf32>
    %543 = vector.shape_cast %542 : vector<8xf32> to vector<8x1xf32>
    %544 = vector.broadcast %543 : vector<8x1xf32> to vector<8x8xf32>
    %545 = arith.subf %541, %544 : vector<8x8xf32>
    %546 = math.exp %545 : vector<8x8xf32>
    %cst_178 = arith.constant dense<0.000000e+00> : vector<8xf32>
    %547 = vector.multi_reduction <add>, %546, %cst_178 [1] : vector<8x8xf32> to vector<8xf32>
    %548 = vector.shape_cast %547 : vector<8xf32> to vector<8x1xf32>
    %549 = tpu.reciprocal %548 {approx = true} : vector<8x1xf32> -> vector<8x1xf32>
    %550 = vector.broadcast %549 : vector<8x1xf32> to vector<8x8xf32>
    %551 = arith.mulf %546, %550 : vector<8x8xf32>
    %552 = vector.extract_strided_slice %474 {offsets = [0, 24], sizes = [8, 8], strides = [1, 1]} : vector<8x32xf32> to vector<8x8xf32>
    %cst_179 = arith.constant dense<0.000000e+00> : vector<8x8xf32>
    %553 = tpu.matmul %551, %552, %cst_179 {dimension_numbers = #tpu.dot_dimension_numbers<[1], [0], [0], [1], [0, 0, 1, 1], [], []>} : vector<8x8xf32>, vector<8x8xf32>, vector<8x8xf32> -> vector<8x8xf32>
    %554 = tpu.concatenate %496, %515, %534, %553 in 1 : vector<8x8xf32>, vector<8x8xf32>, vector<8x8xf32>, vector<8x8xf32> -> vector<8x32xf32>
    %cst_180 = arith.constant dense<0.000000e+00> : vector<8x32xf32>
    %555 = tpu.matmul %554, %476, %cst_180 {dimension_numbers = #tpu.dot_dimension_numbers<[1], [0], [0], [1], [0, 0, 1, 1], [], []>} : vector<8x32xf32>, vector<32x32xf32>, vector<8x32xf32> -> vector<8x32xf32>
    %556 = vector.broadcast %477 : vector<1x32xf32> to vector<8x32xf32>
    %557 = arith.addf %555, %556 : vector<8x32xf32>
    %558 = arith.addf %463, %557 : vector<8x32xf32>
    %559 = vector.extract_strided_slice %465 {offsets = [2, 0], sizes = [1, 32], strides = [1, 1]} : vector<12x128xf32> to vector<1x32xf32>
    %560 = vector.extract_strided_slice %465 {offsets = [3, 0], sizes = [1, 32], strides = [1, 1]} : vector<12x128xf32> to vector<1x32xf32>
    %cst_181 = arith.constant dense<0.000000e+00> : vector<8xf32>
    %561 = vector.multi_reduction <add>, %558, %cst_181 [1] : vector<8x32xf32> to vector<8xf32>
    %562 = vector.shape_cast %561 : vector<8xf32> to vector<8x1xf32>
    %cst_182 = arith.constant 3.200000e+01 : f32
    %563 = vector.broadcast %cst_182 : f32 to vector<8x1xf32>
    %564 = arith.divf %562, %563 : vector<8x1xf32>
    %565 = vector.broadcast %564 : vector<8x1xf32> to vector<8x32xf32>
    %566 = arith.subf %558, %565 : vector<8x32xf32>
    %567 = arith.mulf %566, %566 : vector<8x32xf32>
    %cst_183 = arith.constant dense<0.000000e+00> : vector<8xf32>
    %568 = vector.multi_reduction <add>, %567, %cst_183 [1] : vector<8x32xf32> to vector<8xf32>
    %569 = vector.shape_cast %568 : vector<8xf32> to vector<8x1xf32>
    %cst_184 = arith.constant 3.200000e+01 : f32
    %570 = vector.broadcast %cst_184 : f32 to vector<8x1xf32>
    %571 = arith.divf %569, %570 : vector<8x1xf32>
    %572 = vector.broadcast %564 : vector<8x1xf32> to vector<8x32xf32>
    %573 = arith.subf %558, %572 : vector<8x32xf32>
    %cst_185 = arith.constant 9.99999996E-13 : f32
    %574 = vector.broadcast %cst_185 : f32 to vector<8x1xf32>
    %575 = arith.addf %571, %574 : vector<8x1xf32>
    %576 = math.rsqrt %575 : vector<8x1xf32>
    %577 = vector.broadcast %576 : vector<8x1xf32> to vector<8x32xf32>
    %578 = arith.mulf %573, %577 : vector<8x32xf32>
    %579 = vector.broadcast %559 : vector<1x32xf32> to vector<8x32xf32>
    %580 = arith.mulf %578, %579 : vector<8x32xf32>
    %581 = vector.broadcast %560 : vector<1x32xf32> to vector<8x32xf32>
    %582 = arith.addf %580, %581 : vector<8x32xf32>
    %c1_186 = arith.constant 1 : index
    %c0_187 = arith.constant 0 : index
    %c0_188 = arith.constant 0 : index
    %583 = vector.load %arg11[%c1_186, %c0_187, %c0_188] : memref<2x32x96xf32, #tpu.memory_space<vmem>>, vector<1x32x96xf32>
    %584 = vector.shape_cast %583 : vector<1x32x96xf32> to vector<32x96xf32>
    %585 = vector.extract_strided_slice %584 {offsets = [0, 0], sizes = [32, 32], strides = [1, 1]} : vector<32x96xf32> to vector<32x32xf32>
    %cst_189 = arith.constant dense<0.000000e+00> : vector<8x32xf32>
    %586 = tpu.matmul %582, %585, %cst_189 {dimension_numbers = #tpu.dot_dimension_numbers<[1], [0], [0], [1], [0, 0, 1, 1], [], []>} : vector<8x32xf32>, vector<32x32xf32>, vector<8x32xf32> -> vector<8x32xf32>
    %587 = vector.extract_strided_slice %465 {offsets = [4, 0], sizes = [1, 32], strides = [1, 1]} : vector<12x128xf32> to vector<1x32xf32>
    %588 = vector.broadcast %587 : vector<1x32xf32> to vector<8x32xf32>
    %589 = arith.addf %586, %588 : vector<8x32xf32>
    %590 = vector.extract_strided_slice %584 {offsets = [0, 32], sizes = [32, 64], strides = [1, 1]} : vector<32x96xf32> to vector<32x64xf32>
    %cst_190 = arith.constant dense<0.000000e+00> : vector<16x64xf32>
    %591 = tpu.matmul %171, %590, %cst_190 {dimension_numbers = #tpu.dot_dimension_numbers<[1], [0], [0], [1], [0, 0, 1, 1], [], []>} : vector<16x32xf32>, vector<32x64xf32>, vector<16x64xf32> -> vector<16x64xf32>
    %592 = vector.extract_strided_slice %465 {offsets = [4, 32], sizes = [1, 64], strides = [1, 1]} : vector<12x128xf32> to vector<1x64xf32>
    %593 = vector.broadcast %592 : vector<1x64xf32> to vector<16x64xf32>
    %594 = arith.addf %591, %593 : vector<16x64xf32>
    %595 = vector.extract_strided_slice %594 {offsets = [0, 0], sizes = [16, 32], strides = [1, 1]} : vector<16x64xf32> to vector<16x32xf32>
    %596 = vector.extract_strided_slice %594 {offsets = [0, 32], sizes = [16, 32], strides = [1, 1]} : vector<16x64xf32> to vector<16x32xf32>
    %c1_191 = arith.constant 1 : index
    %c0_192 = arith.constant 0 : index
    %c0_193 = arith.constant 0 : index
    %597 = vector.load %arg12[%c1_191, %c0_192, %c0_193] : memref<2x32x32xf32, #tpu.memory_space<vmem>>, vector<1x32x32xf32>
    %598 = vector.shape_cast %597 : vector<1x32x32xf32> to vector<32x32xf32>
    %599 = vector.extract_strided_slice %465 {offsets = [5, 0], sizes = [1, 32], strides = [1, 1]} : vector<12x128xf32> to vector<1x32xf32>
    %600 = vector.extract_strided_slice %589 {offsets = [0, 0], sizes = [8, 8], strides = [1, 1]} : vector<8x32xf32> to vector<8x8xf32>
    %601 = vector.extract_strided_slice %595 {offsets = [0, 0], sizes = [16, 8], strides = [1, 1]} : vector<16x32xf32> to vector<16x8xf32>
    %cst_194 = arith.constant dense<0.000000e+00> : vector<8x16xf32>
    %602 = tpu.matmul %600, %601, %cst_194 {dimension_numbers = #tpu.dot_dimension_numbers<[1], [1], [0], [0], [0, 0, 1, 0], [], []>} : vector<8x8xf32>, vector<16x8xf32>, vector<8x16xf32> -> vector<8x16xf32>
    %cst_195 = arith.constant 0.353553385 : f32
    %603 = vector.broadcast %cst_195 : f32 to vector<8x16xf32>
    %604 = arith.mulf %602, %603 : vector<8x16xf32>
    %605 = vector.broadcast %7 : vector<1x16xf32> to vector<8x16xf32>
    %606 = arith.addf %604, %605 : vector<8x16xf32>
    %cst_196 = arith.constant dense<0xFF800000> : vector<8xf32>
    %607 = vector.multi_reduction <maximumf>, %606, %cst_196 [1] : vector<8x16xf32> to vector<8xf32>
    %608 = vector.shape_cast %607 : vector<8xf32> to vector<8x1xf32>
    %609 = vector.broadcast %608 : vector<8x1xf32> to vector<8x16xf32>
    %610 = arith.subf %606, %609 : vector<8x16xf32>
    %611 = math.exp %610 : vector<8x16xf32>
    %cst_197 = arith.constant dense<0.000000e+00> : vector<8xf32>
    %612 = vector.multi_reduction <add>, %611, %cst_197 [1] : vector<8x16xf32> to vector<8xf32>
    %613 = vector.shape_cast %612 : vector<8xf32> to vector<8x1xf32>
    %614 = tpu.reciprocal %613 {approx = true} : vector<8x1xf32> -> vector<8x1xf32>
    %615 = vector.broadcast %614 : vector<8x1xf32> to vector<8x16xf32>
    %616 = arith.mulf %611, %615 : vector<8x16xf32>
    %617 = vector.extract_strided_slice %596 {offsets = [0, 0], sizes = [16, 8], strides = [1, 1]} : vector<16x32xf32> to vector<16x8xf32>
    %cst_198 = arith.constant dense<0.000000e+00> : vector<8x8xf32>
    %618 = tpu.matmul %616, %617, %cst_198 {dimension_numbers = #tpu.dot_dimension_numbers<[1], [0], [0], [1], [0, 0, 1, 1], [], []>} : vector<8x16xf32>, vector<16x8xf32>, vector<8x8xf32> -> vector<8x8xf32>
    %619 = vector.extract_strided_slice %589 {offsets = [0, 8], sizes = [8, 8], strides = [1, 1]} : vector<8x32xf32> to vector<8x8xf32>
    %620 = vector.extract_strided_slice %595 {offsets = [0, 8], sizes = [16, 8], strides = [1, 1]} : vector<16x32xf32> to vector<16x8xf32>
    %cst_199 = arith.constant dense<0.000000e+00> : vector<8x16xf32>
    %621 = tpu.matmul %619, %620, %cst_199 {dimension_numbers = #tpu.dot_dimension_numbers<[1], [1], [0], [0], [0, 0, 1, 0], [], []>} : vector<8x8xf32>, vector<16x8xf32>, vector<8x16xf32> -> vector<8x16xf32>
    %cst_200 = arith.constant 0.353553385 : f32
    %622 = vector.broadcast %cst_200 : f32 to vector<8x16xf32>
    %623 = arith.mulf %621, %622 : vector<8x16xf32>
    %624 = vector.broadcast %7 : vector<1x16xf32> to vector<8x16xf32>
    %625 = arith.addf %623, %624 : vector<8x16xf32>
    %cst_201 = arith.constant dense<0xFF800000> : vector<8xf32>
    %626 = vector.multi_reduction <maximumf>, %625, %cst_201 [1] : vector<8x16xf32> to vector<8xf32>
    %627 = vector.shape_cast %626 : vector<8xf32> to vector<8x1xf32>
    %628 = vector.broadcast %627 : vector<8x1xf32> to vector<8x16xf32>
    %629 = arith.subf %625, %628 : vector<8x16xf32>
    %630 = math.exp %629 : vector<8x16xf32>
    %cst_202 = arith.constant dense<0.000000e+00> : vector<8xf32>
    %631 = vector.multi_reduction <add>, %630, %cst_202 [1] : vector<8x16xf32> to vector<8xf32>
    %632 = vector.shape_cast %631 : vector<8xf32> to vector<8x1xf32>
    %633 = tpu.reciprocal %632 {approx = true} : vector<8x1xf32> -> vector<8x1xf32>
    %634 = vector.broadcast %633 : vector<8x1xf32> to vector<8x16xf32>
    %635 = arith.mulf %630, %634 : vector<8x16xf32>
    %636 = vector.extract_strided_slice %596 {offsets = [0, 8], sizes = [16, 8], strides = [1, 1]} : vector<16x32xf32> to vector<16x8xf32>
    %cst_203 = arith.constant dense<0.000000e+00> : vector<8x8xf32>
    %637 = tpu.matmul %635, %636, %cst_203 {dimension_numbers = #tpu.dot_dimension_numbers<[1], [0], [0], [1], [0, 0, 1, 1], [], []>} : vector<8x16xf32>, vector<16x8xf32>, vector<8x8xf32> -> vector<8x8xf32>
    %638 = vector.extract_strided_slice %589 {offsets = [0, 16], sizes = [8, 8], strides = [1, 1]} : vector<8x32xf32> to vector<8x8xf32>
    %639 = vector.extract_strided_slice %595 {offsets = [0, 16], sizes = [16, 8], strides = [1, 1]} : vector<16x32xf32> to vector<16x8xf32>
    %cst_204 = arith.constant dense<0.000000e+00> : vector<8x16xf32>
    %640 = tpu.matmul %638, %639, %cst_204 {dimension_numbers = #tpu.dot_dimension_numbers<[1], [1], [0], [0], [0, 0, 1, 0], [], []>} : vector<8x8xf32>, vector<16x8xf32>, vector<8x16xf32> -> vector<8x16xf32>
    %cst_205 = arith.constant 0.353553385 : f32
    %641 = vector.broadcast %cst_205 : f32 to vector<8x16xf32>
    %642 = arith.mulf %640, %641 : vector<8x16xf32>
    %643 = vector.broadcast %7 : vector<1x16xf32> to vector<8x16xf32>
    %644 = arith.addf %642, %643 : vector<8x16xf32>
    %cst_206 = arith.constant dense<0xFF800000> : vector<8xf32>
    %645 = vector.multi_reduction <maximumf>, %644, %cst_206 [1] : vector<8x16xf32> to vector<8xf32>
    %646 = vector.shape_cast %645 : vector<8xf32> to vector<8x1xf32>
    %647 = vector.broadcast %646 : vector<8x1xf32> to vector<8x16xf32>
    %648 = arith.subf %644, %647 : vector<8x16xf32>
    %649 = math.exp %648 : vector<8x16xf32>
    %cst_207 = arith.constant dense<0.000000e+00> : vector<8xf32>
    %650 = vector.multi_reduction <add>, %649, %cst_207 [1] : vector<8x16xf32> to vector<8xf32>
    %651 = vector.shape_cast %650 : vector<8xf32> to vector<8x1xf32>
    %652 = tpu.reciprocal %651 {approx = true} : vector<8x1xf32> -> vector<8x1xf32>
    %653 = vector.broadcast %652 : vector<8x1xf32> to vector<8x16xf32>
    %654 = arith.mulf %649, %653 : vector<8x16xf32>
    %655 = vector.extract_strided_slice %596 {offsets = [0, 16], sizes = [16, 8], strides = [1, 1]} : vector<16x32xf32> to vector<16x8xf32>
    %cst_208 = arith.constant dense<0.000000e+00> : vector<8x8xf32>
    %656 = tpu.matmul %654, %655, %cst_208 {dimension_numbers = #tpu.dot_dimension_numbers<[1], [0], [0], [1], [0, 0, 1, 1], [], []>} : vector<8x16xf32>, vector<16x8xf32>, vector<8x8xf32> -> vector<8x8xf32>
    %657 = vector.extract_strided_slice %589 {offsets = [0, 24], sizes = [8, 8], strides = [1, 1]} : vector<8x32xf32> to vector<8x8xf32>
    %658 = vector.extract_strided_slice %595 {offsets = [0, 24], sizes = [16, 8], strides = [1, 1]} : vector<16x32xf32> to vector<16x8xf32>
    %cst_209 = arith.constant dense<0.000000e+00> : vector<8x16xf32>
    %659 = tpu.matmul %657, %658, %cst_209 {dimension_numbers = #tpu.dot_dimension_numbers<[1], [1], [0], [0], [0, 0, 1, 0], [], []>} : vector<8x8xf32>, vector<16x8xf32>, vector<8x16xf32> -> vector<8x16xf32>
    %cst_210 = arith.constant 0.353553385 : f32
    %660 = vector.broadcast %cst_210 : f32 to vector<8x16xf32>
    %661 = arith.mulf %659, %660 : vector<8x16xf32>
    %662 = vector.broadcast %7 : vector<1x16xf32> to vector<8x16xf32>
    %663 = arith.addf %661, %662 : vector<8x16xf32>
    %cst_211 = arith.constant dense<0xFF800000> : vector<8xf32>
    %664 = vector.multi_reduction <maximumf>, %663, %cst_211 [1] : vector<8x16xf32> to vector<8xf32>
    %665 = vector.shape_cast %664 : vector<8xf32> to vector<8x1xf32>
    %666 = vector.broadcast %665 : vector<8x1xf32> to vector<8x16xf32>
    %667 = arith.subf %663, %666 : vector<8x16xf32>
    %668 = math.exp %667 : vector<8x16xf32>
    %cst_212 = arith.constant dense<0.000000e+00> : vector<8xf32>
    %669 = vector.multi_reduction <add>, %668, %cst_212 [1] : vector<8x16xf32> to vector<8xf32>
    %670 = vector.shape_cast %669 : vector<8xf32> to vector<8x1xf32>
    %671 = tpu.reciprocal %670 {approx = true} : vector<8x1xf32> -> vector<8x1xf32>
    %672 = vector.broadcast %671 : vector<8x1xf32> to vector<8x16xf32>
    %673 = arith.mulf %668, %672 : vector<8x16xf32>
    %674 = vector.extract_strided_slice %596 {offsets = [0, 24], sizes = [16, 8], strides = [1, 1]} : vector<16x32xf32> to vector<16x8xf32>
    %cst_213 = arith.constant dense<0.000000e+00> : vector<8x8xf32>
    %675 = tpu.matmul %673, %674, %cst_213 {dimension_numbers = #tpu.dot_dimension_numbers<[1], [0], [0], [1], [0, 0, 1, 1], [], []>} : vector<8x16xf32>, vector<16x8xf32>, vector<8x8xf32> -> vector<8x8xf32>
    %676 = tpu.concatenate %618, %637, %656, %675 in 1 : vector<8x8xf32>, vector<8x8xf32>, vector<8x8xf32>, vector<8x8xf32> -> vector<8x32xf32>
    %cst_214 = arith.constant dense<0.000000e+00> : vector<8x32xf32>
    %677 = tpu.matmul %676, %598, %cst_214 {dimension_numbers = #tpu.dot_dimension_numbers<[1], [0], [0], [1], [0, 0, 1, 1], [], []>} : vector<8x32xf32>, vector<32x32xf32>, vector<8x32xf32> -> vector<8x32xf32>
    %678 = vector.broadcast %599 : vector<1x32xf32> to vector<8x32xf32>
    %679 = arith.addf %677, %678 : vector<8x32xf32>
    %680 = arith.addf %582, %679 : vector<8x32xf32>
    %681 = vector.extract_strided_slice %465 {offsets = [6, 0], sizes = [1, 32], strides = [1, 1]} : vector<12x128xf32> to vector<1x32xf32>
    %682 = vector.extract_strided_slice %465 {offsets = [7, 0], sizes = [1, 32], strides = [1, 1]} : vector<12x128xf32> to vector<1x32xf32>
    %cst_215 = arith.constant dense<0.000000e+00> : vector<8xf32>
    %683 = vector.multi_reduction <add>, %680, %cst_215 [1] : vector<8x32xf32> to vector<8xf32>
    %684 = vector.shape_cast %683 : vector<8xf32> to vector<8x1xf32>
    %cst_216 = arith.constant 3.200000e+01 : f32
    %685 = vector.broadcast %cst_216 : f32 to vector<8x1xf32>
    %686 = arith.divf %684, %685 : vector<8x1xf32>
    %687 = vector.broadcast %686 : vector<8x1xf32> to vector<8x32xf32>
    %688 = arith.subf %680, %687 : vector<8x32xf32>
    %689 = arith.mulf %688, %688 : vector<8x32xf32>
    %cst_217 = arith.constant dense<0.000000e+00> : vector<8xf32>
    %690 = vector.multi_reduction <add>, %689, %cst_217 [1] : vector<8x32xf32> to vector<8xf32>
    %691 = vector.shape_cast %690 : vector<8xf32> to vector<8x1xf32>
    %cst_218 = arith.constant 3.200000e+01 : f32
    %692 = vector.broadcast %cst_218 : f32 to vector<8x1xf32>
    %693 = arith.divf %691, %692 : vector<8x1xf32>
    %694 = vector.broadcast %686 : vector<8x1xf32> to vector<8x32xf32>
    %695 = arith.subf %680, %694 : vector<8x32xf32>
    %cst_219 = arith.constant 9.99999996E-13 : f32
    %696 = vector.broadcast %cst_219 : f32 to vector<8x1xf32>
    %697 = arith.addf %693, %696 : vector<8x1xf32>
    %698 = math.rsqrt %697 : vector<8x1xf32>
    %699 = vector.broadcast %698 : vector<8x1xf32> to vector<8x32xf32>
    %700 = arith.mulf %695, %699 : vector<8x32xf32>
    %701 = vector.broadcast %681 : vector<1x32xf32> to vector<8x32xf32>
    %702 = arith.mulf %700, %701 : vector<8x32xf32>
    %703 = vector.broadcast %682 : vector<1x32xf32> to vector<8x32xf32>
    %704 = arith.addf %702, %703 : vector<8x32xf32>
    %c1_220 = arith.constant 1 : index
    %c0_221 = arith.constant 0 : index
    %c0_222 = arith.constant 0 : index
    %705 = vector.load %arg13[%c1_220, %c0_221, %c0_222] : memref<2x32x64xf32, #tpu.memory_space<vmem>>, vector<1x32x64xf32>
    %706 = vector.shape_cast %705 : vector<1x32x64xf32> to vector<32x64xf32>
    %cst_223 = arith.constant dense<0.000000e+00> : vector<8x64xf32>
    %707 = tpu.matmul %704, %706, %cst_223 {dimension_numbers = #tpu.dot_dimension_numbers<[1], [0], [0], [1], [0, 0, 1, 1], [], []>} : vector<8x32xf32>, vector<32x64xf32>, vector<8x64xf32> -> vector<8x64xf32>
    %708 = vector.extract_strided_slice %465 {offsets = [8, 0], sizes = [1, 64], strides = [1, 1]} : vector<12x128xf32> to vector<1x64xf32>
    %709 = vector.broadcast %708 : vector<1x64xf32> to vector<8x64xf32>
    %710 = arith.addf %707, %709 : vector<8x64xf32>
    %711 = arith.mulf %710, %710 : vector<8x64xf32>
    %712 = arith.mulf %710, %711 : vector<8x64xf32>
    %cst_224 = arith.constant 4.471500e-02 : f32
    %713 = vector.broadcast %cst_224 : f32 to vector<8x64xf32>
    %714 = arith.mulf %713, %712 : vector<8x64xf32>
    %715 = arith.addf %710, %714 : vector<8x64xf32>
    %cst_225 = arith.constant 0.797884583 : f32
    %716 = vector.broadcast %cst_225 : f32 to vector<8x64xf32>
    %717 = arith.mulf %716, %715 : vector<8x64xf32>
    %718 = math.tanh %717 : vector<8x64xf32>
    %cst_226 = arith.constant 1.000000e+00 : f32
    %719 = vector.broadcast %cst_226 : f32 to vector<8x64xf32>
    %720 = arith.addf %719, %718 : vector<8x64xf32>
    %cst_227 = arith.constant 5.000000e-01 : f32
    %721 = vector.broadcast %cst_227 : f32 to vector<8x64xf32>
    %722 = arith.mulf %721, %720 : vector<8x64xf32>
    %723 = arith.mulf %710, %722 : vector<8x64xf32>
    %c1_228 = arith.constant 1 : index
    %c0_229 = arith.constant 0 : index
    %c0_230 = arith.constant 0 : index
    %724 = vector.load %arg14[%c1_228, %c0_229, %c0_230] : memref<2x64x32xf32, #tpu.memory_space<vmem>>, vector<1x64x32xf32>
    %725 = vector.shape_cast %724 : vector<1x64x32xf32> to vector<64x32xf32>
    %cst_231 = arith.constant dense<0.000000e+00> : vector<8x32xf32>
    %726 = tpu.matmul %723, %725, %cst_231 {dimension_numbers = #tpu.dot_dimension_numbers<[1], [0], [0], [1], [0, 0, 1, 1], [], []>} : vector<8x64xf32>, vector<64x32xf32>, vector<8x32xf32> -> vector<8x32xf32>
    %727 = vector.extract_strided_slice %465 {offsets = [9, 0], sizes = [1, 32], strides = [1, 1]} : vector<12x128xf32> to vector<1x32xf32>
    %728 = vector.broadcast %727 : vector<1x32xf32> to vector<8x32xf32>
    %729 = arith.addf %726, %728 : vector<8x32xf32>
    %730 = arith.addf %704, %729 : vector<8x32xf32>
    %731 = vector.extract_strided_slice %465 {offsets = [10, 0], sizes = [1, 32], strides = [1, 1]} : vector<12x128xf32> to vector<1x32xf32>
    %732 = vector.extract_strided_slice %465 {offsets = [11, 0], sizes = [1, 32], strides = [1, 1]} : vector<12x128xf32> to vector<1x32xf32>
    %cst_232 = arith.constant dense<0.000000e+00> : vector<8xf32>
    %733 = vector.multi_reduction <add>, %730, %cst_232 [1] : vector<8x32xf32> to vector<8xf32>
    %734 = vector.shape_cast %733 : vector<8xf32> to vector<8x1xf32>
    %cst_233 = arith.constant 3.200000e+01 : f32
    %735 = vector.broadcast %cst_233 : f32 to vector<8x1xf32>
    %736 = arith.divf %734, %735 : vector<8x1xf32>
    %737 = vector.broadcast %736 : vector<8x1xf32> to vector<8x32xf32>
    %738 = arith.subf %730, %737 : vector<8x32xf32>
    %739 = arith.mulf %738, %738 : vector<8x32xf32>
    %cst_234 = arith.constant dense<0.000000e+00> : vector<8xf32>
    %740 = vector.multi_reduction <add>, %739, %cst_234 [1] : vector<8x32xf32> to vector<8xf32>
    %741 = vector.shape_cast %740 : vector<8xf32> to vector<8x1xf32>
    %cst_235 = arith.constant 3.200000e+01 : f32
    %742 = vector.broadcast %cst_235 : f32 to vector<8x1xf32>
    %743 = arith.divf %741, %742 : vector<8x1xf32>
    %744 = vector.broadcast %736 : vector<8x1xf32> to vector<8x32xf32>
    %745 = arith.subf %730, %744 : vector<8x32xf32>
    %cst_236 = arith.constant 9.99999996E-13 : f32
    %746 = vector.broadcast %cst_236 : f32 to vector<8x1xf32>
    %747 = arith.addf %743, %746 : vector<8x1xf32>
    %748 = math.rsqrt %747 : vector<8x1xf32>
    %749 = vector.broadcast %748 : vector<8x1xf32> to vector<8x32xf32>
    %750 = arith.mulf %745, %749 : vector<8x32xf32>
    %751 = vector.broadcast %731 : vector<1x32xf32> to vector<8x32xf32>
    %752 = arith.mulf %750, %751 : vector<8x32xf32>
    %753 = vector.broadcast %732 : vector<1x32xf32> to vector<8x32xf32>
    %754 = arith.addf %752, %753 : vector<8x32xf32>
    %c0_237 = arith.constant 0 : index
    %c0_238 = arith.constant 0 : index
    %755 = vector.load %arg18[%c0_237, %c0_238] : memref<3x160xf32, #tpu.memory_space<vmem>>, vector<3x160xf32>
    %c0_239 = arith.constant 0 : index
    %c0_240 = arith.constant 0 : index
    %756 = vector.load %arg16[%c0_239, %c0_240] : memref<32x160xf32, #tpu.memory_space<vmem>>, vector<32x160xf32>
    %cst_241 = arith.constant dense<0.000000e+00> : vector<8x160xf32>
    %757 = tpu.matmul %754, %756, %cst_241 {dimension_numbers = #tpu.dot_dimension_numbers<[1], [0], [0], [1], [0, 0, 1, 1], [], []>} : vector<8x32xf32>, vector<32x160xf32>, vector<8x160xf32> -> vector<8x160xf32>
    %758 = vector.extract_strided_slice %755 {offsets = [0, 0], sizes = [1, 160], strides = [1, 1]} : vector<3x160xf32> to vector<1x160xf32>
    %759 = vector.broadcast %758 : vector<1x160xf32> to vector<8x160xf32>
    %760 = arith.addf %757, %759 : vector<8x160xf32>
    %761 = vector.extract_strided_slice %760 {offsets = [0, 0], sizes = [8, 128], strides = [1, 1]} : vector<8x160xf32> to vector<8x128xf32>
    %762 = vector.extract_strided_slice %760 {offsets = [0, 128], sizes = [8, 5], strides = [1, 1]} : vector<8x160xf32> to vector<8x5xf32>
    %c0_242 = arith.constant 0 : index
    %c0_243 = arith.constant 0 : index
    %763 = vector.load %arg17[%c0_242, %c0_243] : memref<32x128xf32, #tpu.memory_space<vmem>>, vector<32x128xf32>
    %cst_244 = arith.constant dense<0.000000e+00> : vector<16x128xf32>
    %764 = tpu.matmul %171, %763, %cst_244 {dimension_numbers = #tpu.dot_dimension_numbers<[1], [0], [0], [1], [0, 0, 1, 1], [], []>} : vector<16x32xf32>, vector<32x128xf32>, vector<16x128xf32> -> vector<16x128xf32>
    %765 = vector.extract_strided_slice %755 {offsets = [1, 0], sizes = [1, 128], strides = [1, 1]} : vector<3x160xf32> to vector<1x128xf32>
    %766 = vector.broadcast %765 : vector<1x128xf32> to vector<16x128xf32>
    %767 = arith.addf %764, %766 : vector<16x128xf32>
    %768 = vector.extract_strided_slice %755 {offsets = [2, 0], sizes = [1, 128], strides = [1, 1]} : vector<3x160xf32> to vector<1x128xf32>
    %769 = vector.shape_cast %761 : vector<8x128xf32> to vector<8x1x128xf32>
    %770 = vector.shape_cast %767 : vector<16x128xf32> to vector<1x16x128xf32>
    %771 = vector.broadcast %769 : vector<8x1x128xf32> to vector<8x16x128xf32>
    %772 = vector.broadcast %770 : vector<1x16x128xf32> to vector<8x16x128xf32>
    %773 = arith.addf %771, %772 : vector<8x16x128xf32>
    %774 = math.tanh %773 : vector<8x16x128xf32>
    %775 = vector.shape_cast %768 : vector<1x128xf32> to vector<1x1x128xf32>
    %776 = vector.broadcast %775 : vector<1x1x128xf32> to vector<8x16x128xf32>
    %777 = arith.mulf %774, %776 : vector<8x16x128xf32>
    %778 = vector.extract_strided_slice %777 {offsets = [0, 0, 0], sizes = [8, 16, 32], strides = [1, 1, 1]} : vector<8x16x128xf32> to vector<8x16x32xf32>
    %cst_245 = arith.constant dense<0.000000e+00> : vector<8x16xf32>
    %779 = vector.multi_reduction <add>, %778, %cst_245 [2] : vector<8x16x32xf32> to vector<8x16xf32>
    %cst_246 = arith.constant 0.000000e+00 : f32
    %780 = vector.broadcast %cst_246 : f32 to vector<1x16xf32>
    %781 = arith.cmpf oeq, %3, %780 : vector<1x16xf32>
    %cst_247 = arith.constant -1.000000e+04 : f32
    %782 = vector.shape_cast %781 : vector<1x16xi1> to vector<1x16xi1>
    %783 = vector.broadcast %782 : vector<1x16xi1> to vector<8x16xi1>
    %784 = vector.broadcast %cst_247 : f32 to vector<8x16xf32>
    %785 = arith.select %783, %784, %779 : vector<8x16xi1>, vector<8x16xf32>
    %786 = vector.extract_strided_slice %777 {offsets = [0, 0, 32], sizes = [8, 16, 32], strides = [1, 1, 1]} : vector<8x16x128xf32> to vector<8x16x32xf32>
    %cst_248 = arith.constant dense<0.000000e+00> : vector<8x16xf32>
    %787 = vector.multi_reduction <add>, %786, %cst_248 [2] : vector<8x16x32xf32> to vector<8x16xf32>
    %cst_249 = arith.constant 0.000000e+00 : f32
    %788 = vector.broadcast %cst_249 : f32 to vector<1x16xf32>
    %789 = arith.cmpf oeq, %3, %788 : vector<1x16xf32>
    %cst_250 = arith.constant -1.000000e+04 : f32
    %790 = vector.shape_cast %789 : vector<1x16xi1> to vector<1x16xi1>
    %791 = vector.broadcast %790 : vector<1x16xi1> to vector<8x16xi1>
    %792 = vector.broadcast %cst_250 : f32 to vector<8x16xf32>
    %793 = arith.select %791, %792, %787 : vector<8x16xi1>, vector<8x16xf32>
    %794 = vector.extract_strided_slice %777 {offsets = [0, 0, 64], sizes = [8, 16, 32], strides = [1, 1, 1]} : vector<8x16x128xf32> to vector<8x16x32xf32>
    %cst_251 = arith.constant dense<0.000000e+00> : vector<8x16xf32>
    %795 = vector.multi_reduction <add>, %794, %cst_251 [2] : vector<8x16x32xf32> to vector<8x16xf32>
    %cst_252 = arith.constant 0.000000e+00 : f32
    %796 = vector.broadcast %cst_252 : f32 to vector<1x16xf32>
    %797 = arith.cmpf oeq, %3, %796 : vector<1x16xf32>
    %cst_253 = arith.constant -1.000000e+04 : f32
    %798 = vector.shape_cast %797 : vector<1x16xi1> to vector<1x16xi1>
    %799 = vector.broadcast %798 : vector<1x16xi1> to vector<8x16xi1>
    %800 = vector.broadcast %cst_253 : f32 to vector<8x16xf32>
    %801 = arith.select %799, %800, %795 : vector<8x16xi1>, vector<8x16xf32>
    %802 = vector.extract_strided_slice %777 {offsets = [0, 0, 96], sizes = [8, 16, 32], strides = [1, 1, 1]} : vector<8x16x128xf32> to vector<8x16x32xf32>
    %cst_254 = arith.constant dense<0.000000e+00> : vector<8x16xf32>
    %803 = vector.multi_reduction <add>, %802, %cst_254 [2] : vector<8x16x32xf32> to vector<8x16xf32>
    %cst_255 = arith.constant 0.000000e+00 : f32
    %804 = vector.broadcast %cst_255 : f32 to vector<1x16xf32>
    %805 = arith.cmpf oeq, %3, %804 : vector<1x16xf32>
    %cst_256 = arith.constant -1.000000e+04 : f32
    %806 = vector.shape_cast %805 : vector<1x16xi1> to vector<1x16xi1>
    %807 = vector.broadcast %806 : vector<1x16xi1> to vector<8x16xi1>
    %808 = vector.broadcast %cst_256 : f32 to vector<8x16xf32>
    %809 = arith.select %807, %808, %803 : vector<8x16xi1>, vector<8x16xf32>
    %cst_257 = arith.constant 0.000000e+00 : f32
    %810 = vector.broadcast %cst_257 : f32 to vector<8x27xf32>
    %811 = tpu.concatenate %785, %793, %801, %809, %762, %810, %754 in 1 : vector<8x16xf32>, vector<8x16xf32>, vector<8x16xf32>, vector<8x16xf32>, vector<8x5xf32>, vector<8x27xf32>, vector<8x32xf32> -> vector<8x128xf32>
    %c0_258 = arith.constant 0 : index
    %c0_259 = arith.constant 0 : index
    %c0_260 = arith.constant 0 : index
    %812 = vector.load %arg19[%c0_258, %c0_259, %c0_260] : memref<1x8x128xf32, #tpu.memory_space<vmem>>, vector<1x8x128xf32>
    %813 = vector.shape_cast %812 : vector<1x8x128xf32> to vector<8x128xf32>
    %814 = vector.shape_cast %811 : vector<8x128xf32> to vector<1x8x128xf32>
    tpu.vector_store %arg19[%c0_258, %c0_259, %c0_260], %814 {strides = array<i32>} : memref<1x8x128xf32, #tpu.memory_space<vmem>>, vector<1x8x128xf32>,
    return
  }
  func.func @transform_0(%arg0: i32) -> (i32, i32, i32) {
    %c0_i32 = arith.constant 0 : i32
    %c0_i32_0 = arith.constant 0 : i32
    %c0_i32_1 = arith.constant 0 : i32
    return %arg0, %c0_i32, %c0_i32_0 : i32, i32, i32
  }
  func.func @transform_1(%arg0: i32) -> (i32, i32, i32) {
    %c0_i32 = arith.constant 0 : i32
    %c0_i32_0 = arith.constant 0 : i32
    %c0_i32_1 = arith.constant 0 : i32
    return %arg0, %c0_i32, %c0_i32_0 : i32, i32, i32
  }
  func.func @transform_2(%arg0: i32) -> (i32, i32) {
    %c0_i32 = arith.constant 0 : i32
    %c0_i32_0 = arith.constant 0 : i32
    %c0_i32_1 = arith.constant 0 : i32
    return %c0_i32, %c0_i32_0 : i32, i32
  }
  func.func @transform_3(%arg0: i32) -> (i32, i32) {
    %c0_i32 = arith.constant 0 : i32
    %c0_i32_0 = arith.constant 0 : i32
    %c0_i32_1 = arith.constant 0 : i32
    return %c0_i32, %c0_i32_0 : i32, i32
  }
  func.func @transform_4(%arg0: i32) -> (i32, i32) {
    %c0_i32 = arith.constant 0 : i32
    %c0_i32_0 = arith.constant 0 : i32
    %c0_i32_1 = arith.constant 0 : i32
    return %c0_i32, %c0_i32_0 : i32, i32
  }
  func.func @transform_5(%arg0: i32) -> (i32, i32) {
    %c0_i32 = arith.constant 0 : i32
    %c0_i32_0 = arith.constant 0 : i32
    %c0_i32_1 = arith.constant 0 : i32
    return %c0_i32, %c0_i32_0 : i32, i32
  }
  func.func @transform_6(%arg0: i32) -> (i32, i32) {
    %c0_i32 = arith.constant 0 : i32
    %c0_i32_0 = arith.constant 0 : i32
    %c0_i32_1 = arith.constant 0 : i32
    return %c0_i32, %c0_i32_0 : i32, i32
  }
  func.func @transform_7(%arg0: i32) -> (i32, i32) {
    %c0_i32 = arith.constant 0 : i32
    %c0_i32_0 = arith.constant 0 : i32
    %c0_i32_1 = arith.constant 0 : i32
    return %c0_i32, %c0_i32_0 : i32, i32
  }
  func.func @transform_8(%arg0: i32) -> (i32, i32, i32) {
    %c0_i32 = arith.constant 0 : i32
    %c0_i32_0 = arith.constant 0 : i32
    %c0_i32_1 = arith.constant 0 : i32
    %c0_i32_2 = arith.constant 0 : i32
    return %c0_i32, %c0_i32_0, %c0_i32_1 : i32, i32, i32
  }
  func.func @transform_9(%arg0: i32) -> (i32, i32, i32) {
    %c0_i32 = arith.constant 0 : i32
    %c0_i32_0 = arith.constant 0 : i32
    %c0_i32_1 = arith.constant 0 : i32
    %c0_i32_2 = arith.constant 0 : i32
    return %c0_i32, %c0_i32_0, %c0_i32_1 : i32, i32, i32
  }
  func.func @transform_10(%arg0: i32) -> (i32, i32, i32) {
    %c0_i32 = arith.constant 0 : i32
    %c0_i32_0 = arith.constant 0 : i32
    %c0_i32_1 = arith.constant 0 : i32
    %c0_i32_2 = arith.constant 0 : i32
    return %c0_i32, %c0_i32_0, %c0_i32_1 : i32, i32, i32
  }
  func.func @transform_11(%arg0: i32) -> (i32, i32, i32) {
    %c0_i32 = arith.constant 0 : i32
    %c0_i32_0 = arith.constant 0 : i32
    %c0_i32_1 = arith.constant 0 : i32
    %c0_i32_2 = arith.constant 0 : i32
    return %c0_i32, %c0_i32_0, %c0_i32_1 : i32, i32, i32
  }
  func.func @transform_12(%arg0: i32) -> (i32, i32, i32) {
    %c0_i32 = arith.constant 0 : i32
    %c0_i32_0 = arith.constant 0 : i32
    %c0_i32_1 = arith.constant 0 : i32
    %c0_i32_2 = arith.constant 0 : i32
    return %c0_i32, %c0_i32_0, %c0_i32_1 : i32, i32, i32
  }
  func.func @transform_13(%arg0: i32) -> (i32, i32, i32) {
    %c0_i32 = arith.constant 0 : i32
    %c0_i32_0 = arith.constant 0 : i32
    %c0_i32_1 = arith.constant 0 : i32
    %c0_i32_2 = arith.constant 0 : i32
    return %c0_i32, %c0_i32_0, %c0_i32_1 : i32, i32, i32
  }
  func.func @transform_14(%arg0: i32) -> (i32, i32, i32) {
    %c0_i32 = arith.constant 0 : i32
    %c0_i32_0 = arith.constant 0 : i32
    %c0_i32_1 = arith.constant 0 : i32
    %c0_i32_2 = arith.constant 0 : i32
    return %c0_i32, %c0_i32_0, %c0_i32_1 : i32, i32, i32
  }
  func.func @transform_15(%arg0: i32) -> (i32, i32) {
    %c0_i32 = arith.constant 0 : i32
    %c0_i32_0 = arith.constant 0 : i32
    %c0_i32_1 = arith.constant 0 : i32
    return %c0_i32, %c0_i32_0 : i32, i32
  }
  func.func @transform_16(%arg0: i32) -> (i32, i32) {
    %c0_i32 = arith.constant 0 : i32
    %c0_i32_0 = arith.constant 0 : i32
    %c0_i32_1 = arith.constant 0 : i32
    return %c0_i32, %c0_i32_0 : i32, i32
  }
  func.func @transform_17(%arg0: i32) -> (i32, i32) {
    %c0_i32 = arith.constant 0 : i32
    %c0_i32_0 = arith.constant 0 : i32
    %c0_i32_1 = arith.constant 0 : i32
    return %c0_i32, %c0_i32_0 : i32, i32
  }
  func.func @transform_18(%arg0: i32) -> (i32, i32, i32) {
    %c0_i32 = arith.constant 0 : i32
    %c0_i32_0 = arith.constant 0 : i32
    %c0_i32_1 = arith.constant 0 : i32
    return %arg0, %c0_i32, %c0_i32_0 : i32, i32, i32
  }
}

</mosaic_0001>

<bundles_post_ra>
// kernel: setpred4re_absa_forward.1
= control target key start
LH: loop header
LB: loop body
LE: loop exit
PB: predicated region body
PF: predicated region fallthrough
CT: control target
= control target key end

     0   :  { %s10469_s0 = inlined_call_operand.vmem [shape: f32[2,16,32], index: 0, kind: input, shape index: {}]   ;;  %s10470_s1 = inlined_call_operand.vmem [shape: f32[2,1,16], index: 1, kind: input, shape index: {}]   ;;  %s10471_s2 = inlined_call_operand.hbm [shape: f32[8,32], index: 2, kind: input, shape index: {}]   ;;  %s10472_s3 = inlined_call_operand.vmem [shape: f32[32,96], index: 3, kind: input, shape index: {}]   ;;  %s10473_s4 = inlined_call_operand.vmem [shape: f32[32,32], index: 4, kind: input, shape index: {}]   ;;  %s10474_s5 = inlined_call_operand.hbm [shape: f32[32,64], index: 5, kind: input, shape index: {}]   ;;  %s10475_s6 = inlined_call_operand.vmem [shape: f32[64,32], index: 6, kind: input, shape index: {}]   ;;  %s10476_s7 = inlined_call_operand.hbm [shape: f32[8,128], index: 7, kind: input, shape index: {}]   ;;  %s10477_s8 = inlined_call_operand.vmem [shape: f32[2,32,96], index: 8, kind: input, shape index: {}]   ;;  %s10478_s9 = inlined_call_operand.vmem [shape: f32[2,32,32], index: 9, kind: input, shape index: {}]   ;;  %s10479_s10 = inlined_call_operand.vmem [shape: f32[2,32,96], index: 10, kind: input, shape index: {}]   ;;  %s10480_s11 = inlined_call_operand.vmem [shape: f32[2,32,32], index: 11, kind: input, shape index: {}]   ;;  %s10481_s12 = inlined_call_operand.hbm [shape: f32[2,32,64], index: 12, kind: input, shape index: {}]   ;;  %s10482_s13 = inlined_call_operand.vmem [shape: f32[2,64,32], index: 13, kind: input, shape index: {}]   ;;  %s10483_s14 = inlined_call_operand.hbm [shape: f32[2,12,128], index: 14, kind: input, shape index: {}]   ;;  %s10484_s15 = inlined_call_operand.hbm [shape: f32[32,160], index: 15, kind: input, shape index: {}]   ;;  %s10485_s16 = inlined_call_operand.hbm [shape: f32[32,128], index: 16, kind: input, shape index: {}]   ;;  %s10486_s17 = inlined_call_operand.hbm [shape: f32[3,160], index: 17, kind: input, shape index: {}]   ;;  %s10487_s18 = inlined_call_operand.vmem [shape: f32[2,8,128], index: 18, kind: output, shape index: {}]  }
   0x1   :  { %10522 = sst [smem:[#allocation20_spill]] %s10469_s0 }
   0x2   :  { %10523 = sst [smem:[#allocation21_spill]] %s10470_s1 }
   0x3   :  { %10524 = sst [smem:[#allocation22_spill]] %s10471_s2 }
   0x4   :  { %10525 = sst [smem:[#allocation23_spill]] %s10472_s3 }
   0x5   :  { %10526 = sst [smem:[#allocation24_spill]] %s10473_s4 }
   0x6   :  { %10527 = sst [smem:[#allocation25_spill]] %s10474_s5 }
   0x7   :  { %10528 = sst [smem:[#allocation26_spill]] %s10475_s6 }
   0x8   :  { %10529 = sst [smem:[#allocation27_spill]] %s10476_s7 }
   0x9   :  { %10530 = sst [smem:[#allocation28_spill]] %s10481_s12 }
   0xa   :  { %10531 = sst [smem:[#allocation29_spill]] %s10483_s14 }
   0xb   :  { %10532 = sst [smem:[#allocation30_spill]] %s10484_s15 }
   0xc   :  { %10533 = sst [smem:[#allocation31_spill]] %s10485_s16 }
   0xd   :  { %10534 = sst [smem:[#allocation32_spill]] %s10486_s17 }
   0xe   :  { %23 = vsyncpa [#allocation3], 0 }
   0xf   :  { %24 = vsyncpa [#allocation5], 0 }
  0x10   :  { %25 = vsyncpa [#allocation8], 0 }
  0x11   :  { %26 = vsyncpa [#allocation11], 0 }
  0x12   :  { %27 = vsyncpa [#allocation14], 0  ;;  %s8902_s27 = smov 0  }
  0x13 LB: > { %s8776_s28 = smov [#allocation4]   ;;  %s8908_s30 = sadd.s32 4294967295, %s8774_s27   ;;  %s8774_s27 = sphi %s8902_s27, %s33_s27  }
  0x14   : > { %s481_s29 = sshll.u32 %s8776_s28, 4  ;;  %p7406_p0 = scmp.ge.s32.totalorder %s8774_s27, 1  ;;  %s482_s29 = int_to_ptr.vmem [resolvable:$true] %s481_s29 }
  0x15   : > { %p452_p1 = scmp.lt.s32.totalorder %s8774_s27, 3  ;;  %p10492_p2 = scmp.eq.s32.totalorder %s8908_s30, 0 }
  0x16   : > { %s8777_s19 = smov [#allocation7]   ;;  %s8778_s21 = smov [#allocation10]  }
  0x17   : > { %p8913_p3 = pnand %p7406_p0, %p452_p1  ;;  %s520_s1 = sshll.u32 %s8777_s19, 4  ;;  %s8919_s1 = int_to_ptr.vmem [resolvable:$true] %s520_s1 }
  0x18   : > { %s549_s22 = sshll.u32 %s8778_s21, 4  ;;  %s8551_s23 = scalar_lea.vmem %s482_s29, 512  ;;  %s8927_s22 = int_to_ptr.vmem [resolvable:$true] %s549_s22 }
  0x19   : > { %s10535_s0 = scalar_select %p8913_p3, 1, 0 }
  0x1a   : > { %p8301_p4 = pneg %p8913_p3  ;;  %p8552_p7 = scmp.ne.s32.totalorder %s482_s29, %s8551_s23 }
  0x1b   : > { %p8559_p10 = scmp.lt.s32.totalorder %s482_s29, %s482_s29  ;;  %p8560_p11 = scmp.lt.s32.totalorder %s8551_s23, %s8551_s23 }
  0x1c   : > { %p8923_p5 = pnand %p10492_p2, %p8301_p4 }
  0x1d   : > { %p8561_p12 = por %p8560_p11, %p8559_p10 }
  0x1e   : > { %p8931_p6 = pneg %p8923_p5 }
  0x20   : > { %p8554_p8 = pnand %p8552_p7, %p8931_p6 }
  0x22   : > { %p8555_p9 = pneg %p8554_p8 }
  0x24   : > { %p8562_p13 = pnand %p8561_p12, %p8555_p9 }
  0x26   : > { %8565 = shalt.err (!%p8562_p13)
}
  0x27   : > { %s10488_s24 = smov 128   ;;  %s10490_s25 = smov 8  }
  0x28   : > { %s10538_s5 = sld [smem:[#allocation25_spill]]  ;;  %s8577_s19 = scalar_lea.vmem %s8919_s1, 1024 }
  0x29   : > { %p8578_p0 = scmp.ne.s32.totalorder %s8919_s1, %s8577_s19  ;;  %p8585_p7 = scmp.lt.s32.totalorder %s8919_s1, %s8919_s1 }
  0x2a   : > { %p8586_p8 = scmp.lt.s32.totalorder %s8577_s19, %s8577_s19 }
  0x2b   : > { %p8580_p1 = pnand %p8578_p0, %p8931_p6 }
  0x2c   : > { %p8587_p9 = por %p8586_p8, %p8585_p7 }
  0x2d   : > { %p8581_p4 = pneg %p8580_p1 }
  0x2e   : > { %8307 = dma.hbm_to_vmem [thread:$0]  (!%p8923_p5), %s10538_s5, 512, %s482_s29, [#allocation5], %s10488_s24, %s10488_s24, %s10490_s25  }
  0x2f   : > { %p8588_p10 = pnand %p8587_p9, %p8581_p4 }
  0x31   : > { %8591 = shalt.err (!%p8588_p10)
}
  0x32   : > { %s10539_s12 = sld [smem:[#allocation28_spill]]  ;;  %s8603_s29 = scalar_lea.vmem %s8927_s22, 1024 }
  0x33   : > { %p8604_p11 = scmp.ne.s32.totalorder %s8927_s22, %s8603_s29  ;;  %p8611_p0 = scmp.lt.s32.totalorder %s8927_s22, %s8927_s22 }
  0x34   : > { %p8612_p1 = scmp.lt.s32.totalorder %s8603_s29, %s8603_s29 }
  0x35   : > { %p8606_p12 = pnand %p8604_p11, %p8931_p6 }
  0x36   : > { %p8613_p4 = por %p8612_p1, %p8611_p0 }
  0x37   : > { %p8607_p13 = pneg %p8606_p12 }
  0x38   : > { %8313 = dma.hbm_to_vmem [thread:$0]  (!%p8923_p5), %s10539_s12, 1024, %s8919_s1, [#allocation8], %s10488_s24, %s10488_s24, %s10490_s25  }
  0x39   : > { %p8614_p7 = pnand %p8613_p4, %p8607_p13 }
  0x3b   : > { %8617 = shalt.err (!%p8614_p7)
}
  0x3c   : > { %s8781_s26 = smov 256   ;;  %s8782_s28 = smov 16  }
  0x3d   : > { %s10540_s15 = sld [smem:[#allocation30_spill]]  ;;  %s8783_s1 = smov [#allocation2]  }
  0x3e   : > { %s465_s23 = sshll.u32 %s8783_s1, 4  ;;  %s8784_s24 = smov [#allocation6]   ;;  %s466_s23 = int_to_ptr.vmem [resolvable:$true] %s465_s23 }
  0x3f   : > { %s498_s25 = sshll.u32 %s8784_s24, 4  ;;  %s8629_s29 = scalar_lea.vmem %s466_s23, 128  ;;  %s499_s25 = int_to_ptr.vmem [resolvable:$true] %s498_s25 }
  0x40   : > { %p8630_p8 = scmp.ne.s32.totalorder %s466_s23, %s8629_s29  ;;  %p8637_p11 = scmp.lt.s32.totalorder %s466_s23, %s466_s23 }
  0x41   : > { %p8638_p12 = scmp.lt.s32.totalorder %s8629_s29, %s8629_s29 }
  0x42   : > { %p8632_p9 = pnand %p8630_p8, %p8931_p6 }
  0x43   : > { %8319 = dma.hbm_to_vmem [thread:$0]  (!%p8923_p5), %s10540_s15, 1024, %s8927_s22, [#allocation11], %s8781_s26, %s8781_s26, %s8782_s28  }
  0x44   : > { %p8633_p10 = pneg %p8632_p9  ;;  %p8639_p13 = por %p8638_p12, %p8637_p11 }
  0x46   : > { %p8640_p0 = pnand %p8639_p13, %p8633_p10 }
  0x48   : > { %8643 = shalt.err (!%p8640_p0)
}
  0x49   : > { %s10541_s26 = sld [smem:[#allocation22_spill]]  ;;  %s8655_s24 = scalar_lea.vmem %s499_s25, 128 }
  0x4a   : > { %p8656_p1 = scmp.ne.s32.totalorder %s499_s25, %s8655_s24  ;;  %p8663_p2 = scmp.lt.s32.totalorder %s499_s25, %s499_s25 }
  0x4b   : > { %p8664_p8 = scmp.lt.s32.totalorder %s8655_s24, %s8655_s24 }
  0x4c   : > { %p8658_p4 = pnand %p8656_p1, %p8931_p6 }
  0x4d   : > { %p8665_p9 = por %p8664_p8, %p8663_p2 }
  0x4e   : > { %p8659_p7 = pneg %p8658_p4 }
  0x4f   : > { %8304 = dma.hbm_to_vmem [thread:$0]  (!%p8923_p5), %s10541_s26, 128, %s466_s23, [#allocation3]  }
  0x50   : > { %p8666_p3 = pnand %p8665_p9, %p8659_p7 }
  0x52   : > { %8669 = shalt.err (!%p8666_p3)
}
  0x53   : > { %s10542_s7 = sld [smem:[#allocation27_spill]]  ;;  %s8785_s1 = smov [#allocation9]  }
  0x54   : > { %s536_s29 = sshll.u32 %s8785_s1, 4  ;;  %s8786_s23 = smov [#allocation12]   ;;  %s537_s29 = int_to_ptr.vmem [resolvable:$true] %s536_s29 }
  0x55   : > { %s562_s19 = sshll.u32 %s8786_s23, 4  ;;  %s8681_s22 = scalar_lea.vmem %s537_s29, 512  ;;  %s563_s19 = int_to_ptr.vmem [resolvable:$true] %s562_s19 }
  0x56   : > { %p8682_p10 = scmp.ne.s32.totalorder %s537_s29, %s8681_s22  ;;  %p8689_p12 = scmp.lt.s32.totalorder %s537_s29, %s537_s29 }
  0x57   : > { %p8690_p3 = scmp.lt.s32.totalorder %s8681_s22, %s8681_s22 }
  0x58   : > { %p8684_p11 = pnand %p8682_p10, %p8931_p6 }
  0x59   : > { %8310 = dma.hbm_to_vmem [thread:$0]  (!%p8923_p5), %s10542_s7, 128, %s499_s25, [#allocation5]  }
  0x5a   : > { %p8685_p2 = pneg %p8684_p11  ;;  %p8691_p13 = por %p8690_p3, %p8689_p12 }
  0x5c   : > { %p8692_p0 = pnand %p8691_p13, %p8685_p2 }
  0x5e   : > { %8695 = shalt.err (!%p8692_p0)
}
  0x5f   : > { %s10543_s26 = smov 8   ;;  %s10544_s25 = smov 128  }
  0x60   : > { %s10545_s14 = sld [smem:[#allocation29_spill]]  ;;  %s8707_s21 = scalar_lea.vmem %s563_s19, 512 }
  0x61   : > { %p8708_p1 = scmp.ne.s32.totalorder %s563_s19, %s8707_s21  ;;  %p8715_p8 = scmp.lt.s32.totalorder %s563_s19, %s563_s19 }
  0x62   : > { %p8716_p9 = scmp.lt.s32.totalorder %s8707_s21, %s8707_s21 }
  0x63   : > { %p8710_p4 = pnand %p8708_p1, %p8931_p6 }
  0x64   : > { %p8717_p10 = por %p8716_p9, %p8715_p8 }
  0x65   : > { %p8711_p7 = pneg %p8710_p4 }
  0x66   : > { %8316 = dma.hbm_to_vmem [thread:$0]  (!%p8923_p5), %s10545_s14, 512, %s537_s29, [#allocation8], %s10544_s25, %s10544_s25, %s10543_s26  }
  0x67   : > { %p8718_p11 = pnand %p8717_p10, %p8711_p7 }
  0x69   : > { %8721 = shalt.err (!%p8718_p11)
}
  0x6a   : > { %s10546_s16 = sld [smem:[#allocation31_spill]]  ;;  %s8787_s29 = smov [#allocation13]  }
  0x6b   : > { %s576_s22 = sshll.u32 %s8787_s29, 4  ;;  %s577_s22 = int_to_ptr.vmem [resolvable:$true] %s576_s22 }
  0x6c   : > { %s8733_s24 = scalar_lea.vmem %s577_s22, 128  ;;  %p8741_p13 = scmp.lt.s32.totalorder %s577_s22, %s577_s22 }
  0x6d   : > { %p8734_p2 = scmp.ne.s32.totalorder %s577_s22, %s8733_s24  ;;  %p8742_p0 = scmp.lt.s32.totalorder %s8733_s24, %s8733_s24 }
  0x6f   : > { %p8736_p12 = pnand %p8734_p2, %p8931_p6  ;;  %p8743_p1 = por %p8742_p0, %p8741_p13 }
  0x70   : > { %8322 = dma.hbm_to_vmem [thread:$0]  (!%p8923_p5), %s10546_s16, 512, %s563_s19, [#allocation11], %s10544_s25, %s10544_s25, %s10543_s26  }
  0x71   : > { %p8737_p3 = pneg %p8736_p12 }
  0x73   : > { %p8744_p4 = pnand %p8743_p1, %p8737_p3 }
  0x75   : > { %8747 = shalt.err (!%p8744_p4)
}
  0x76   : > { %s10547_s17 = sld [smem:[#allocation32_spill]]  ;;  %p10548_p7 = scmp.ne.s32.totalorder %s10535_s0, 0 }
  0x77   : > { %p10549_p8 = scmp.eq.s32.totalorder (!%p10548_p7), %s8908_s30, 0 }
  0x78   : > { %603 = sbr.rel (%p10548_p7) target bundleno = 13881 (0x3639), region = 92 }
  0x7c   : > { %8325 = dma.hbm_to_vmem [thread:$0]  (!%p8923_p5), %s10547_s17, 128, %s577_s22, [#allocation14]  }
  0x7d   : > { %8753 = dma.done.wait (%p10549_p8), [#allocation3], 128   ;;  %p10550_p6 = pmov %p10549_p8 }
  0x7f   : > { %8755 = vsyncadd (%p10550_p6), [#allocation3], 4294967168  ;;  %p10551_p9 = pmov %p10550_p6 }
  0x80   : > { %p10552_p10 = pmov %p10550_p6 }
  0x81   : > { %8757 = dma.done.wait (%p10551_p9), [#allocation5], 640  }
  0x82   : > { %8759 = vsyncadd (%p10552_p10), [#allocation5], 4294966656  ;;  %p10553_p11 = pmov %p10550_p6 }
  0x83   : > { %p10554_p5 = pmov %p10550_p6 }
  0x84   : > { %8761 = dma.done.wait (%p10553_p11), [#allocation8], 1536  }
  0x85   : > { %8763 = vsyncadd (%p10554_p5), [#allocation8], 4294965760  ;;  %p10555_p2 = pmov %p10554_p5 }
  0x87   : > { %8765 = dma.done.wait (%p10555_p2), [#allocation11], 1536   ;;  %p10556_p12 = pmov %p10555_p2 }
  0x88   : > { %p10557_p3 = pmov %p10555_p2 }
  0x89   : > { %8767 = vsyncadd (%p10556_p12), [#allocation11], 4294965760 }
  0x8a   : > { %8769 = dma.done.wait (%p10557_p3), [#allocation14], 128   ;;  %p10558_p13 = pmov %p10555_p2 }
  0x8b   : > { %p687_p0 = scmp.lt.s32.totalorder %s8908_s30, 1  ;;  %s10559_s19 = sld [smem:[#allocation20_spill]]  ;;  %vm713_vm0 = vcmask 261120   ;;  %v709_v6 = vlaneseq  ;;  %v9069_v9 = vld [vmem:[#allocation6] sm:$0xff]  ;;  %vm805_vm1 = vcmask 64512   ;;  %vm899_vm2 = vcmask 130048  }
  0x8c   : > { %8771 = vsyncadd (%p10558_p13), [#allocation14], 4294967168  ;;  %s10560_s3 = sld [smem:[#allocation23_spill]]  ;;  %s10520_s20 = smov 96   ;;  %vm1649_vm3 = vcmask 195584   ;;  %vm8803_vm4 = vmmov 0  }
  0x8d   : > { %s10581_s30 = smov (!%p687_p0, %s8908_s30), 1  ;;  %v9064_v7 = vshrl.u32 %v709_v6, 7  ;;  %s10518_s2 = smov 120   ;;  %vm1897_vm5 = vcmask 523264   ;;  %vm6558_vm6 = vcmask 130112   ;;  %vm6623_vm7 = vcmask 1041409  }
  0x8e   : > { %s7561_s0 = sshll.u32 %s10581_s30, 4  ;;  %s10561_s25 = sld [smem:[#allocation21_spill]]  ;;  %vm6625_vm8 = vcmask 1042434   ;;  %vm6627_vm9 = vcmask 1043459   ;;  %vm6629_vm10 = vcmask 1044484   ;;  %vm6631_vm11 = vcmask 1045509  }
  0x8f   : > { %v9067_v8 = vsub.s32 0, %v9064_v7  ;;  %s10498_s23 = smov 64   ;;  %s10504_s29 = smov 56   ;;  %vm6633_vm12 = vcmask 1046534   ;;  %vm6635_vm13 = vcmask 1047559  }
  0x90   : > { %s10508_s22 = smov 80   ;;  %s10514_s24 = smov 112  }
  0x91   : > { %s691_s26 = scalar_lea.vmem %s10559_s19, %s7561_s0  ;;  %v712_v10 = vrot.slane %v9069_v9, %v9067_v8  ;;  %s10516_s0 = smov 88  }
  0x92   : > { %v708_v0 = vld [vmem:[%s10560_s3 + $0x18] sm:$0xff]  ;;  %v707_v1 = vld [vmem:[%s10560_s3 + $0x10] sm:$0xff]  ;;  %v9049_v2 = vld [vmem:[%s691_s26] sm:$0xff]  ;;  %s10494_s28 = smov 48   ;;  %s10506_s21 = smov 72  }
  0x93   : > { %7788 = vmatprep.subr.mxu0 %v708_v0  ;;  %v706_v3 = vld [vmem:[%s10560_s3 + $0x8] sm:$0xff]  ;;  %7796 = vmatprep.mubr.msk.f32.mxu0 %vm713_vm0, %v9049_v2  ;;  %v705_v4 = vld [vmem:[%s10560_s3] sm:$0xff]  ;;  %s10510_s19 = smov 104   ;;  %s10562_s4 = sld [smem:[#allocation24_spill]] }
  0x94   : > { %7789 = vmatpush3.msra.mxu0 %v708_v0  ;;  %v9059_v5 = vld [vmem:[%s691_s26 + $0x8] sm:$0xff]  ;;  %s9107_s1 = scalar_lea.vmem %s10561_s25, %s10581_s30  ;;  %s10502_s26 = smov 40  }
  0x95   : > { %7790 = vmatprep.subr.mxu0 %v707_v1  ;;  %v701_v21 = vld [vmem:[%s9107_s1] sm:$0x1]  ;;  %s10496_s25 = smov 8   ;;  %s10563_s6 = sld [smem:[#allocation26_spill]] }
  0x96   : > { %7791 = vmatpush3.msra.mxu0 %v707_v1  ;;  %v702_v22 = vsub.f32 1.0, %v701_v21  ;;  %s10572_s5 = smov 16   ;;  %s10576_s7 = smov 88  }
  0x97   : > { %7792 = vmatprep.subr.mxu0 %v706_v3 }
  0x98   : > { %7793 = vmatpush3.msra.mxu0 %v706_v3  ;;  %v703_v23 = vmul.f32 -10000.0, %v702_v22 }
  0x99   : > { %7794 = vmatprep.subr.mxu0 %v705_v4 }
  0x9a   : > { %7795 = vmatpush3.msra.mxu0 %v705_v4  ;;  %v9111_v24 = vrot.slane %v703_v23, %v9067_v8 }
  0x9b   : > { %7797 = vmatmul.mubr.msk.f32.vlgmr.msra.gmra.mxu0 %vm713_vm0, %v9059_v5 }
 0x15b   : > { %v7798_v11 = vpop.f32.mrf.mxu0 }
 0x15c   : > { %v9073_v12 = vadd.f32 %v7798_v11, %v712_v10 }
 0x15d   : > { %v786_v13 = vpop.f32.mrf.mxu0 }
 0x15e   : > { %v9075_v14 = vadd.f32 %v786_v13, %v712_v10  ;;  %1015 = vrot.lane.b32.xlu1 %v9073_v12, %s10516_s0  ;;  %803 = vrot.lane.b32.xlu0 %v9073_v12, %s10520_s20 }
 0x160   : > { %7803 = vmatprep.mubr.msk.f32.mxu1 %vm805_vm1, %v9075_v14 }
 0x162   : > { %1013 = vrot.lane.b32.xlu1 %v9075_v14, %s10516_s0  ;;  %801 = vrot.lane.b32.xlu0 %v9075_v14, %s10520_s20 }
 0x166   : > { %1011 = vrot.lane.b32.xlu1 %v9073_v12, %s10518_s2  ;;  %1009 = vrot.lane.b32.xlu0 %v9075_v14, %s10518_s2 }
 0x1d0   : > { %v804_v15 = vpop.permute.xlu0 %803  ;;  %v1016_v16 = vpop.permute.xlu1 %1015 }
 0x1d1   : > { %7799 = vmatprep.subr.msk.mxu1 %vm805_vm1, %v804_v15 }
 0x1d2   : > { %7800 = vmatpush3.xpose.msk.msra.mxu1 %vm805_vm1, %v804_v15 }
 0x1d4   : > { %v802_v17 = vpop.permute.xlu0 %801  ;;  %v1014_v19 = vpop.permute.xlu1 %1013 }
 0x1d5   : > { %7801 = vmatprep.subr.msk.mxu1 %vm805_vm1, %v802_v17 }
 0x1d6   : > { %7802 = vmatpush3.xpose.msk.msra.mxu1 %vm805_vm1, %v802_v17 }
 0x1d7   : > { %7813 = vmatprep.subr.msk.mxu1 %vm805_vm1, %v1016_v16 }
 0x1d8   : > { %v1010_v18 = vpop.permute.xlu0 %1009  ;;  %v1012_v20 = vpop.permute.xlu1 %1011 }
 0x1d9   : > { %7804 = vmatmul.mubr.msk.f32.vlgmr.msra.gmra.mxu1 %vm805_vm1, %v9073_v12 }
 0x1da   : > { %7814 = vmatpush3.xpose.msk.msra.mxu1 %vm805_vm1, %v1016_v16  ;;  %7817 = vmatprep.mubr.msk.f32.mxu1 %vm805_vm1, %v1010_v18 }
 0x1db   : > { %7815 = vmatprep.subr.msk.mxu1 %vm805_vm1, %v1014_v19 }
 0x1de   : > { %7816 = vmatpush3.xpose.msk.msra.mxu1 %vm805_vm1, %v1014_v19 }
 0x1e1   : > { %7818 = vmatmul.mubr.msk.f32.vlgmr.msra.gmra.mxu1 %vm805_vm1, %v1012_v20 }
 0x299   : > { %v7805_v25 = vpop.f32.mrf.mxu1 }
 0x29a   : > { %v890_v26 = vmul.f32 0.35355338, %v7805_v25 }
 0x29b   : > { %v880_v27 = vpop.f32.mrf.mxu1 }
 0x29c   : > { %v889_v28 = vmul.f32 0.35355338, %v880_v27  ;;  %v898_v29 = vadd.f32 %v9111_v24, %v890_v26 }
 0x29e   : > { %v903_v30 = vsel %vm899_vm2, %v898_v29, -inf  ;;  %v897_v31 = vadd.f32 %v9111_v24, %v889_v28 }
 0x29f   : > { %904 = vmax.xlane.f32.xlu1 %v903_v30 }
 0x2a0   : > { %v900_v32 = vsel %vm899_vm2, %v897_v31, -inf }
 0x2a1   : > { %v7819_v33 = vpop.f32.mrf.mxu1  ;;  %901 = vmax.xlane.f32.xlu0 %v900_v32 }
 0x2a2   : > { %v1101_v35 = vmul.f32 0.35355338, %v7819_v33 }
 0x2a3   : > { %v1091_v34 = vpop.f32.mrf.mxu1 }
 0x2a4   : > { %v1100_v36 = vmul.f32 0.35355338, %v1091_v34  ;;  %v1103_v39 = vadd.f32 %v1101_v35, %v9111_v24 }
 0x2a6   : > { %v1102_v37 = vadd.f32 %v1100_v36, %v9111_v24  ;;  %v1107_v40 = vsel %vm899_vm2, %v1103_v39, -inf }
 0x2a8   : > { %v1104_v38 = vsel %vm899_vm2, %v1102_v37, -inf }
 0x2a9   : > { %1105 = vmax.xlane.f32.xlu0 %v1104_v38 }
 0x2ad   : > { %1108 = vmax.xlane.f32.xlu0 %v1107_v40 }
 0x2b0   : > { %924 = vrot.lane.b32.xlu1 %v9073_v12, %s10498_s23 }
 0x2b4   : > { %1128 = vrot.lane.b32.xlu1 %v9073_v12, %s10504_s29 }
 0x2b8   : > { %1126 = vrot.lane.b32.xlu1 %v9075_v14, %s10504_s29 }
 0x2c3   : > { %922 = vrot.lane.b32.xlu0 %v9075_v14, %s10498_s23  ;;  %s10512_s23 = smov 24  }
 0x328   : > { %v905_v41 = vpop.xlane.xlu1 %904 }
 0x329   : > { %v907_v42 = vsub.f32 %v898_v29, %v905_v41 }
 0x32a   : > { %v902_v43 = vpop.xlane.xlu0 %901 }
 0x32b   : > { %v910_v44 = vmul.f32 1.442695, %v907_v42  ;;  %v906_v45 = vsub.f32 %v897_v31, %v902_v43 }
 0x32c   : > { %v925_v46 = vpop.permute.xlu1 %924 }
 0x32d   : > { %8381 = vpow2.f32 %v910_v44  ;;  %v908_v47 = vmul.f32 1.442695, %v906_v45  ;;  %7806 = vmatprep.subr.mxu0 %v925_v46 }
 0x32e   : > { %7807 = vmatpush3.msra.mxu0 %v925_v46 }
 0x32f   : > { %8383 = vpow2.f32 %v908_v47 }
 0x330   : > { %v1129_v56 = vpop.permute.xlu1 %1128 }
 0x332   : > { %v1106_v48 = vpop.xlane.xlu0 %1105 }
 0x333   : > { %v1110_v60 = vsub.f32 %v1102_v37, %v1106_v48 }
 0x334   : > { %v1127_v0 = vpop.permute.xlu1 %1126 }
 0x335   : > { %v1112_v61 = vmul.f32 1.442695, %v1110_v60 }
 0x336   : > { %v1109_v49 = vpop.xlane.xlu0 %1108 }
 0x337   : > { %v1111_v50 = vsub.f32 %v1103_v39, %v1109_v49 }
 0x339   : > { %v1114_v51 = vmul.f32 1.442695, %v1111_v50 }
 0x33a   : > { %v8382_v52 = vpop.eup %8381  ;;  %v923_v53 = vpop.permute.xlu0 %922 }
 0x33b   : > { %8385 = vpow2.f32 %v1114_v51  ;;  %7808 = vmatprep.subr.mxu0 %v923_v53  ;;  %v915_v54 = vsel %vm899_vm2, %v8382_v52, 0.0 }
 0x33c   : > { %v8384_v55 = vpop.eup %8383  ;;  %916 = vadd.xlane.f32.xlu0 %v915_v54  ;;  %7809 = vmatpush3.msra.mxu0 %v923_v53  ;;  %8387 = vpow2.f32 %v1112_v61 }
 0x33d   : > { %7820 = vmatprep.subr.mxu0 %v1129_v56  ;;  %v912_v57 = vsel %vm899_vm2, %v8384_v55, 0.0 }
 0x33e   : > { %913 = vadd.xlane.f32.xlu1 %v912_v57 }
 0x348   : > { %v8386_v58 = vpop.eup %8385 }
 0x349   : > { %v1119_v59 = vsel %vm899_vm2, %v8386_v58, 0.0  ;;  %v8388_v62 = vpop.eup %8387 }
 0x34a   : > { %1120 = vadd.xlane.f32.xlu0 %v1119_v59  ;;  %v1116_v63 = vsel %vm899_vm2, %v8388_v62, 0.0 }
 0x34f   : > { %1217 = vrot.lane.b32.xlu1 %v9075_v14, %s10508_s22 }
 0x360   : > { %1219 = vrot.lane.b32.xlu0 %v9073_v12, %s10508_s22  ;;  %s10564_s22 = smov 104  }
 0x364   : > { %1213 = vrot.lane.b32.xlu0 %v9075_v14, %s10514_s24 }
 0x373   : > { %1117 = vadd.xlane.f32.xlu1 %v1116_v63 }
 0x384   : > { %1215 = vrot.lane.b32.xlu1 %v9073_v12, %s10514_s24 }
 0x3c5   : > { %v917_v1 = vpop.xlane.xlu0 %916 }
 0x3c6   : > { %8389 = vrcp.f32 %v917_v1 }
 0x3c7   : > { %v914_v3 = vpop.xlane.xlu1 %913 }
 0x3c8   : > { %8391 = vrcp.f32 %v914_v3 }
 0x3cb   : > { %v1218_v17 = vpop.permute.xlu1 %1217 }
 0x3d3   : > { %v8390_v4 = vpop.eup %8389  ;;  %v1121_v11 = vpop.xlane.xlu0 %1120 }
 0x3d4   : > { %v921_v15 = vmul.f32 %v8390_v4, %v8382_v52  ;;  %8393 = vrcp.f32 %v1121_v11 }
 0x3d5   : > { %v8392_v10 = vpop.eup %8391 }
 0x3d6   : > { %v920_v13 = vmul.f32 %v8392_v10, %v8384_v55 }
 0x3d7   : > { %v1220_v16 = vpop.permute.xlu0 %1219 }
 0x3d8   : > { %7810 = vmatprep.mubr.msk.f32.mxu0 %vm899_vm2, %v920_v13 }
 0x3d9   : > { %7811 = vmatmul.mubr.msk.f32.vlgmr.msra.gmra.mxu0 %vm899_vm2, %v921_v15 }
 0x3da   : > { %7821 = vmatpush3.msra.mxu0 %v1129_v56 }
 0x3db   : > { %7822 = vmatprep.subr.mxu0 %v1127_v0  ;;  %v1214_v23 = vpop.permute.xlu0 %1213 }
 0x3dc   : > { %7823 = vmatpush3.msra.mxu0 %v1127_v0 }
 0x3dd   : > { %7827 = vmatprep.subr.msk.mxu0 %vm805_vm1, %v1220_v16 }
 0x3e1   : > { %v8394_v19 = vpop.eup %8393 }
 0x3e2   : > { %v1125_v22 = vmul.f32 %v8394_v19, %v8386_v58 }
 0x3fc   : > { %v1118_v18 = vpop.xlane.xlu1 %1117 }
 0x3fd   : > { %8395 = vrcp.f32 %v1118_v18 }
 0x400   : > { %v1216_v25 = vpop.permute.xlu1 %1215 }
 0x40a   : > { %v8396_v20 = vpop.eup %8395 }
 0x40b   : > { %v1124_v21 = vmul.f32 %v8396_v20, %v8388_v62 }
 0x40d   : > { %7824 = vmatprep.mubr.msk.f32.mxu0 %vm899_vm2, %v1124_v21 }
 0x40e   : > { %7825 = vmatmul.mubr.msk.f32.vlgmr.msra.gmra.mxu0 %vm899_vm2, %v1125_v22 }
 0x40f   : > { %7828 = vmatpush3.xpose.msk.msra.mxu0 %vm805_vm1, %v1220_v16  ;;  %7831 = vmatprep.mubr.msk.f32.mxu0 %vm805_vm1, %v1214_v23 }
 0x410   : > { %7829 = vmatprep.subr.msk.mxu0 %vm805_vm1, %v1218_v17 }
 0x413   : > { %7830 = vmatpush3.xpose.msk.msra.mxu0 %vm805_vm1, %v1218_v17 }
 0x416   : > { %7832 = vmatmul.mubr.msk.f32.vlgmr.msra.gmra.mxu0 %vm805_vm1, %v1216_v25 }
 0x499   : > { %v9151_v26 = vpop.f32.mrf.mxu0 }
 0x49b   : > { %v9153_v27 = vpop.f32.mrf.mxu0 }
 0x4ce   : > { %v9155_v28 = vpop.f32.mrf.mxu0 }
 0x4d0   : > { %v9157_v29 = vpop.f32.mrf.mxu0 }
 0x4d6   : > { %v7833_v30 = vpop.f32.mrf.mxu0 }
 0x4d7   : > { %v1305_v31 = vmul.f32 0.35355338, %v7833_v30 }
 0x4d8   : > { %v1295_v32 = vpop.f32.mrf.mxu0 }
 0x4d9   : > { %v1304_v33 = vmul.f32 0.35355338, %v1295_v32  ;;  %v1307_v34 = vadd.f32 %v1305_v31, %v9111_v24 }
 0x4db   : > { %v1311_v35 = vsel %vm899_vm2, %v1307_v34, -inf  ;;  %v1306_v36 = vadd.f32 %v1304_v33, %v9111_v24 }
 0x4dc   : > { %1312 = vmax.xlane.f32.xlu1 %v1311_v35  ;;  %v796_v35 = vld [vmem:[%s10562_s4 + $0x8] sm:$0xff] }
 0x4dd   : > { %v1308_v37 = vsel %vm899_vm2, %v1306_v36, -inf }
 0x4de   : > { %1309 = vmax.xlane.f32.xlu0 %v1308_v37 }
 0x4ed   : > { %1332 = vrot.lane.b32.xlu1 %v9073_v12, %s10494_s28 }
 0x4f1   : > { %1423 = vrot.lane.b32.xlu1 %v9073_v12, %s10506_s21 }
 0x4f5   : > { %1421 = vrot.lane.b32.xlu1 %v9075_v14, %s10506_s21  ;;  %s10566_s21 = smov 72  }
 0x4f9   : > { %1419 = vrot.lane.b32.xlu1 %v9073_v12, %s10510_s19 }
 0x565   : > { %v1313_v38 = vpop.xlane.xlu1 %1312 }
 0x566   : > { %v1315_v39 = vsub.f32 %v1307_v34, %v1313_v38  ;;  %v797_v34 = vld [vmem:[%s10562_s4 + $0x10] sm:$0xff] }
 0x567   : > { %v1310_v40 = vpop.xlane.xlu0 %1309 }
 0x568   : > { %v1318_v41 = vmul.f32 1.442695, %v1315_v39  ;;  %v1314_v42 = vsub.f32 %v1306_v36, %v1310_v40  ;;  %v795_v36 = vld [vmem:[%s10562_s4] sm:$0xff] }
 0x569   : > { %v1333_v43 = vpop.permute.xlu1 %1332 }
 0x56a   : > { %8397 = vpow2.f32 %v1318_v41  ;;  %v1316_v44 = vmul.f32 1.442695, %v1314_v42  ;;  %7834 = vmatprep.subr.mxu1 %v1333_v43 }
 0x56b   : > { %7835 = vmatpush3.msra.mxu1 %v1333_v43 }
 0x56c   : > { %8399 = vpow2.f32 %v1316_v44 }
 0x56d   : > { %v1424_v52 = vpop.permute.xlu1 %1423 }
 0x571   : > { %v1422_v58 = vpop.permute.xlu1 %1421 }
 0x575   : > { %v1420_v59 = vpop.permute.xlu1 %1419 }
 0x577   : > { %v8398_v45 = vpop.eup %8397 }
 0x578   : > { %v1323_v46 = vsel %vm899_vm2, %v8398_v45, 0.0 }
 0x579   : > { %v8400_v47 = vpop.eup %8399  ;;  %1324 = vadd.xlane.f32.xlu0 %v1323_v46 }
 0x57a   : > { %v1320_v48 = vsel %vm899_vm2, %v8400_v47, 0.0 }
 0x57d   : > { %1321 = vadd.xlane.f32.xlu0 %v1320_v48 }
 0x593   : > { %1330 = vrot.lane.b32.xlu0 %v9075_v14, %s10494_s28  ;;  %s10500_s28 = smov 16  }
 0x597   : > { %1417 = vrot.lane.b32.xlu0 %v9075_v14, %s10510_s19  ;;  %s10567_s19 = smov 56  }
 0x602   : > { %v1325_v49 = vpop.xlane.xlu0 %1324 }
 0x603   : > { %8401 = vrcp.f32 %v1325_v49 }
 0x606   : > { %v1322_v50 = vpop.xlane.xlu0 %1321 }
 0x607   : > { %8403 = vrcp.f32 %v1322_v50 }
 0x60a   : > { %v1331_v51 = vpop.permute.xlu0 %1330 }
 0x60b   : > { %7836 = vmatprep.subr.mxu1 %v1331_v51 }
 0x60c   : > { %7837 = vmatpush3.msra.mxu1 %v1331_v51 }
 0x60d   : > { %7841 = vmatprep.subr.msk.mxu1 %vm805_vm1, %v1424_v52 }
 0x60e   : > { %v1418_v57 = vpop.permute.xlu0 %1417 }
 0x610   : > { %v8402_v53 = vpop.eup %8401 }
 0x611   : > { %v1329_v56 = vmul.f32 %v8402_v53, %v8398_v45 }
 0x614   : > { %v8404_v54 = vpop.eup %8403 }
 0x615   : > { %v1328_v55 = vmul.f32 %v8404_v54, %v8400_v47 }
 0x617   : > { %7838 = vmatprep.mubr.msk.f32.mxu1 %vm899_vm2, %v1328_v55 }
 0x618   : > { %7839 = vmatmul.mubr.msk.f32.vlgmr.msra.gmra.mxu1 %vm899_vm2, %v1329_v56 }
 0x619   : > { %7842 = vmatpush3.xpose.msk.msra.mxu1 %vm805_vm1, %v1424_v52  ;;  %7845 = vmatprep.mubr.msk.f32.mxu1 %vm805_vm1, %v1418_v57 }
 0x61a   : > { %7843 = vmatprep.subr.msk.mxu1 %vm805_vm1, %v1422_v58 }
 0x61d   : > { %7844 = vmatpush3.xpose.msk.msra.mxu1 %vm805_vm1, %v1422_v58 }
 0x620   : > { %7846 = vmatmul.mubr.msk.f32.vlgmr.msra.gmra.mxu1 %vm805_vm1, %v1420_v59 }
 0x6d8   : > { %v7840_v60 = vpop.f32.mrf.mxu1 }
 0x6da   : > { %v1408_v61 = vpop.f32.mrf.mxu1 }
 0x6e0   : > { %v7847_v62 = vpop.f32.mrf.mxu1 }
 0x6e1   : > { %v1509_v63 = vmul.f32 0.35355338, %v7847_v62 }
 0x6e2   : > { %v1499_v0 = vpop.f32.mrf.mxu1 }
 0x6e3   : > { %v1508_v1 = vmul.f32 0.35355338, %v1499_v0  ;;  %v1511_v3 = vadd.f32 %v1509_v63, %v9111_v24 }
 0x6e5   : > { %v1515_v4 = vsel %vm899_vm2, %v1511_v3, -inf  ;;  %v1510_v10 = vadd.f32 %v1508_v1, %v9111_v24 }
 0x6e6   : > { %1516 = vmax.xlane.f32.xlu1 %v1515_v4 }
 0x6e7   : > { %v1512_v11 = vsel %vm899_vm2, %v1510_v10, -inf }
 0x6e8   : > { %1513 = vmax.xlane.f32.xlu0 %v1512_v11  ;;  %v1779_v11 = vld [vmem:[#allocation4 + $0x8] sm:$0xff] }
 0x6f7   : > { %1536 = vrot.lane.b32.xlu1 %v9073_v12, %s10502_s26 }
 0x6fb   : > { %1623 = vrot.lane.b32.xlu1 %v9157_v29, %s10496_s25 }
 0x6ff   : > { %1625 = vrot.lane.b32.xlu1 %v9155_v28, %s10496_s25  ;;  %s10569_s25 = smov 48  }
 0x703   : > { %1633 = vrot.lane.b32.xlu1 %v7840_v60, %s10500_s28 }
 0x76f   : > { %v1517_v13 = vpop.xlane.xlu1 %1516 }
 0x770   : > { %v1519_v15 = vsub.f32 %v1511_v3, %v1517_v13  ;;  %v1778_v13 = vld [vmem:[#allocation4] sm:$0xff] }
 0x771   : > { %v1514_v16 = vpop.xlane.xlu0 %1513 }
 0x772   : > { %v1522_v17 = vmul.f32 1.442695, %v1519_v15  ;;  %v1518_v18 = vsub.f32 %v1510_v10, %v1514_v16  ;;  %v1781_v10 = vld [vmem:[#allocation4 + $0x18] sm:$0xff]  ;;  %v8802_v15 = vmov 0.0  }
 0x773   : > { %v1537_v19 = vpop.permute.xlu1 %1536  ;;  %7866 = vmatprep.subr.mxu1 %v1781_v10 }
 0x774   : > { %8405 = vpow2.f32 %v1522_v17  ;;  %v1520_v20 = vmul.f32 1.442695, %v1518_v18  ;;  %7848 = vmatprep.subr.mxu0 %v1537_v19  ;;  %7867 = vmatpush3.msra.mxu1 %v1781_v10 }
 0x775   : > { %7849 = vmatpush3.msra.mxu0 %v1537_v19 }
 0x776   : > { %8407 = vpow2.f32 %v1520_v20 }
 0x777   : > { %v1624_v39 = vpop.permute.xlu1 %1623 }
 0x778   : > { %v1645_v43 = vsel %vm805_vm1, %v9153_v27, %v1624_v39  ;;  %v9228_v27 = vsub.s32 1, %v9064_v7  ;;  %v9273_v39 = vld [vmem:[#allocation2] sm:$0xff] }
 0x77a   : > { %v1655_v51 = vrot.slane %v9069_v9, %v9228_v27 }
 0x77b   : > { %v1626_v40 = vpop.permute.xlu1 %1625 }
 0x77c   : > { %v1646_v45 = vsel %vm805_vm1, %v9151_v26, %v1626_v40  ;;  %v1892_v40 = vld [vmem:[%s10563_s6 + $0x38] sm:$0xff] }
 0x77f   : > { %v1634_v41 = vpop.permute.xlu1 %1633 }
 0x780   : > { %v1648_v48 = vsel %vm899_vm2, %v1646_v45, %v1634_v41  ;;  %v1891_v41 = vld [vmem:[%s10563_s6 + $0x30] sm:$0xff] }
 0x781   : > { %v8406_v12 = vpop.eup %8405  ;;  %v1887_v45 = vld [vmem:[%s10563_s6 + $0x10] sm:$0xff] }
 0x782   : > { %v1527_v21 = vsel %vm899_vm2, %v8406_v12, 0.0 }
 0x783   : > { %v8408_v22 = vpop.eup %8407  ;;  %1528 = vadd.xlane.f32.xlu0 %v1527_v21  ;;  %v9240_v21 = vsub.s32 2, %v9064_v7 }
 0x784   : > { %v1524_v23 = vsel %vm899_vm2, %v8408_v22, 0.0 }
 0x787   : > { %1525 = vadd.xlane.f32.xlu0 %v1524_v23  ;;  %v1769_v23 = vrot.slane %v9069_v9, %v9240_v21 }
 0x79d   : > { %1534 = vrot.lane.b32.xlu0 %v9075_v14, %s10502_s26  ;;  %v798_v14 = vld [vmem:[%s10562_s4 + $0x18] sm:$0xff]  ;;  %s10568_s26 = smov 64  }
 0x7a1   : > { %1631 = vrot.lane.b32.xlu0 %v1408_v61, %s10500_s28  ;;  %s10565_s28 = smov 80  }
 0x80c   : > { %v1529_v25 = vpop.xlane.xlu0 %1528 }
 0x80d   : > { %8409 = vrcp.f32 %v1529_v25 }
 0x810   : > { %v1526_v28 = vpop.xlane.xlu0 %1525 }
 0x811   : > { %8411 = vrcp.f32 %v1526_v28 }
 0x814   : > { %v1535_v29 = vpop.permute.xlu0 %1534 }
 0x815   : > { %7850 = vmatprep.subr.mxu0 %v1535_v29 }
 0x816   : > { %7851 = vmatpush3.msra.mxu0 %v1535_v29 }
 0x817   : > { %7855 = vmatprep.subr.mxu0 %v798_v14 }
 0x818   : > { %v1632_v42 = vpop.permute.xlu0 %1631 }
 0x819   : > { %v1647_v46 = vsel %vm899_vm2, %v1645_v43, %v1632_v42  ;;  %v1890_v42 = vld [vmem:[%s10563_s6 + $0x28] sm:$0xff]  ;;  %v1889_v43 = vld [vmem:[%s10563_s6 + $0x20] sm:$0xff] }
 0x81a   : > { %v8410_v30 = vpop.eup %8409 }
 0x81b   : > { %v1533_v33 = vmul.f32 %v8410_v30, %v8406_v12 }
 0x81e   : > { %v8412_v31 = vpop.eup %8411 }
 0x81f   : > { %v1532_v32 = vmul.f32 %v8412_v31, %v8408_v22  ;;  %v9243_v22 = vsub.s32 3, %v9064_v7 }
 0x821   : > { %7852 = vmatprep.mubr.msk.f32.mxu0 %vm899_vm2, %v1532_v32  ;;  %v1775_v29 = vrot.slane %v9069_v9, %v9243_v22 }
 0x822   : > { %7853 = vmatmul.mubr.msk.f32.vlgmr.msra.gmra.mxu0 %vm899_vm2, %v1533_v33 }
 0x823   : > { %7856 = vmatpush3.msra.mxu0 %v798_v14 }
 0x824   : > { %7857 = vmatprep.subr.mxu0 %v797_v34 }
 0x825   : > { %7858 = vmatpush3.msra.mxu0 %v797_v34 }
 0x826   : > { %7859 = vmatprep.subr.mxu0 %v796_v35 }
 0x827   : > { %7860 = vmatpush3.msra.mxu0 %v796_v35  ;;  %v2025_v35 = vld [vmem:[%s10477_s8 + $0x18] sm:$0xff] }
 0x828   : > { %7861 = vmatprep.subr.mxu0 %v795_v36 }
 0x829   : > { %7862 = vmatpush3.msra.mxu0 %v795_v36  ;;  %v2024_v36 = vld [vmem:[%s10477_s8 + $0x10] sm:$0xff] }
 0x82a   : > { %7877 = vmatprep.subr.mxu0 %v1892_v40 }
 0x8e2   : > { %v7854_v37 = vpop.f32.mrf.mxu0 }
 0x8e3   : > { %1641 = vrot.lane.b32.xlu1 %v7854_v37, %s10512_s23  ;;  %v2023_v37 = vld [vmem:[%s10477_s8 + $0x8] sm:$0xff] }
 0x8e4   : > { %v1612_v38 = vpop.f32.mrf.mxu0 }
 0x8e5   : > { %1639 = vrot.lane.b32.xlu0 %v1612_v38, %s10512_s23  ;;  %v2022_v38 = vld [vmem:[%s10477_s8] sm:$0xff]  ;;  %s10570_s23 = smov 40  }
 0x955   : > { %v1642_v44 = vpop.permute.xlu1 %1641 }
 0x956   : > { %v1651_v50 = vsel %vm1649_vm3, %v1648_v48, %v1642_v44  ;;  %v1888_v44 = vld [vmem:[%s10563_s6 + $0x18] sm:$0xff]  ;;  %v9307_v48 = vsub.s32 4, %v9064_v7 }
 0x957   : > { %v1640_v47 = vpop.permute.xlu0 %1639 }
 0x958   : > { %v1650_v49 = vsel %vm1649_vm3, %v1647_v46, %v1640_v47  ;;  %v1886_v46 = vld [vmem:[%s10563_s6 + $0x8] sm:$0xff]  ;;  %v1885_v47 = vld [vmem:[%s10563_s6] sm:$0xff]  ;;  %s10575_s6 = smov 120  }
 0x959   : > { %7863 = vmatprep.mubr.msk.f32.mxu0 %vm713_vm0, %v1650_v49  ;;  %v1785_v49 = vrot.slane %v9069_v9, %v9307_v48 }
 0x95a   : > { %7864 = vmatmul.mubr.msk.f32.vlgmr.msra.gmra.mxu0 %vm713_vm0, %v1651_v50 }
 0x95b   : > { %7878 = vmatpush3.msra.mxu0 %v1892_v40 }
 0x95c   : > { %7879 = vmatprep.subr.mxu0 %v1891_v41 }
 0x95d   : > { %7880 = vmatpush3.msra.mxu0 %v1891_v41 }
 0x95e   : > { %7881 = vmatprep.subr.mxu0 %v1890_v42 }
 0x95f   : > { %7882 = vmatpush3.msra.mxu0 %v1890_v42 }
 0x960   : > { %7883 = vmatprep.subr.mxu0 %v1889_v43 }
 0x961   : > { %7884 = vmatpush3.msra.mxu0 %v1889_v43 }
 0x962   : > { %7885 = vmatprep.subr.mxu0 %v1888_v44 }
 0x963   : > { %7886 = vmatpush3.msra.mxu0 %v1888_v44 }
 0x964   : > { %7887 = vmatprep.subr.mxu0 %v1887_v45 }
 0x965   : > { %7888 = vmatpush3.msra.mxu0 %v1887_v45 }
 0x966   : > { %7889 = vmatprep.subr.mxu0 %v1886_v46 }
 0x967   : > { %7890 = vmatpush3.msra.mxu0 %v1886_v46 }
 0x968   : > { %7891 = vmatprep.subr.mxu0 %v1885_v47 }
 0x969   : > { %7892 = vmatpush3.msra.mxu0 %v1885_v47 }
 0x96a   : > { %7917 = vmatprep.subr.mxu0 %v8802_v15 }
 0xa1a   : > { %v7865_v26 = vpop.f32.mrf.mxu0 }
 0xa1b   : > { %v1734_v52 = vadd.f32 %v7865_v26, %v1655_v51 }
 0xa1c   : > { %v1728_v53 = vpop.f32.mrf.mxu0 }
 0xa1d   : > { %v1729_v54 = vadd.f32 %v1728_v53, %v1655_v51  ;;  %v1738_v55 = vadd.f32 %v1734_v52, %v9059_v5  ;;  %v9311_v52 = vld [vmem:[#allocation9] sm:$0xff] }
 0xa1f   : > { %v1742_v56 = vsel %vm713_vm0, %v1738_v55, 0.0  ;;  %v1737_v57 = vadd.f32 %v1729_v54, %v9049_v2  ;;  %v1780_v2 = vld [vmem:[#allocation4 + $0x10] sm:$0xff] }
 0xa20   : > { %1743 = vadd.xlane.f32.xlu1 %v1742_v56  ;;  %7868 = vmatprep.subr.mxu1 %v1780_v2 }
 0xa21   : > { %v1739_v58 = vsel %vm713_vm0, %v1737_v57, 0.0  ;;  %7869 = vmatpush3.msra.mxu1 %v1780_v2 }
 0xa22   : > { %1740 = vadd.xlane.f32.xlu0 %v1739_v58  ;;  %7870 = vmatprep.subr.mxu1 %v1779_v11 }
 0xa23   : > { %7871 = vmatpush3.msra.mxu1 %v1779_v11 }
 0xa24   : > { %7872 = vmatprep.subr.mxu1 %v1778_v13 }
 0xa25   : > { %7873 = vmatpush3.msra.mxu1 %v1778_v13 }
 0xa26   : > { %7896 = vmatprep.subr.mxu1 %v8802_v15 }
 0xaa9   : > { %v1744_v59 = vpop.xlane.xlu1 %1743 }
 0xaaa   : > { %v1747_v60 = vmul.f32 0.03125, %v1744_v59 }
 0xaab   : > { %v1741_v61 = vpop.xlane.xlu0 %1740 }
 0xaac   : > { %v1746_v62 = vmul.f32 0.03125, %v1741_v61  ;;  %v1749_v63 = vsub.f32 %v1738_v55, %v1747_v60 }
 0xaae   : > { %v1748_v0 = vsub.f32 %v1737_v57, %v1746_v62  ;;  %v1751_v4 = vmul.f32 %v1749_v63, %v1749_v63  ;;  %v2029_v57 = vrot.slane %v9311_v52, %v9067_v8 }
 0xab0   : > { %v1750_v1 = vmul.f32 %v1748_v0, %v1748_v0  ;;  %v1755_v5 = vsel %vm713_vm0, %v1751_v4, 0.0 }
 0xab2   : > { %v1752_v3 = vsel %vm713_vm0, %v1750_v1, 0.0 }
 0xab3   : > { %1753 = vadd.xlane.f32.xlu0 %v1752_v3 }
 0xab7   : > { %1756 = vadd.xlane.f32.xlu0 %v1755_v5 }
 0xb3c   : > { %v1754_v16 = vpop.xlane.xlu0 %1753 }
 0xb3d   : > { %v1758_v17 = vmul.f32 0.03125, %v1754_v16 }
 0xb3f   : > { %v1760_v18 = vadd.f32 1e-12, %v1758_v17 }
 0xb40   : > { %v1757_v19 = vpop.xlane.xlu0 %1756 }
 0xb41   : > { %8413 = vrsqrt.f32 %v1760_v18  ;;  %v1759_v20 = vmul.f32 0.03125, %v1757_v19 }
 0xb43   : > { %v1761_v12 = vadd.f32 1e-12, %v1759_v20 }
 0xb45   : > { %8415 = vrsqrt.f32 %v1761_v12 }
 0xb4e   : > { %v8414_v25 = vpop.eup %8413 }
 0xb4f   : > { %v1764_v28 = vmul.f32 %v8414_v25, %v1748_v0 }
 0xb51   : > { %v1770_v30 = vmul.f32 %v1769_v23, %v1764_v28 }
 0xb52   : > { %v8416_v31 = vpop.eup %8415 }
 0xb53   : > { %v1765_v32 = vmul.f32 %v8416_v31, %v1749_v63  ;;  %v9249_v33 = vadd.f32 %v1775_v29, %v1770_v30 }
 0xb55   : > { %v1771_v14 = vmul.f32 %v1769_v23, %v1765_v32  ;;  %7874 = vmatprep.mubr.msk.f32.mxu1 %vm713_vm0, %v9249_v33 }
 0xb57   : > { %v9253_v34 = vadd.f32 %v1775_v29, %v1771_v14 }
 0xb59   : > { %7875 = vmatmul.mubr.msk.f32.vlgmr.msra.gmra.mxu1 %vm713_vm0, %v9253_v34 }
 0xb5a   : > { %7897 = vmatpush3.msra.mxu1 %v2025_v35  ;;  %7904 = vmatprep.mubr.msk.f32.mxu1 %vm8803_vm4, %v8802_v15 }
 0xb5b   : > { %7898 = vmatprep.subr.mxu1 %v8802_v15 }
 0xb5c   : > { %7899 = vmatpush3.msra.mxu1 %v2024_v36 }
 0xb5d   : > { %7900 = vmatprep.subr.mxu1 %v8802_v15 }
 0xb5e   : > { %7901 = vmatpush3.msra.mxu1 %v2023_v37 }
 0xb5f   : > { %7902 = vmatprep.subr.mxu1 %v8802_v15 }
 0xb60   : > { %7903 = vmatpush3.msra.mxu1 %v2022_v38 }
 0xb61   : > { %7905 = vmatmul.mubr.msk.f32.vlgmr.msra.gmra.mxu1 %vm713_vm0, %v9273_v39  ;;  %7907 = vmatprep.subr.mxu1 %v8802_v15 }
 0xb62   : > { %7909 = vmatprep.mubr.msk.f32.mxu1 %vm8803_vm4, %v8802_v15 }
 0xc19   : > { %v7876_v50 = vpop.f32.mrf.mxu1 }
 0xc1a   : > { %v1864_v51 = vadd.f32 %v7876_v50, %v1785_v49 }
 0xc1b   : > { %v1858_v26 = vpop.f32.mrf.mxu1 }
 0xc1c   : > { %v1868_v53 = vmul.f32 %v1864_v51, %v1864_v51  ;;  %v1859_v54 = vadd.f32 %v1858_v26, %v1785_v49 }
 0xc1e   : > { %v1870_v55 = vmul.f32 %v1868_v53, %v1864_v51  ;;  %v1867_v56 = vmul.f32 %v1859_v54, %v1859_v54 }
 0xc20   : > { %v1872_v58 = vmul.f32 0.044715, %v1870_v55  ;;  %v1869_v59 = vmul.f32 %v1867_v56, %v1859_v54 }
 0xc21   : > { %v2099_v60 = vpop.f32.mrf.mxu1 }
 0xc22   : > { %v1874_v61 = vadd.f32 %v1872_v58, %v1864_v51  ;;  %v1871_v62 = vmul.f32 0.044715, %v1869_v59  ;;  %v9315_v63 = vadd.f32 %v2099_v60, %v2029_v57 }
 0xc23   : > { %v7906_v9 = vpop.f32.mrf.mxu1 }
 0xc24   : > { %v1876_v0 = vmul.f32 0.7978846, %v1874_v61  ;;  %v1873_v1 = vadd.f32 %v1871_v62, %v1859_v54  ;;  %2275 = vrot.lane.b32.xlu0 %v9315_v63, %s10516_s0  ;;  %2108 = vrot.lane.b32.xlu1 %v9315_v63, %s10520_s20  ;;  %s10571_s0 = smov 8   ;;  %s10573_s20 = smov 24  }
 0xc26   : > { %8417 = vtanh.f32 %v1876_v0  ;;  %v1875_v3 = vmul.f32 0.7978846, %v1873_v1 }
 0xc28   : > { %8419 = vtanh.f32 %v1875_v3  ;;  %2440 = vrot.lane.b32.xlu0 %v9315_v63, %s10514_s24  ;;  %2273 = vrot.lane.b32.xlu1 %v9315_v63, %s10518_s2  ;;  %s10574_s2 = smov 96   ;;  %s10577_s24 = smov 112  }
 0xc2c   : > { %2607 = vrot.lane.b32.xlu0 %v9315_v63, %s10564_s22  ;;  %2442 = vrot.lane.b32.xlu1 %v9315_v63, %s10565_s28 }
 0xc30   : > { %2609 = vrot.lane.b32.xlu1 %v9315_v63, %s10566_s21 }
 0xc33   : > { %v8418_v4 = vpop.eup %8417 }
 0xc34   : > { %v1880_v5 = vadd.f32 1.0, %v8418_v4 }
 0xc35   : > { %v8420_v10 = vpop.eup %8419 }
 0xc36   : > { %v1879_v2 = vadd.f32 1.0, %v8420_v10  ;;  %v1882_v11 = vmul.f32 0.5, %v1880_v5 }
 0xc38   : > { %v1881_v13 = vmul.f32 0.5, %v1879_v2  ;;  %v1884_v17 = vmul.f32 %v1882_v11, %v1864_v51 }
 0xc3a   : > { %v1883_v16 = vmul.f32 %v1881_v13, %v1859_v54 }
 0xc3c   : > { %7893 = vmatprep.mubr.msk.f32.mxu0 %vm1897_vm5, %v1883_v16 }
 0xc3d   : > { %7894 = vmatmul.mubr.msk.f32.vlgmr.msra.gmra.mxu0 %vm1897_vm5, %v1884_v17 }
 0xc3e   : > { %7919 = vmatprep.mubr.msk.f32.mxu0 %vm8803_vm4, %v8802_v15 }
 0xc96   : > { %v2276_v18 = vpop.permute.xlu0 %2275  ;;  %v2109_v19 = vpop.permute.xlu1 %2108 }
 0xc97   : > { %7908 = vmatpush3.xpose.msk.msra.mxu1 %vm805_vm1, %v2109_v19  ;;  %7918 = vmatpush3.xpose.msk.msra.mxu0 %vm805_vm1, %v2276_v18 }
 0xc98   : > { %7927 = vmatprep.subr.mxu0 %v8802_v15  ;;  %7912 = vmatprep.subr.mxu1 %v8802_v15 }
 0xc9a   : > { %7910 = vmatmul.mubr.msk.f32.vlgmr.msra.gmra.mxu1 %vm805_vm1, %v9315_v63  ;;  %v2274_v20 = vpop.permute.xlu1 %2273  ;;  %v2441_v23 = vpop.permute.xlu0 %2440 }
 0xc9b   : > { %7920 = vmatmul.mubr.msk.f32.vlgmr.msra.gmra.mxu0 %vm805_vm1, %v2274_v20  ;;  %7914 = vmatprep.mubr.msk.f32.mxu1 %vm8803_vm4, %v8802_v15 }
 0xc9c   : > { %7929 = vmatprep.mubr.msk.f32.mxu0 %vm8803_vm4, %v8802_v15 }
 0xc9e   : > { %v2443_v12 = vpop.permute.xlu1 %2442  ;;  %v2608_v28 = vpop.permute.xlu0 %2607 }
 0xc9f   : > { %7928 = vmatpush3.xpose.msk.msra.mxu0 %vm805_vm1, %v2443_v12 }
 0xca0   : > { %7937 = vmatprep.subr.mxu0 %v8802_v15 }
 0xca2   : > { %v2610_v25 = vpop.permute.xlu1 %2609  ;;  %7930 = vmatmul.mubr.msk.f32.vlgmr.msra.gmra.mxu0 %vm805_vm1, %v2441_v23 }
 0xca3   : > { %7938 = vmatpush3.xpose.msk.msra.mxu0 %vm805_vm1, %v2610_v25  ;;  %7939 = vmatprep.mubr.msk.f32.mxu0 %vm8803_vm4, %v8802_v15 }
 0xca4   : > { %7947 = vmatprep.subr.mxu0 %v8802_v15 }
 0xca6   : > { %7940 = vmatmul.mubr.msk.f32.vlgmr.msra.gmra.mxu0 %vm805_vm1, %v2608_v28 }
 0xca7   : > { %7955 = vmatprep.mubr.msk.f32.mxu0 %vm8803_vm4, %v8802_v15 }
 0xcfd   : > { %v9356_v29 = vpop.f32.mrf.mxu0 }
 0xcff   : > { %v9358_v30 = vpop.f32.mrf.mxu0 }
 0xd5a   : > { %v2180_v31 = vpop.f32.mrf.mxu1 }
 0xd5b   : > { %v2184_v32 = vmul.f32 0.35355338, %v2180_v31  ;;  %v2347_v14 = vpop.f32.mrf.mxu0 }
 0xd5c   : > { %v2351_v35 = vmul.f32 0.35355338, %v2347_v14  ;;  %v7911_v36 = vpop.f32.mrf.mxu1 }
 0xd5d   : > { %v7921_v37 = vpop.f32.mrf.mxu0  ;;  %v2186_v38 = vsel %vm805_vm1, %v2184_v32, -inf }
 0xd5e   : > { %2187 = vmax.xlane.f32.xlu1 %v2186_v38  ;;  %v2353_v40 = vsel %vm805_vm1, %v2351_v35, -inf }
 0xd5f   : > { %2354 = vmax.xlane.f32.xlu0 %v2353_v40 }
 0xd62   : > { %v2514_v41 = vpop.f32.mrf.mxu0 }
 0xd63   : > { %v2518_v42 = vmul.f32 0.35355338, %v2514_v41  ;;  %v2105_v41 = vld [vmem:[%s10478_s9 + $0x10] sm:$0xff] }
 0xd64   : > { %v7931_v43 = vpop.f32.mrf.mxu0 }
 0xd65   : > { %v2520_v44 = vsel %vm805_vm1, %v2518_v42, -inf  ;;  %v2103_v43 = vld [vmem:[%s10478_s9] sm:$0xff] }
 0xd66   : > { %2521 = vmax.xlane.f32.xlu0 %v2520_v44  ;;  %v2681_v45 = vpop.f32.mrf.mxu0 }
 0xd67   : > { %v2685_v46 = vmul.f32 0.35355338, %v2681_v45 }
 0xd68   : > { %v7941_v47 = vpop.f32.mrf.mxu0 }
 0xd69   : > { %v2687_v49 = vsel %vm805_vm1, %v2685_v46, -inf }
 0xd6a   : > { %2688 = vmax.xlane.f32.xlu1 %v2687_v49  ;;  %v9411_v49 = vsub.s32 5, %v9064_v7 }
 0xd7b   : > { %2364 = vrot.lane.b32.xlu1 %v9315_v63, %s10567_s19 }
 0xde7   : > { %v2188_v50 = vpop.xlane.xlu1 %2187 }
 0xde8   : > { %v2189_v51 = vsub.f32 %v2184_v32, %v2188_v50  ;;  %v2355_v26 = vpop.xlane.xlu0 %2354  ;;  %v9413_v50 = vld [vmem:[#allocation6] sm:$0xff] }
 0xde9   : > { %v2356_v53 = vsub.f32 %v2351_v35, %v2355_v26  ;;  %v2106_v35 = vld [vmem:[%s10478_s9 + $0x18] sm:$0xff] }
 0xdea   : > { %v2190_v54 = vmul.f32 1.442695, %v2189_v51  ;;  %7948 = vmatpush3.msra.mxu0 %v2106_v35  ;;  %v1896_v51 = vrot.slane %v9413_v50, %v9411_v49 }
 0xdeb   : > { %v2357_v55 = vmul.f32 1.442695, %v2356_v53  ;;  %7949 = vmatprep.subr.mxu0 %v8802_v15 }
 0xdec   : > { %8421 = vpow2.f32 %v2190_v54  ;;  %7950 = vmatpush3.msra.mxu0 %v2105_v41  ;;  %v1971_v26 = vadd.f32 %v9358_v30, %v1896_v51 }
 0xded   : > { %8423 = vpow2.f32 %v2357_v55  ;;  %7951 = vmatprep.subr.mxu0 %v8802_v15  ;;  %v1976_v55 = vadd.f32 %v9356_v29, %v1896_v51 }
 0xdee   : > { %v1979_v53 = vadd.f32 %v1971_v26, %v9249_v33 }
 0xdef   : > { %v2522_v1 = vpop.xlane.xlu0 %2521 }
 0xdf0   : > { %v2523_v3 = vsub.f32 %v2518_v42, %v2522_v1  ;;  %v2104_v42 = vld [vmem:[%s10478_s9 + $0x8] sm:$0xff]  ;;  %v1981_v54 = vsel %vm713_vm0, %v1979_v53, 0.0 }
 0xdf1   : > { %7952 = vmatpush3.msra.mxu0 %v2104_v42 }
 0xdf2   : > { %v2524_v4 = vmul.f32 1.442695, %v2523_v3  ;;  %7953 = vmatprep.subr.mxu0 %v8802_v15 }
 0xdf3   : > { %v2689_v56 = vpop.xlane.xlu1 %2688  ;;  %7954 = vmatpush3.msra.mxu0 %v2103_v43 }
 0xdf4   : > { %v2690_v57 = vsub.f32 %v2685_v46, %v2689_v56  ;;  %v1980_v56 = vadd.f32 %v1976_v55, %v9253_v34 }
 0xdf6   : > { %v2691_v58 = vmul.f32 1.442695, %v2690_v57  ;;  %v1984_v57 = vsel %vm713_vm0, %v1980_v56, 0.0 }
 0xdf7   : > { %v2365_v2 = vpop.permute.xlu1 %2364 }
 0xdf8   : > { %8425 = vpow2.f32 %v2691_v58 }
 0xdf9   : > { %v8422_v59 = vpop.eup %8421  ;;  %8427 = vpow2.f32 %v2524_v4  ;;  %v2792_v4 = vrot.slane %v9311_v52, %v9228_v27 }
 0xdfa   : > { %v8424_v60 = vpop.eup %8423  ;;  %v2192_v61 = vsel %vm805_vm1, %v8422_v59, 0.0 }
 0xdfb   : > { %2193 = vadd.xlane.f32.xlu0 %v2192_v61  ;;  %v2359_v62 = vsel %vm805_vm1, %v8424_v60, 0.0 }
 0xdfc   : > { %2360 = vadd.xlane.f32.xlu1 %v2359_v62 }
 0xe05   : > { %v8426_v9 = vpop.eup %8425 }
 0xe06   : > { %v2693_v0 = vsel %vm805_vm1, %v8426_v9, 0.0  ;;  %v8428_v5 = vpop.eup %8427 }
 0xe07   : > { %2694 = vadd.xlane.f32.xlu1 %v2693_v0  ;;  %v2526_v10 = vsel %vm805_vm1, %v8428_v5, 0.0 }
 0xe11   : > { %2197 = vrot.lane.b32.xlu0 %v9315_v63, %s10568_s26 }
 0xe18   : > { %2531 = vrot.lane.b32.xlu1 %v9315_v63, %s10569_s25 }
 0xe30   : > { %2527 = vadd.xlane.f32.xlu0 %v2526_v10 }
 0xe46   : > { %2698 = vrot.lane.b32.xlu0 %v9315_v63, %s10570_s23 }
 0xe84   : > { %v2194_v11 = vpop.xlane.xlu0 %2193 }
 0xe85   : > { %8429 = vrcp.f32 %v2194_v11  ;;  %v2361_v13 = vpop.xlane.xlu1 %2360 }
 0xe86   : > { %8431 = vrcp.f32 %v2361_v13 }
 0xe88   : > { %v2198_v16 = vpop.permute.xlu0 %2197 }
 0xe89   : > { %7913 = vmatpush3.msra.mxu1 %v2198_v16 }
 0xe8a   : > { %7922 = vmatprep.subr.mxu1 %v8802_v15 }
 0xe90   : > { %v2695_v18 = vpop.xlane.xlu1 %2694 }
 0xe92   : > { %v8430_v17 = vpop.eup %8429 }
 0xe93   : > { %v2196_v19 = vmul.f32 %v8430_v17, %v8422_v59  ;;  %v8432_v20 = vpop.eup %8431 }
 0xe94   : > { %v2363_v63 = vmul.f32 %v8432_v20, %v8424_v60  ;;  %v2532_v12 = vpop.permute.xlu1 %2531  ;;  %v2891_v20 = vld [vmem:[%s10479_s10 + $0x8] sm:$0xff] }
 0xe95   : > { %7915 = vmatmul.mubr.msk.f32.vlgmr.msra.gmra.mxu1 %vm805_vm1, %v2196_v19  ;;  %v2893_v19 = vld [vmem:[%s10479_s10 + $0x18] sm:$0xff] }
 0xe96   : > { %7923 = vmatpush3.msra.mxu1 %v2365_v2  ;;  %7924 = vmatprep.mubr.msk.f32.mxu1 %vm8803_vm4, %v8802_v15 }
 0xe97   : > { %7932 = vmatprep.subr.mxu1 %v8802_v15 }
 0xe99   : > { %7925 = vmatmul.mubr.msk.f32.vlgmr.msra.gmra.mxu1 %vm805_vm1, %v2363_v63  ;;  %v2890_v63 = vld [vmem:[%s10479_s10] sm:$0xff] }
 0xe9a   : > { %7933 = vmatpush3.msra.mxu1 %v2532_v12  ;;  %7934 = vmatprep.mubr.msk.f32.mxu1 %vm8803_vm4, %v8802_v15 }
 0xe9b   : > { %7942 = vmatprep.subr.mxu1 %v8802_v15 }
 0xeb9   : > { %v2528_v23 = vpop.xlane.xlu0 %2527 }
 0xeba   : > { %8433 = vrcp.f32 %v2528_v23 }
 0xebb   : > { %8435 = vrcp.f32 %v2695_v18 }
 0xebd   : > { %v2699_v32 = vpop.permute.xlu0 %2698 }
 0xec7   : > { %v8434_v25 = vpop.eup %8433 }
 0xec8   : > { %v2530_v28 = vmul.f32 %v8434_v25, %v8428_v5  ;;  %v8436_v31 = vpop.eup %8435 }
 0xec9   : > { %v2697_v14 = vmul.f32 %v8436_v31, %v8426_v9 }
 0xeca   : > { %7935 = vmatmul.mubr.msk.f32.vlgmr.msra.gmra.mxu1 %vm805_vm1, %v2530_v28 }
 0xecb   : > { %7943 = vmatpush3.msra.mxu1 %v2699_v32  ;;  %7944 = vmatprep.mubr.msk.f32.mxu1 %vm8803_vm4, %v8802_v15 }
 0xecc   : > { %7958 = vmatprep.subr.mxu1 %v8802_v15 }
 0xece   : > { %7945 = vmatmul.mubr.msk.f32.vlgmr.msra.gmra.mxu1 %vm805_vm1, %v2697_v14 }
 0xecf   : > { %7966 = vmatprep.mubr.msk.f32.mxu1 %vm8803_vm4, %v8802_v15  ;;  %7959 = vmatpush3.msra.mxu1 %v2893_v19 }
 0xed0   : > { %7960 = vmatprep.subr.mxu1 %v8802_v15 }
 0xf55   : > { %v2269_v36 = vpop.f32.mrf.mxu1 }
 0xf57   : > { %v7916_v37 = vpop.f32.mrf.mxu1 }
 0xf59   : > { %v2436_v38 = vpop.f32.mrf.mxu1 }
 0xf5a   : > { %2775 = vrot.lane.b32.xlu1 %v2436_v38, %s10571_s0  ;;  %v9458_v38 = vsub.s32 6, %v9064_v7 }
 0xf5b   : > { %v7926_v40 = vpop.f32.mrf.mxu1 }
 0xf5c   : > { %v9461_v40 = vsub.s32 7, %v9064_v7  ;;  %v2010_v43 = vrot.slane %v9413_v50, %v9458_v38 }
 0xf8a   : > { %v2603_v44 = vpop.f32.mrf.mxu1 }
 0xf8b   : > { %2779 = vrot.lane.b32.xlu0 %v2603_v44, %s10572_s5 }
 0xf8c   : > { %v7936_v45 = vpop.f32.mrf.mxu1 }
 0xf8d   : > { %v2016_v45 = vrot.slane %v9413_v50, %v9461_v40 }
 0xf8e   : > { %v2770_v46 = vpop.f32.mrf.mxu1 }
 0xf8f   : > { %2783 = vrot.lane.b32.xlu1 %v2770_v46, %s10573_s20 }
 0xf90   : > { %v7946_v47 = vpop.f32.mrf.mxu1 }
 0xf91   : > { %v2897_v47 = vrot.slane %v9311_v52, %v9307_v48 }
 0xfaa   : > { %1982 = vadd.xlane.f32.xlu0 %v1981_v54 }
 0xfb3   : > { %1985 = vadd.xlane.f32.xlu1 %v1984_v57 }
 0xfcc   : > { %v2776_v58 = vpop.permute.xlu1 %2775 }
 0xfcd   : > { %v2786_v60 = vsel %vm805_vm1, %v2269_v36, %v2776_v58 }
 0xffd   : > { %v2780_v59 = vpop.permute.xlu0 %2779 }
 0xffe   : > { %v2787_v61 = vsel %vm899_vm2, %v2786_v60, %v2780_v59 }
0x1001   : > { %v2784_v62 = vpop.permute.xlu1 %2783 }
0x1002   : > { %v2788_v30 = vsel %vm1649_vm3, %v2787_v61, %v2784_v62  ;;  %v2883_v62 = vrot.slane %v9311_v52, %v9240_v21 }
0x1003   : > { %7956 = vmatmul.mubr.msk.f32.vlgmr.msra.gmra.mxu0 %vm713_vm0, %v2788_v30 }
0x1033   : > { %v1983_v1 = vpop.xlane.xlu0 %1982 }
0x1034   : > { %v1987_v3 = vmul.f32 0.03125, %v1983_v1 }
0x1036   : > { %v1989_v10 = vsub.f32 %v1979_v53, %v1987_v3 }
0x1038   : > { %v1991_v17 = vmul.f32 %v1989_v10, %v1989_v10 }
0x103a   : > { %v1993_v18 = vsel %vm713_vm0, %v1991_v17, 0.0 }
0x103c   : > { %v1986_v33 = vpop.xlane.xlu1 %1985 }
0x103d   : > { %v1988_v9 = vmul.f32 0.03125, %v1986_v33 }
0x103f   : > { %v9427_v29 = vsub.f32 %v1980_v56, %v1988_v9  ;;  %v2888_v9 = vrot.slane %v9311_v52, %v9243_v22 }
0x1041   : > { %v1992_v34 = vmul.f32 %v9427_v29, %v9427_v29 }
0x1043   : > { %v1996_v0 = vsel %vm713_vm0, %v1992_v34, 0.0 }
0x1044   : > { %1997 = vadd.xlane.f32.xlu1 %v1996_v0 }
0x1055   : > { %2981 = vrot.lane.b32.xlu1 %v2893_v19, %s10574_s2 }
0x1059   : > { %2977 = vrot.lane.b32.xlu1 %v2891_v20, %s10574_s2 }
0x105d   : > { %2975 = vrot.lane.b32.xlu1 %v2890_v63, %s10574_s2 }
0x10c3   : > { %v2862_v5 = vpop.f32.mrf.mxu0 }
0x10c4   : > { %v2863_v2 = vadd.f32 %v2862_v5, %v2792_v4 }
0x10c5   : > { %v7957_v11 = vpop.f32.mrf.mxu0 }
0x10c6   : > { %v2866_v13 = vadd.f32 %v2863_v2, %v9273_v39  ;;  %v2892_v39 = vld [vmem:[%s10479_s10 + $0x10] sm:$0xff] }
0x10c7   : > { %7961 = vmatpush3.msra.mxu1 %v2892_v39 }
0x10c8   : > { %v2867_v16 = vsel %vm713_vm0, %v2866_v13, 0.0  ;;  %7962 = vmatprep.subr.mxu1 %v8802_v15 }
0x10c9   : > { %2868 = vadd.xlane.f32.xlu0 %v2867_v16  ;;  %7963 = vmatpush3.msra.mxu1 %v2891_v20 }
0x10ca   : > { %7964 = vmatprep.subr.mxu1 %v8802_v15 }
0x10cb   : > { %7965 = vmatpush3.msra.mxu1 %v2890_v63 }
0x10cc   : > { %7980 = vmatprep.subr.mxu1 %v8802_v15 }
0x10cd   : > { %1994 = vadd.xlane.f32.xlu0 %v1993_v18  ;;  %v1998_v36 = vpop.xlane.xlu1 %1997 }
0x10ce   : > { %v2000_v51 = vmul.f32 0.03125, %v1998_v36 }
0x10d0   : > { %v2002_v26 = vadd.f32 1e-12, %v2000_v51 }
0x10d1   : > { %v2982_v37 = vpop.permute.xlu1 %2981 }
0x10d2   : > { %7969 = vmatprep.subr.mxu0 %v2982_v37 }
0x10d3   : > { %7970 = vmatpush3.msra.mxu0 %v2982_v37 }
0x10d5   : > { %v2978_v55 = vpop.permute.xlu1 %2977 }
0x10d9   : > { %v2976_v60 = vpop.permute.xlu1 %2975 }
0x1152   : > { %v2869_v12 = vpop.xlane.xlu0 %2868 }
0x1153   : > { %v2870_v23 = vmul.f32 0.03125, %v2869_v12 }
0x1155   : > { %v2871_v25 = vsub.f32 %v2866_v13, %v2870_v23 }
0x1156   : > { %v1995_v28 = vpop.xlane.xlu0 %1994 }
0x1157   : > { %v1999_v31 = vmul.f32 0.03125, %v1995_v28  ;;  %v2872_v32 = vmul.f32 %v2871_v25, %v2871_v25 }
0x1159   : > { %v2001_v14 = vadd.f32 1e-12, %v1999_v31  ;;  %v2873_v35 = vsel %vm713_vm0, %v2872_v32, 0.0 }
0x115a   : > { %2874 = vadd.xlane.f32.xlu0 %v2873_v35 }
0x115b   : > { %8437 = vrsqrt.f32 %v2001_v14 }
0x115c   : > { %8439 = vrsqrt.f32 %v2002_v26 }
0x1168   : > { %v8438_v41 = vpop.eup %8437 }
0x1169   : > { %v2005_v42 = vmul.f32 %v8438_v41, %v1989_v10  ;;  %v8440_v53 = vpop.eup %8439 }
0x116a   : > { %v2006_v50 = vmul.f32 %v8440_v53, %v9427_v29 }
0x116b   : > { %v2011_v44 = vmul.f32 %v2010_v43, %v2005_v42 }
0x116c   : > { %v2012_v59 = vmul.f32 %v2010_v43, %v2006_v50 }
0x116d   : > { %v9467_v46 = vadd.f32 %v2016_v45, %v2011_v44 }
0x116e   : > { %v9476_v61 = vadd.f32 %v2016_v45, %v2012_v59 }
0x116f   : > { %7977 = vmatprep.mubr.msk.f32.mxu0 %vm713_vm0, %v9467_v46 }
0x1170   : > { %2979 = vrot.lane.b32.xlu0 %v2892_v39, %s10574_s2 }
0x1174   : > { %2988 = vrot.lane.b32.xlu0 %v2897_v47, %s10574_s2 }
0x11e3   : > { %v2875_v54 = vpop.xlane.xlu0 %2874 }
0x11e4   : > { %v2876_v56 = vmul.f32 0.03125, %v2875_v54 }
0x11e6   : > { %v2877_v57 = vadd.f32 1e-12, %v2876_v56 }
0x11e7   : > { %v2980_v58 = vpop.permute.xlu0 %2979 }
0x11e8   : > { %8441 = vrsqrt.f32 %v2877_v57  ;;  %7971 = vmatprep.subr.mxu0 %v2980_v58 }
0x11e9   : > { %7972 = vmatpush3.msra.mxu0 %v2980_v58 }
0x11ea   : > { %7973 = vmatprep.subr.mxu0 %v2978_v55 }
0x11eb   : > { %7974 = vmatpush3.msra.mxu0 %v2978_v55  ;;  %v2989_v0 = vpop.permute.xlu0 %2988 }
0x11ec   : > { %7975 = vmatprep.subr.mxu0 %v2976_v60 }
0x11ed   : > { %7976 = vmatpush3.msra.mxu0 %v2976_v60 }
0x11ee   : > { %7978 = vmatmul.mubr.msk.f32.vlgmr.msra.gmra.mxu0 %vm713_vm0, %v9476_v61  ;;  %7987 = vmatprep.subr.mxu0 %v8802_v15 }
0x11ef   : > { %7991 = vmatprep.mubr.msk.f32.mxu0 %vm8803_vm4, %v8802_v15 }
0x11f5   : > { %v8442_v30 = vpop.eup %8441 }
0x11f6   : > { %v2879_v33 = vmul.f32 %v8442_v30, %v2871_v25 }
0x11f8   : > { %v2884_v29 = vmul.f32 %v2883_v62, %v2879_v33 }
0x11fa   : > { %v9487_v34 = vadd.f32 %v2888_v9, %v2884_v29 }
0x11fc   : > { %7967 = vmatmul.mubr.msk.f32.vlgmr.msra.gmra.mxu1 %vm713_vm0, %v9487_v34 }
0x11fd   : > { %7984 = vmatprep.mubr.msk.f32.mxu1 %vm8803_vm4, %v8802_v15 }
0x12ae   : > { %v7979_v1 = vpop.f32.mrf.mxu0 }
0x12af   : > { %v9493_v3 = vadd.f32 %v7979_v1, %v2989_v0 }
0x12b0   : > { %v3063_v4 = vpop.f32.mrf.mxu0 }
0x12b1   : > { %v9495_v5 = vadd.f32 %v3063_v4, %v2989_v0  ;;  %3251 = vrot.lane.b32.xlu1 %v9493_v3, %s10575_s6  ;;  %7981 = vmatpush3.xpose.msk.msra.mxu1 %vm805_vm1, %v9493_v3 }
0x12b2   : > { %7982 = vmatprep.subr.mxu1 %v8802_v15 }
0x12b3   : > { %3249 = vrot.lane.b32.xlu0 %v9495_v5, %s10575_s6 }
0x12b5   : > { %7983 = vmatpush3.xpose.msk.msra.mxu1 %vm805_vm1, %v9495_v5 }
0x12b6   : > { %7994 = vmatprep.subr.mxu1 %v8802_v15 }
0x12bc   : > { %v2967_v10 = vpop.f32.mrf.mxu1 }
0x12bd   : > { %v9507_v2 = vadd.f32 %v2967_v10, %v2897_v47 }
0x12be   : > { %v7968_v11 = vpop.f32.mrf.mxu1 }
0x12bf   : > { %3247 = vrot.lane.b32.xlu1 %v9507_v2, %s10575_s6  ;;  %7985 = vmatmul.mubr.msk.f32.vlgmr.msra.gmra.mxu1 %vm805_vm1, %v9507_v2 }
0x12c0   : > { %7998 = vmatprep.mubr.msk.f32.mxu1 %vm8803_vm4, %v8802_v15 }
0x1323   : > { %v3252_v13 = vpop.permute.xlu1 %3251 }
0x1324   : > { %7995 = vmatpush3.xpose.msk.msra.mxu1 %vm805_vm1, %v3252_v13 }
0x1325   : > { %7996 = vmatprep.subr.mxu1 %v8802_v15  ;;  %v3250_v16 = vpop.permute.xlu0 %3249 }
0x1328   : > { %7997 = vmatpush3.xpose.msk.msra.mxu1 %vm805_vm1, %v3250_v16 }
0x1329   : > { %8015 = vmatprep.subr.mxu1 %v8802_v15 }
0x1331   : > { %v3248_v17 = vpop.permute.xlu1 %3247 }
0x1332   : > { %7999 = vmatmul.mubr.msk.f32.vlgmr.msra.gmra.mxu1 %vm805_vm1, %v3248_v17 }
0x1333   : > { %8019 = vmatprep.mubr.msk.f32.mxu1 %vm8803_vm4, %v8802_v15 }
0x137f   : > { %v3151_v18 = vpop.f32.mrf.mxu1 }
0x1380   : > { %v3155_v19 = vmul.f32 0.35355338, %v3151_v18 }
0x1381   : > { %v7986_v20 = vpop.f32.mrf.mxu1 }
0x1382   : > { %v3156_v39 = vadd.f32 %v3155_v19, %v9111_v24 }
0x1384   : > { %v3157_v63 = vsel %vm899_vm2, %v3156_v39, -inf }
0x1385   : > { %3158 = vmax.xlane.f32.xlu0 %v3157_v63 }
0x139b   : > { %3168 = vrot.lane.b32.xlu0 %v9495_v5, %s10574_s2 }
0x13f2   : > { %v3325_v12 = vpop.f32.mrf.mxu1 }
0x13f3   : > { %v3329_v23 = vmul.f32 0.35355338, %v3325_v12 }
0x13f4   : > { %v8000_v25 = vpop.f32.mrf.mxu1 }
0x13f5   : > { %v3330_v28 = vadd.f32 %v3329_v23, %v9111_v24 }
0x13f7   : > { %v3331_v31 = vsel %vm899_vm2, %v3330_v28, -inf }
0x13f8   : > { %3332 = vmax.xlane.f32.xlu1 %v3331_v31 }
0x1409   : > { %3170 = vrot.lane.b32.xlu1 %v9493_v3, %s10574_s2 }
0x140d   : > { %3344 = vrot.lane.b32.xlu1 %v9493_v3, %s10576_s7 }
0x140e   : > { %v3159_v32 = vpop.xlane.xlu0 %3158 }
0x140f   : > { %v3160_v14 = vsub.f32 %v3156_v39, %v3159_v32 }
0x1411   : > { %v3161_v35 = vmul.f32 1.442695, %v3160_v14  ;;  %3342 = vrot.lane.b32.xlu1 %v9495_v5, %s10576_s7 }
0x1412   : > { %v3169_v45 = vpop.permute.xlu0 %3168 }
0x1413   : > { %8443 = vpow2.f32 %v3161_v35 }
0x1415   : > { %3423 = vrot.lane.b32.xlu1 %v9495_v5, %s10577_s24 }
0x1420   : > { %v8444_v36 = vpop.eup %8443 }
0x1421   : > { %v3163_v37 = vsel %vm899_vm2, %v8444_v36, 0.0 }
0x1422   : > { %3164 = vadd.xlane.f32.xlu0 %v3163_v37 }
0x1481   : > { %v3333_v41 = vpop.xlane.xlu1 %3332 }
0x1482   : > { %v3334_v42 = vsub.f32 %v3330_v28, %v3333_v41 }
0x1484   : > { %v3335_v43 = vmul.f32 1.442695, %v3334_v42 }
0x1485   : > { %v3171_v44 = vpop.permute.xlu1 %3170 }
0x1486   : > { %8445 = vpow2.f32 %v3335_v43  ;;  %7988 = vmatpush3.msra.mxu0 %v3171_v44 }
0x1487   : > { %7989 = vmatprep.subr.mxu0 %v8802_v15 }
0x1488   : > { %7990 = vmatpush3.msra.mxu0 %v3169_v45 }
0x1489   : > { %8001 = vmatprep.subr.mxu0 %v8802_v15  ;;  %v3345_v53 = vpop.permute.xlu1 %3344 }
0x148d   : > { %v3343_v50 = vpop.permute.xlu1 %3342 }
0x1491   : > { %v3424_v60 = vpop.permute.xlu1 %3423 }
0x1493   : > { %v8446_v47 = vpop.eup %8445 }
0x1494   : > { %v3337_v51 = vsel %vm899_vm2, %v8446_v47, 0.0 }
0x1495   : > { %3338 = vadd.xlane.f32.xlu0 %v3337_v51 }
0x14ab   : > { %v3165_v26 = vpop.xlane.xlu0 %3164  ;;  %3425 = vrot.lane.b32.xlu0 %v9493_v3, %s10577_s24 }
0x14ac   : > { %8447 = vrcp.f32 %v3165_v26 }
0x14af   : > { %3421 = vrot.lane.b32.xlu0 %v9507_v2, %s10577_s24 }
0x14b9   : > { %v8448_v54 = vpop.eup %8447 }
0x14ba   : > { %v3167_v55 = vmul.f32 %v8448_v54, %v8444_v36 }
0x14bc   : > { %7992 = vmatmul.mubr.msk.f32.vlgmr.msra.gmra.mxu0 %vm899_vm2, %v3167_v55  ;;  %v3075_v55 = vld [vmem:[%s10480_s11 + $0x18] sm:$0xff] }
0x14bd   : > { %8002 = vmatpush3.msra.mxu0 %v3345_v53  ;;  %8005 = vmatprep.mubr.msk.f32.mxu0 %vm8803_vm4, %v8802_v15 }
0x14be   : > { %8003 = vmatprep.subr.mxu0 %v8802_v15 }
0x14bf   : > { %8004 = vmatpush3.msra.mxu0 %v3343_v50  ;;  %v3073_v50 = vld [vmem:[%s10480_s11 + $0x8] sm:$0xff] }
0x14c0   : > { %8008 = vmatprep.subr.mxu0 %v8802_v15 }
0x151e   : > { %v3339_v56 = vpop.xlane.xlu0 %3338 }
0x151f   : > { %8449 = vrcp.f32 %v3339_v56  ;;  %v3072_v56 = vld [vmem:[%s10480_s11] sm:$0xff] }
0x1522   : > { %v3426_v59 = vpop.permute.xlu0 %3425 }
0x1526   : > { %v3422_v62 = vpop.permute.xlu0 %3421 }
0x152c   : > { %v8450_v57 = vpop.eup %8449 }
0x152d   : > { %v3341_v58 = vmul.f32 %v8450_v57, %v8446_v47 }
0x152f   : > { %8006 = vmatmul.mubr.msk.f32.vlgmr.msra.gmra.mxu0 %vm899_vm2, %v3341_v58 }
0x1530   : > { %8009 = vmatpush3.xpose.msk.msra.mxu0 %vm805_vm1, %v3426_v59  ;;  %8012 = vmatprep.mubr.msk.f32.mxu0 %vm8803_vm4, %v8802_v15 }
0x1531   : > { %8010 = vmatprep.subr.mxu0 %v8802_v15 }
0x1534   : > { %8011 = vmatpush3.xpose.msk.msra.mxu0 %vm805_vm1, %v3424_v60 }
0x1535   : > { %8029 = vmatprep.subr.mxu0 %v8802_v15 }
0x1537   : > { %8013 = vmatmul.mubr.msk.f32.vlgmr.msra.gmra.mxu0 %vm805_vm1, %v3422_v62 }
0x1538   : > { %8033 = vmatprep.mubr.msk.f32.mxu0 %vm8803_vm4, %v8802_v15 }
0x157c   : > { %v9559_v30 = vpop.f32.mrf.mxu0 }
0x157e   : > { %v7993_v33 = vpop.f32.mrf.mxu0 }
0x15ef   : > { %v3417_v9 = vpop.f32.mrf.mxu0 }
0x15f1   : > { %v8007_v29 = vpop.f32.mrf.mxu0 }
0x15f7   : > { %v3499_v0 = vpop.f32.mrf.mxu0 }
0x15f8   : > { %v3503_v1 = vmul.f32 0.35355338, %v3499_v0  ;;  %v3787_v0 = vrot.slane %v9311_v52, %v9411_v49 }
0x15f9   : > { %v8014_v4 = vpop.f32.mrf.mxu0 }
0x15fa   : > { %v3504_v10 = vadd.f32 %v3503_v1, %v9111_v24 }
0x15fc   : > { %v3505_v11 = vsel %vm899_vm2, %v3504_v10, -inf }
0x15fd   : > { %3506 = vmax.xlane.f32.xlu1 %v3505_v11 }
0x160e   : > { %3516 = vrot.lane.b32.xlu1 %v9495_v5, %s10565_s28 }
0x1612   : > { %3599 = vrot.lane.b32.xlu1 %v9493_v3, %s10564_s22 }
0x1616   : > { %3595 = vrot.lane.b32.xlu1 %v9507_v2, %s10564_s22 }
0x1686   : > { %v3507_v13 = vpop.xlane.xlu1 %3506 }
0x1687   : > { %v3508_v16 = vsub.f32 %v3504_v10, %v3507_v13 }
0x1689   : > { %v3509_v17 = vmul.f32 1.442695, %v3508_v16 }
0x168a   : > { %v3517_v63 = vpop.permute.xlu1 %3516 }
0x168b   : > { %8451 = vpow2.f32 %v3509_v17 }
0x168e   : > { %v3600_v23 = vpop.permute.xlu1 %3599 }
0x1692   : > { %v3596_v28 = vpop.permute.xlu1 %3595 }
0x1698   : > { %v8452_v18 = vpop.eup %8451 }
0x1699   : > { %v3511_v19 = vsel %vm899_vm2, %v8452_v18, 0.0 }
0x169a   : > { %3512 = vadd.xlane.f32.xlu0 %v3511_v19 }
0x16b0   : > { %3518 = vrot.lane.b32.xlu0 %v9493_v3, %s10565_s28 }
0x16b4   : > { %3597 = vrot.lane.b32.xlu0 %v9495_v5, %s10564_s22 }
0x1723   : > { %v3513_v20 = vpop.xlane.xlu0 %3512 }
0x1724   : > { %8453 = vrcp.f32 %v3513_v20  ;;  %v3888_v20 = vld [vmem:[#allocation7 + $0x18] sm:$0xff] }
0x1727   : > { %v3519_v39 = vpop.permute.xlu0 %3518 }
0x1728   : > { %8016 = vmatpush3.msra.mxu1 %v3519_v39  ;;  %v3887_v39 = vld [vmem:[#allocation7 + $0x10] sm:$0xff] }
0x1729   : > { %8017 = vmatprep.subr.mxu1 %v8802_v15 }
0x172a   : > { %8018 = vmatpush3.msra.mxu1 %v3517_v63  ;;  %v3886_v63 = vld [vmem:[#allocation7 + $0x8] sm:$0xff] }
0x172b   : > { %8022 = vmatprep.subr.mxu1 %v8802_v15  ;;  %v3598_v25 = vpop.permute.xlu0 %3597 }
0x1731   : > { %v8454_v2 = vpop.eup %8453 }
0x1732   : > { %v3515_v12 = vmul.f32 %v8454_v2, %v8452_v18 }
0x1734   : > { %8020 = vmatmul.mubr.msk.f32.vlgmr.msra.gmra.mxu1 %vm899_vm2, %v3515_v12 }
0x1735   : > { %8023 = vmatpush3.xpose.msk.msra.mxu1 %vm805_vm1, %v3600_v23  ;;  %8026 = vmatprep.mubr.msk.f32.mxu1 %vm8803_vm4, %v8802_v15 }
0x1736   : > { %8024 = vmatprep.subr.mxu1 %v8802_v15 }
0x1739   : > { %8025 = vmatpush3.xpose.msk.msra.mxu1 %vm805_vm1, %v3598_v25  ;;  %v3878_v25 = vrot.slane %v9311_v52, %v9458_v38 }
0x173a   : > { %8047 = vmatprep.subr.mxu1 %v8802_v15 }
0x173c   : > { %8027 = vmatmul.mubr.msk.f32.vlgmr.msra.gmra.mxu1 %vm805_vm1, %v3596_v28 }
0x173d   : > { %8055 = vmatprep.mubr.msk.f32.mxu1 %vm8803_vm4, %v8802_v15  ;;  %8048 = vmatpush3.msra.mxu1 %v3888_v20 }
0x173e   : > { %8049 = vmatprep.subr.mxu1 %v8802_v15 }
0x173f   : > { %8050 = vmatpush3.msra.mxu1 %v3887_v39 }
0x1740   : > { %8051 = vmatprep.subr.mxu1 %v8802_v15 }
0x1741   : > { %8052 = vmatpush3.msra.mxu1 %v3886_v63 }
0x1742   : > { %8053 = vmatprep.subr.mxu1 %v8802_v15 }
0x17f4   : > { %v3591_v31 = vpop.f32.mrf.mxu1 }
0x17f6   : > { %v8021_v32 = vpop.f32.mrf.mxu1 }
0x17f7   : > { %v3883_v32 = vrot.slane %v9311_v52, %v9461_v40  ;;  %v3980_v52 = vld [vmem:[%s10482_s13 + $0x28] sm:$0xff] }
0x17fc   : > { %v3673_v14 = vpop.f32.mrf.mxu1 }
0x17fd   : > { %v3677_v35 = vmul.f32 0.35355338, %v3673_v14 }
0x17fe   : > { %v8028_v36 = vpop.f32.mrf.mxu1 }
0x17ff   : > { %v3678_v37 = vadd.f32 %v3677_v35, %v9111_v24  ;;  %v3982_v36 = vld [vmem:[%s10482_s13 + $0x38] sm:$0xff] }
0x1801   : > { %v3679_v41 = vsel %vm899_vm2, %v3678_v37, -inf }
0x1802   : > { %3680 = vmax.xlane.f32.xlu0 %v3679_v41  ;;  %v3979_v41 = vld [vmem:[%s10482_s13 + $0x20] sm:$0xff] }
0x1818   : > { %3692 = vrot.lane.b32.xlu0 %v9493_v3, %s10566_s21 }
0x181c   : > { %3770 = vrot.lane.b32.xlu0 %v3417_v9, %s10571_s0 }
0x188b   : > { %v3681_v42 = vpop.xlane.xlu0 %3680 }
0x188c   : > { %v3682_v43 = vsub.f32 %v3678_v37, %v3681_v42  ;;  %v3981_v37 = vld [vmem:[%s10482_s13 + $0x30] sm:$0xff]  ;;  %v3978_v42 = vld [vmem:[%s10482_s13 + $0x18] sm:$0xff] }
0x188e   : > { %v3683_v44 = vmul.f32 1.442695, %v3682_v43  ;;  %v3977_v43 = vld [vmem:[%s10482_s13 + $0x10] sm:$0xff] }
0x188f   : > { %v3693_v45 = vpop.permute.xlu0 %3692 }
0x1890   : > { %8455 = vpow2.f32 %v3683_v44  ;;  %8030 = vmatpush3.msra.mxu0 %v3693_v45  ;;  %v3976_v44 = vld [vmem:[%s10482_s13 + $0x8] sm:$0xff]  ;;  %v3975_v45 = vld [vmem:[%s10482_s13] sm:$0xff] }
0x1891   : > { %8031 = vmatprep.subr.mxu0 %v8802_v15 }
0x1893   : > { %v3771_v59 = vpop.permute.xlu0 %3770 }
0x1894   : > { %v3781_v62 = vsel %vm805_vm1, %v9559_v30, %v3771_v59 }
0x189d   : > { %v8456_v47 = vpop.eup %8455 }
0x189e   : > { %v3685_v51 = vsel %vm899_vm2, %v8456_v47, 0.0 }
0x189f   : > { %3686 = vadd.xlane.f32.xlu1 %v3685_v51 }
0x18b0   : > { %3690 = vrot.lane.b32.xlu1 %v9495_v5, %s10566_s21  ;;  %v3074_v5 = vld [vmem:[%s10480_s11 + $0x10] sm:$0xff] }
0x18b4   : > { %3774 = vrot.lane.b32.xlu1 %v3591_v31, %s10572_s5 }
0x1928   : > { %v3687_v3 = vpop.xlane.xlu1 %3686 }
0x1929   : > { %8457 = vrcp.f32 %v3687_v3 }
0x192c   : > { %v3691_v26 = vpop.permute.xlu1 %3690 }
0x192d   : > { %8032 = vmatpush3.msra.mxu0 %v3691_v26 }
0x192e   : > { %8036 = vmatprep.subr.mxu0 %v8802_v15 }
0x1930   : > { %v3775_v60 = vpop.permute.xlu1 %3774 }
0x1931   : > { %v3782_v33 = vsel %vm899_vm2, %v3781_v62, %v3775_v60 }
0x1936   : > { %v8458_v53 = vpop.eup %8457 }
0x1937   : > { %v3689_v54 = vmul.f32 %v8458_v53, %v8456_v47  ;;  %v2021_v47 = vld [vmem:[#allocation9 + $0x8] sm:$0xf] }
0x1938   : > { %v3892_v51 = vrot.slane %v2021_v47, %v9067_v8  ;;  %v3986_v62 = vrot.slane %v2021_v47, %v9228_v27 }
0x1939   : > { %8034 = vmatmul.mubr.msk.f32.vlgmr.msra.gmra.mxu0 %vm899_vm2, %v3689_v54 }
0x193a   : > { %8044 = vmatprep.mubr.msk.f32.mxu0 %vm8803_vm4, %v8802_v15  ;;  %8037 = vmatpush3.msra.mxu0 %v3075_v55 }
0x193b   : > { %8038 = vmatprep.subr.mxu0 %v8802_v15 }
0x193c   : > { %8039 = vmatpush3.msra.mxu0 %v3074_v5 }
0x193d   : > { %8040 = vmatprep.subr.mxu0 %v8802_v15 }
0x193e   : > { %8041 = vmatpush3.msra.mxu0 %v3073_v50 }
0x193f   : > { %8042 = vmatprep.subr.mxu0 %v8802_v15 }
0x1940   : > { %8043 = vmatpush3.msra.mxu0 %v3072_v56 }
0x1941   : > { %8058 = vmatprep.subr.mxu0 %v8802_v15 }
0x19f9   : > { %v3765_v57 = vpop.f32.mrf.mxu0 }
0x19fa   : > { %3778 = vrot.lane.b32.xlu0 %v3765_v57, %s10573_s20 }
0x19fb   : > { %v8035_v58 = vpop.f32.mrf.mxu0 }
0x1a6c   : > { %v3779_v9 = vpop.permute.xlu0 %3778 }
0x1a6d   : > { %v3783_v29 = vsel %vm1649_vm3, %v3782_v33, %v3779_v9 }
0x1a6e   : > { %8045 = vmatmul.mubr.msk.f32.vlgmr.msra.gmra.mxu0 %vm713_vm0, %v3783_v29 }
0x1a6f   : > { %8074 = vmatprep.mubr.msk.f32.mxu0 %vm8803_vm4, %v8802_v15  ;;  %8059 = vmatpush3.msra.mxu0 %v3982_v36 }
0x1a70   : > { %8060 = vmatprep.subr.mxu0 %v8802_v15 }
0x1a71   : > { %8061 = vmatpush3.msra.mxu0 %v3981_v37 }
0x1a72   : > { %8062 = vmatprep.subr.mxu0 %v8802_v15 }
0x1a73   : > { %8063 = vmatpush3.msra.mxu0 %v3980_v52 }
0x1a74   : > { %8064 = vmatprep.subr.mxu0 %v8802_v15 }
0x1a75   : > { %8065 = vmatpush3.msra.mxu0 %v3979_v41 }
0x1a76   : > { %8066 = vmatprep.subr.mxu0 %v8802_v15 }
0x1a77   : > { %8067 = vmatpush3.msra.mxu0 %v3978_v42 }
0x1a78   : > { %8068 = vmatprep.subr.mxu0 %v8802_v15 }
0x1a79   : > { %8069 = vmatpush3.msra.mxu0 %v3977_v43 }
0x1a7a   : > { %8070 = vmatprep.subr.mxu0 %v8802_v15 }
0x1a7b   : > { %8071 = vmatpush3.msra.mxu0 %v3976_v44 }
0x1a7c   : > { %8072 = vmatprep.subr.mxu0 %v8802_v15 }
0x1a7d   : > { %8073 = vmatpush3.msra.mxu0 %v3975_v45 }
0x1a7e   : > { %8098 = vmatprep.subr.mxu0 %v8802_v15 }
0x1b2e   : > { %v3857_v1 = vpop.f32.mrf.mxu0 }
0x1b2f   : > { %v3858_v4 = vadd.f32 %v3857_v1, %v3787_v0 }
0x1b30   : > { %v8046_v10 = vpop.f32.mrf.mxu0 }
0x1b31   : > { %v3861_v11 = vadd.f32 %v3858_v4, %v9487_v34  ;;  %v3885_v34 = vld [vmem:[#allocation7] sm:$0xff] }
0x1b32   : > { %8054 = vmatpush3.msra.mxu1 %v3885_v34  ;;  %v4077_v34 = vrot.slane %v2021_v47, %v9240_v21 }
0x1b33   : > { %v3862_v30 = vsel %vm713_vm0, %v3861_v11, 0.0  ;;  %8077 = vmatprep.subr.mxu1 %v8802_v15 }
0x1b34   : > { %3863 = vadd.xlane.f32.xlu1 %v3862_v30 }
0x1bbd   : > { %v3864_v13 = vpop.xlane.xlu1 %3863 }
0x1bbe   : > { %v3865_v16 = vmul.f32 0.03125, %v3864_v13 }
0x1bc0   : > { %v3866_v17 = vsub.f32 %v3861_v11, %v3865_v16  ;;  %v7499_v16 = vld [vmem:[%s10477_s8 + $0x38] sm:$0xff] }
0x1bc2   : > { %v3867_v18 = vmul.f32 %v3866_v17, %v3866_v17 }
0x1bc4   : > { %v3868_v19 = vsel %vm713_vm0, %v3867_v18, 0.0  ;;  %v7497_v18 = vld [vmem:[%s10477_s8 + $0x28] sm:$0xff] }
0x1bc5   : > { %3869 = vadd.xlane.f32.xlu0 %v3868_v19  ;;  %v7496_v19 = vld [vmem:[%s10477_s8 + $0x20] sm:$0xff] }
0x1c4e   : > { %v3870_v2 = vpop.xlane.xlu0 %3869 }
0x1c4f   : > { %v3871_v12 = vmul.f32 0.03125, %v3870_v2 }
0x1c51   : > { %v3872_v23 = vadd.f32 1e-12, %v3871_v12  ;;  %v4082_v12 = vrot.slane %v2021_v47, %v9243_v22 }
0x1c53   : > { %8459 = vrsqrt.f32 %v3872_v23 }
0x1c60   : > { %v8460_v28 = vpop.eup %8459 }
0x1c61   : > { %v3874_v31 = vmul.f32 %v8460_v28, %v3866_v17  ;;  %v7498_v17 = vld [vmem:[%s10477_s8 + $0x30] sm:$0xff] }
0x1c63   : > { %v3879_v14 = vmul.f32 %v3878_v25, %v3874_v31  ;;  %v9703_v31 = vld [vmem:[#allocation9 + $0x10] sm:$0xff] }
0x1c65   : > { %v3884_v35 = vadd.f32 %v3883_v32, %v3879_v14  ;;  %v4095_v32 = vrot.slane %v9703_v31, %v9067_v8 }
0x1c67   : > { %8056 = vmatmul.mubr.msk.f32.vlgmr.msra.gmra.mxu1 %vm713_vm0, %v3884_v35 }
0x1c68   : > { %8085 = vmatprep.mubr.msk.f32.mxu1 %vm8803_vm4, %v8802_v15  ;;  %8078 = vmatpush3.msra.mxu1 %v7499_v16 }
0x1c69   : > { %8079 = vmatprep.subr.mxu1 %v8802_v15 }
0x1c6a   : > { %8080 = vmatpush3.msra.mxu1 %v7498_v17 }
0x1c6b   : > { %8081 = vmatprep.subr.mxu1 %v8802_v15 }
0x1c6c   : > { %8082 = vmatpush3.msra.mxu1 %v7497_v18 }
0x1c6d   : > { %8083 = vmatprep.subr.mxu1 %v8802_v15 }
0x1c6e   : > { %8084 = vmatpush3.msra.mxu1 %v7496_v19 }
0x1c6f   : > { %8088 = vmatprep.subr.mxu1 %v8802_v15 }
0x1d27   : > { %v3962_v3 = vpop.f32.mrf.mxu1 }
0x1d28   : > { %v3963_v26 = vadd.f32 %v3962_v3, %v3892_v51 }
0x1d29   : > { %v8057_v53 = vpop.f32.mrf.mxu1 }
0x1d2a   : > { %v3966_v54 = vmul.f32 %v3963_v26, %v3963_v26 }
0x1d2c   : > { %v3967_v55 = vmul.f32 %v3966_v54, %v3963_v26 }
0x1d2e   : > { %v3968_v5 = vmul.f32 0.044715, %v3967_v55 }
0x1d30   : > { %v3969_v50 = vadd.f32 %v3968_v5, %v3963_v26 }
0x1d32   : > { %v3970_v56 = vmul.f32 0.7978846, %v3969_v50 }
0x1d34   : > { %8461 = vtanh.f32 %v3970_v56 }
0x1d41   : > { %v8462_v57 = vpop.eup %8461 }
0x1d42   : > { %v3972_v58 = vadd.f32 1.0, %v8462_v57 }
0x1d44   : > { %v3973_v59 = vmul.f32 0.5, %v3972_v58 }
0x1d46   : > { %v3974_v60 = vmul.f32 %v3973_v59, %v3963_v26 }
0x1d48   : > { %8075 = vmatmul.mubr.msk.f32.vlgmr.msra.gmra.mxu0 %vm1897_vm5, %v3974_v60 }
0x1d49   : > { %8100 = vmatprep.mubr.msk.f32.mxu0 %vm8803_vm4, %v8802_v15 }
0x1e08   : > { %v4056_v33 = vpop.f32.mrf.mxu0 }
0x1e09   : > { %v4057_v9 = vadd.f32 %v4056_v33, %v3986_v62 }
0x1e0a   : > { %v8076_v29 = vpop.f32.mrf.mxu0 }
0x1e0b   : > { %v4060_v0 = vadd.f32 %v4057_v9, %v3884_v35 }
0x1e0d   : > { %v4061_v1 = vsel %vm713_vm0, %v4060_v0, 0.0 }
0x1e0e   : > { %4062 = vadd.xlane.f32.xlu0 %v4061_v1 }
0x1e97   : > { %v4063_v4 = vpop.xlane.xlu0 %4062 }
0x1e98   : > { %v4064_v10 = vmul.f32 0.03125, %v4063_v4 }
0x1e9a   : > { %v4065_v11 = vsub.f32 %v4060_v0, %v4064_v10 }
0x1e9c   : > { %v4066_v30 = vmul.f32 %v4065_v11, %v4065_v11 }
0x1e9e   : > { %v4067_v13 = vsel %vm713_vm0, %v4066_v30, 0.0 }
0x1e9f   : > { %4068 = vadd.xlane.f32.xlu1 %v4067_v13 }
0x1f28   : > { %v4069_v20 = vpop.xlane.xlu1 %4068 }
0x1f29   : > { %v4070_v39 = vmul.f32 0.03125, %v4069_v20 }
0x1f2b   : > { %v4071_v63 = vadd.f32 1e-12, %v4070_v39 }
0x1f2d   : > { %8463 = vrsqrt.f32 %v4071_v63 }
0x1f3a   : > { %v8464_v2 = vpop.eup %8463 }
0x1f3b   : > { %v4073_v23 = vmul.f32 %v8464_v2, %v4065_v11 }
0x1f3d   : > { %v4078_v25 = vmul.f32 %v4077_v34, %v4073_v23 }
0x1f3f   : > { %v9697_v28 = vadd.f32 %v4082_v12, %v4078_v25 }
0x1f41   : > { %8086 = vmatmul.mubr.msk.f32.vlgmr.msra.gmra.mxu1 %vm713_vm0, %v9697_v28 }
0x1f42   : > { %8090 = vmatprep.mubr.msk.f32.mxu1 %vm8803_vm4, %v8802_v15 }
0x2001   : > { %v4165_v14 = vpop.f32.mrf.mxu1 }
0x2002   : > { %v9707_v35 = vadd.f32 %v4165_v14, %v4095_v32 }
0x2003   : > { %v8087_v36 = vpop.f32.mrf.mxu1 }
0x2004   : > { %4342 = vrot.lane.b32.xlu1 %v9707_v35, %s10576_s7  ;;  %4175 = vrot.lane.b32.xlu0 %v9707_v35, %s10574_s2 }
0x2008   : > { %4340 = vrot.lane.b32.xlu1 %v9707_v35, %s10575_s6  ;;  %4509 = vrot.lane.b32.xlu0 %v9707_v35, %s10565_s28 }
0x200c   : > { %4507 = vrot.lane.b32.xlu1 %v9707_v35, %s10577_s24  ;;  %4676 = vrot.lane.b32.xlu0 %v9707_v35, %s10566_s21 }
0x2010   : > { %4674 = vrot.lane.b32.xlu1 %v9707_v35, %s10564_s22 }
0x2076   : > { %v4343_v37 = vpop.permute.xlu1 %4342  ;;  %v4176_v52 = vpop.permute.xlu0 %4175 }
0x2077   : > { %8089 = vmatpush3.xpose.msk.msra.mxu1 %vm805_vm1, %v4176_v52  ;;  %8099 = vmatpush3.xpose.msk.msra.mxu0 %vm805_vm1, %v4343_v37 }
0x2078   : > { %8108 = vmatprep.subr.mxu0 %v8802_v15  ;;  %8093 = vmatprep.subr.mxu1 %v8802_v15 }
0x207a   : > { %v4341_v41 = vpop.permute.xlu1 %4340  ;;  %8091 = vmatmul.mubr.msk.f32.vlgmr.msra.gmra.mxu1 %vm805_vm1, %v9707_v35  ;;  %v4510_v42 = vpop.permute.xlu0 %4509 }
0x207b   : > { %8101 = vmatmul.mubr.msk.f32.vlgmr.msra.gmra.mxu0 %vm805_vm1, %v4341_v41  ;;  %8095 = vmatprep.mubr.msk.f32.mxu1 %vm8803_vm4, %v8802_v15 }
0x207c   : > { %8109 = vmatpush3.xpose.msk.msra.mxu0 %vm805_vm1, %v4510_v42  ;;  %8110 = vmatprep.mubr.msk.f32.mxu0 %vm8803_vm4, %v8802_v15 }
0x207d   : > { %8118 = vmatprep.subr.mxu0 %v8802_v15 }
0x207e   : > { %v4508_v43 = vpop.permute.xlu1 %4507  ;;  %v4677_v44 = vpop.permute.xlu0 %4676 }
0x207f   : > { %8111 = vmatmul.mubr.msk.f32.vlgmr.msra.gmra.mxu0 %vm805_vm1, %v4508_v43 }
0x2080   : > { %8119 = vmatpush3.xpose.msk.msra.mxu0 %vm805_vm1, %v4677_v44  ;;  %8120 = vmatprep.mubr.msk.f32.mxu0 %vm8803_vm4, %v8802_v15 }
0x2081   : > { %8128 = vmatprep.subr.mxu0 %v8802_v15 }
0x2082   : > { %v4675_v45 = vpop.permute.xlu1 %4674 }
0x2083   : > { %8121 = vmatmul.mubr.msk.f32.vlgmr.msra.gmra.mxu0 %vm805_vm1, %v4675_v45 }
0x2084   : > { %8136 = vmatprep.mubr.msk.f32.mxu0 %vm8803_vm4, %v8802_v15 }
0x213a   : > { %v4247_v47 = vpop.f32.mrf.mxu1 }
0x213b   : > { %v4251_v51 = vmul.f32 0.35355338, %v4247_v47  ;;  %v4414_v3 = vpop.f32.mrf.mxu0 }
0x213c   : > { %v4418_v26 = vmul.f32 0.35355338, %v4414_v3  ;;  %v8092_v53 = vpop.f32.mrf.mxu1 }
0x213d   : > { %v8102_v54 = vpop.f32.mrf.mxu0  ;;  %v4253_v55 = vsel %vm805_vm1, %v4251_v51, -inf  ;;  %v7504_v53 = vld [vmem:[%s10478_s9 + $0x38] sm:$0xff] }
0x213e   : > { %4254 = vmax.xlane.f32.xlu0 %v4253_v55  ;;  %v4420_v5 = vsel %vm805_vm1, %v4418_v26, -inf  ;;  %8129 = vmatpush3.msra.mxu0 %v7504_v53  ;;  %v7503_v54 = vld [vmem:[%s10478_s9 + $0x30] sm:$0xff]  ;;  %v7502_v55 = vld [vmem:[%s10478_s9 + $0x28] sm:$0xff] }
0x213f   : > { %4421 = vmax.xlane.f32.xlu1 %v4420_v5  ;;  %v4581_v50 = vpop.f32.mrf.mxu0  ;;  %8130 = vmatprep.subr.mxu0 %v8802_v15 }
0x2140   : > { %v4585_v56 = vmul.f32 0.35355338, %v4581_v50  ;;  %8131 = vmatpush3.msra.mxu0 %v7503_v54  ;;  %v7501_v50 = vld [vmem:[%s10478_s9 + $0x20] sm:$0xff] }
0x2141   : > { %v8112_v57 = vpop.f32.mrf.mxu0  ;;  %8132 = vmatprep.subr.mxu0 %v8802_v15 }
0x2142   : > { %v4587_v58 = vsel %vm805_vm1, %v4585_v56, -inf  ;;  %8133 = vmatpush3.msra.mxu0 %v7502_v55 }
0x2143   : > { %v4748_v59 = vpop.f32.mrf.mxu0  ;;  %4588 = vmax.xlane.f32.xlu0 %v4587_v58  ;;  %8134 = vmatprep.subr.mxu0 %v8802_v15 }
0x2144   : > { %v4752_v60 = vmul.f32 0.35355338, %v4748_v59  ;;  %8135 = vmatpush3.msra.mxu0 %v7501_v50 }
0x2145   : > { %v8122_v62 = vpop.f32.mrf.mxu0 }
0x2146   : > { %v4754_v33 = vsel %vm805_vm1, %v4752_v60, -inf }
0x2147   : > { %4755 = vmax.xlane.f32.xlu0 %v4754_v33 }
0x2150   : > { %4264 = vrot.lane.b32.xlu1 %v9707_v35, %s10568_s26 }
0x21c7   : > { %v4255_v9 = vpop.xlane.xlu0 %4254 }
0x21c8   : > { %v4256_v29 = vsub.f32 %v4251_v51, %v4255_v9  ;;  %v4422_v0 = vpop.xlane.xlu1 %4421 }
0x21c9   : > { %v4423_v1 = vsub.f32 %v4418_v26, %v4422_v0 }
0x21ca   : > { %v4257_v4 = vmul.f32 1.442695, %v4256_v29 }
0x21cb   : > { %v4424_v10 = vmul.f32 1.442695, %v4423_v1 }
0x21cc   : > { %8465 = vpow2.f32 %v4257_v4  ;;  %v4265_v11 = vpop.permute.xlu1 %4264  ;;  %v4589_v30 = vpop.xlane.xlu0 %4588 }
0x21cd   : > { %8467 = vpow2.f32 %v4424_v10  ;;  %v4590_v13 = vsub.f32 %v4585_v56, %v4589_v30  ;;  %8094 = vmatpush3.msra.mxu1 %v4265_v11  ;;  %v7521_v11 = vld [vmem:[%s10479_s10 + $0x38] sm:$0xff]  ;;  %v4859_v30 = vrot.slane %v9703_v31, %v9228_v27 }
0x21ce   : > { %8103 = vmatprep.subr.mxu1 %v8802_v15 }
0x21cf   : > { %v4591_v16 = vmul.f32 1.442695, %v4590_v13 }
0x21d0   : > { %v4756_v17 = vpop.xlane.xlu0 %4755 }
0x21d1   : > { %8469 = vpow2.f32 %v4591_v16  ;;  %v4757_v18 = vsub.f32 %v4752_v60, %v4756_v17 }
0x21d3   : > { %v4758_v19 = vmul.f32 1.442695, %v4757_v18 }
0x21d5   : > { %8471 = vpow2.f32 %v4758_v19 }
0x21d9   : > { %v8466_v20 = vpop.eup %8465 }
0x21da   : > { %v8468_v39 = vpop.eup %8467  ;;  %v4259_v63 = vsel %vm805_vm1, %v8466_v20, 0.0 }
0x21db   : > { %4260 = vadd.xlane.f32.xlu1 %v4259_v63  ;;  %v4426_v34 = vsel %vm805_vm1, %v8468_v39, 0.0 }
0x21dc   : > { %4427 = vadd.xlane.f32.xlu0 %v4426_v34 }
0x21de   : > { %v8470_v2 = vpop.eup %8469 }
0x21df   : > { %v4593_v12 = vsel %vm805_vm1, %v8470_v2, 0.0 }
0x21e0   : > { %4594 = vadd.xlane.f32.xlu1 %v4593_v12 }
0x21e2   : > { %v8472_v23 = vpop.eup %8471 }
0x21e3   : > { %v4760_v25 = vsel %vm805_vm1, %v8472_v23, 0.0 }
0x21e4   : > { %4761 = vadd.xlane.f32.xlu0 %v4760_v25 }
0x21f1   : > { %4598 = vrot.lane.b32.xlu1 %v9707_v35, %s10569_s25 }
0x21f5   : > { %4765 = vrot.lane.b32.xlu1 %v9707_v35, %s10570_s23 }
0x21fa   : > { %4431 = vrot.lane.b32.xlu0 %v9707_v35, %s10567_s19 }
0x2264   : > { %v4261_v32 = vpop.xlane.xlu1 %4260 }
0x2265   : > { %8473 = vrcp.f32 %v4261_v32  ;;  %v4428_v14 = vpop.xlane.xlu0 %4427 }
0x2266   : > { %8475 = vrcp.f32 %v4428_v14 }
0x2269   : > { %v4595_v36 = vpop.xlane.xlu1 %4594 }
0x226a   : > { %8477 = vrcp.f32 %v4595_v36  ;;  %v4965_v36 = vrot.slane %v9703_v31, %v9307_v48 }
0x226d   : > { %v4762_v37 = vpop.xlane.xlu0 %4761  ;;  %v4599_v44 = vpop.permute.xlu1 %4598 }
0x226e   : > { %8479 = vrcp.f32 %v4762_v37 }
0x2271   : > { %v4432_v43 = vpop.permute.xlu0 %4431  ;;  %v4766_v3 = vpop.permute.xlu1 %4765 }
0x2272   : > { %v8474_v52 = vpop.eup %8473 }
0x2273   : > { %v4263_v41 = vmul.f32 %v8474_v52, %v8466_v20  ;;  %v8476_v42 = vpop.eup %8475  ;;  %v7520_v20 = vld [vmem:[%s10479_s10 + $0x30] sm:$0xff] }
0x2274   : > { %v4430_v35 = vmul.f32 %v8476_v42, %v8468_v39  ;;  %v7519_v39 = vld [vmem:[%s10479_s10 + $0x28] sm:$0xff] }
0x2275   : > { %8096 = vmatmul.mubr.msk.f32.vlgmr.msra.gmra.mxu1 %vm805_vm1, %v4263_v41 }
0x2276   : > { %8104 = vmatpush3.msra.mxu1 %v4432_v43  ;;  %8105 = vmatprep.mubr.msk.f32.mxu1 %vm8803_vm4, %v8802_v15  ;;  %v4950_v43 = vrot.slane %v9703_v31, %v9240_v21 }
0x2277   : > { %8113 = vmatprep.subr.mxu1 %v8802_v15  ;;  %v8478_v45 = vpop.eup %8477 }
0x2278   : > { %v4597_v47 = vmul.f32 %v8478_v45, %v8470_v2  ;;  %v4955_v45 = vrot.slane %v9703_v31, %v9243_v22 }
0x2279   : > { %8106 = vmatmul.mubr.msk.f32.vlgmr.msra.gmra.mxu1 %vm805_vm1, %v4430_v35 }
0x227a   : > { %8114 = vmatpush3.msra.mxu1 %v4599_v44  ;;  %8115 = vmatprep.mubr.msk.f32.mxu1 %vm8803_vm4, %v8802_v15 }
0x227b   : > { %8123 = vmatprep.subr.mxu1 %v8802_v15  ;;  %v8480_v51 = vpop.eup %8479 }
0x227c   : > { %v4764_v26 = vmul.f32 %v8480_v51, %v8472_v23 }
0x227d   : > { %8116 = vmatmul.mubr.msk.f32.vlgmr.msra.gmra.mxu1 %vm805_vm1, %v4597_v47 }
0x227e   : > { %8124 = vmatpush3.msra.mxu1 %v4766_v3  ;;  %8125 = vmatprep.mubr.msk.f32.mxu1 %vm8803_vm4, %v8802_v15 }
0x227f   : > { %8139 = vmatprep.subr.mxu1 %v8802_v15 }
0x2281   : > { %8126 = vmatmul.mubr.msk.f32.vlgmr.msra.gmra.mxu1 %vm805_vm1, %v4764_v26 }
0x2282   : > { %8147 = vmatprep.mubr.msk.f32.mxu1 %vm8803_vm4, %v8802_v15  ;;  %8140 = vmatpush3.msra.mxu1 %v7521_v11 }
0x2283   : > { %8141 = vmatprep.subr.mxu1 %v8802_v15 }
0x2284   : > { %8142 = vmatpush3.msra.mxu1 %v7520_v20 }
0x2285   : > { %8143 = vmatprep.subr.mxu1 %v8802_v15 }
0x2286   : > { %8144 = vmatpush3.msra.mxu1 %v7519_v39 }
0x2287   : > { %8145 = vmatprep.subr.mxu1 %v8802_v15 }
0x2335   : > { %v4336_v5 = vpop.f32.mrf.mxu1 }
0x2337   : > { %v8097_v56 = vpop.f32.mrf.mxu1 }
0x2339   : > { %v4503_v57 = vpop.f32.mrf.mxu1 }
0x233a   : > { %4842 = vrot.lane.b32.xlu0 %v4503_v57, %s10571_s0 }
0x233b   : > { %v8107_v58 = vpop.f32.mrf.mxu1 }
0x233d   : > { %v4670_v59 = vpop.f32.mrf.mxu1 }
0x233e   : > { %4846 = vrot.lane.b32.xlu1 %v4670_v59, %s10572_s5 }
0x233f   : > { %v8117_v60 = vpop.f32.mrf.mxu1 }
0x2341   : > { %v4837_v62 = vpop.f32.mrf.mxu1 }
0x2342   : > { %4850 = vrot.lane.b32.xlu0 %v4837_v62, %s10573_s20 }
0x2343   : > { %v8127_v33 = vpop.f32.mrf.mxu1 }
0x2346   : > { %5049 = vrot.lane.b32.xlu0 %v7521_v11, %s10574_s2 }
0x23ac   : > { %v4843_v9 = vpop.permute.xlu0 %4842 }
0x23ad   : > { %v4853_v0 = vsel %vm805_vm1, %v4336_v5, %v4843_v9 }
0x23b0   : > { %v4847_v29 = vpop.permute.xlu1 %4846 }
0x23b1   : > { %v4854_v1 = vsel %vm899_vm2, %v4853_v0, %v4847_v29 }
0x23b4   : > { %v4851_v4 = vpop.permute.xlu0 %4850 }
0x23b5   : > { %v4855_v10 = vsel %vm1649_vm3, %v4854_v1, %v4851_v4 }
0x23b6   : > { %8137 = vmatmul.mubr.msk.f32.vlgmr.msra.gmra.mxu0 %vm713_vm0, %v4855_v10 }
0x23b7   : > { %8158 = vmatprep.mubr.msk.f32.mxu0 %vm713_vm0, %v9467_v46 }
0x23b8   : > { %v5050_v63 = vpop.permute.xlu0 %5049 }
0x23b9   : > { %8150 = vmatprep.subr.mxu0 %v5050_v63 }
0x23ba   : > { %8151 = vmatpush3.msra.mxu0 %v5050_v63 }
0x2476   : > { %v4929_v13 = vpop.f32.mrf.mxu0 }
0x2477   : > { %v4930_v16 = vadd.f32 %v4929_v13, %v4859_v30 }
0x2478   : > { %v8138_v17 = vpop.f32.mrf.mxu0 }
0x2479   : > { %v4933_v18 = vadd.f32 %v4930_v16, %v9697_v28  ;;  %v7518_v28 = vld [vmem:[%s10479_s10 + $0x20] sm:$0xff] }
0x247a   : > { %8146 = vmatpush3.msra.mxu1 %v7518_v28 }
0x247b   : > { %v4934_v19 = vsel %vm713_vm0, %v4933_v18, 0.0  ;;  %8161 = vmatprep.subr.mxu1 %v8802_v15 }
0x247c   : > { %4935 = vadd.xlane.f32.xlu1 %v4934_v19 }
0x248d   : > { %5047 = vrot.lane.b32.xlu1 %v7520_v20, %s10574_s2 }
0x2491   : > { %5045 = vrot.lane.b32.xlu1 %v7519_v39, %s10574_s2 }
0x2495   : > { %5056 = vrot.lane.b32.xlu1 %v4965_v36, %s10574_s2 }
0x2505   : > { %v4936_v34 = vpop.xlane.xlu1 %4935 }
0x2506   : > { %v4937_v2 = vmul.f32 0.03125, %v4936_v34 }
0x2508   : > { %v4938_v12 = vsub.f32 %v4933_v18, %v4937_v2 }
0x2509   : > { %v5048_v23 = vpop.permute.xlu1 %5047 }
0x250a   : > { %v4939_v25 = vmul.f32 %v4938_v12, %v4938_v12  ;;  %8152 = vmatprep.subr.mxu0 %v5048_v23 }
0x250b   : > { %8153 = vmatpush3.msra.mxu0 %v5048_v23 }
0x250c   : > { %v4940_v32 = vsel %vm713_vm0, %v4939_v25, 0.0 }
0x250d   : > { %4941 = vadd.xlane.f32.xlu0 %v4940_v32  ;;  %v5046_v14 = vpop.permute.xlu1 %5045 }
0x250e   : > { %8154 = vmatprep.subr.mxu0 %v5046_v14 }
0x250f   : > { %8155 = vmatpush3.msra.mxu0 %v5046_v14 }
0x2511   : > { %v5057_v3 = vpop.permute.xlu1 %5056 }
0x2523   : > { %5043 = vrot.lane.b32.xlu0 %v7518_v28, %s10574_s2 }
0x2596   : > { %v4942_v37 = vpop.xlane.xlu0 %4941 }
0x2597   : > { %v4943_v52 = vmul.f32 0.03125, %v4942_v37 }
0x2599   : > { %v4944_v41 = vadd.f32 1e-12, %v4943_v52 }
0x259a   : > { %v5044_v42 = vpop.permute.xlu0 %5043 }
0x259b   : > { %8481 = vrsqrt.f32 %v4944_v41  ;;  %8156 = vmatprep.subr.mxu0 %v5044_v42 }
0x259c   : > { %8157 = vmatpush3.msra.mxu0 %v5044_v42 }
0x259d   : > { %8159 = vmatmul.mubr.msk.f32.vlgmr.msra.gmra.mxu0 %vm713_vm0, %v9476_v61  ;;  %8168 = vmatprep.subr.mxu0 %v8802_v15 }
0x259e   : > { %8172 = vmatprep.mubr.msk.f32.mxu0 %vm8803_vm4, %v8802_v15 }
0x25a8   : > { %v8482_v44 = vpop.eup %8481 }
0x25a9   : > { %v4946_v35 = vmul.f32 %v8482_v44, %v4938_v12 }
0x25ab   : > { %v4951_v47 = vmul.f32 %v4950_v43, %v4946_v35 }
0x25ad   : > { %v9837_v51 = vadd.f32 %v4955_v45, %v4951_v47 }
0x25af   : > { %8148 = vmatmul.mubr.msk.f32.vlgmr.msra.gmra.mxu1 %vm713_vm0, %v9837_v51 }
0x25b0   : > { %8165 = vmatprep.mubr.msk.f32.mxu1 %vm8803_vm4, %v8802_v15 }
0x265d   : > { %v8160_v26 = vpop.f32.mrf.mxu0 }
0x265e   : > { %v9843_v53 = vadd.f32 %v8160_v26, %v5057_v3 }
0x265f   : > { %v5125_v54 = vpop.f32.mrf.mxu0 }
0x2660   : > { %v9845_v55 = vadd.f32 %v5125_v54, %v5057_v3  ;;  %5314 = vrot.lane.b32.xlu0 %v9843_v53, %s10575_s6  ;;  %8162 = vmatpush3.xpose.msk.msra.mxu1 %vm805_vm1, %v9843_v53 }
0x2661   : > { %8163 = vmatprep.subr.mxu1 %v8802_v15 }
0x2662   : > { %5312 = vrot.lane.b32.xlu1 %v9845_v55, %s10575_s6 }
0x2664   : > { %8164 = vmatpush3.xpose.msk.msra.mxu1 %vm805_vm1, %v9845_v55 }
0x2665   : > { %8175 = vmatprep.subr.mxu1 %v8802_v15 }
0x266f   : > { %v5035_v5 = vpop.f32.mrf.mxu1 }
0x2670   : > { %v9857_v50 = vadd.f32 %v5035_v5, %v4965_v36 }
0x2671   : > { %v8149_v56 = vpop.f32.mrf.mxu1 }
0x2672   : > { %5310 = vrot.lane.b32.xlu0 %v9857_v50, %s10575_s6  ;;  %8166 = vmatmul.mubr.msk.f32.vlgmr.msra.gmra.mxu1 %vm805_vm1, %v9857_v50 }
0x2673   : > { %8179 = vmatprep.mubr.msk.f32.mxu1 %vm8803_vm4, %v8802_v15 }
0x26d2   : > { %v5315_v57 = vpop.permute.xlu0 %5314 }
0x26d3   : > { %8176 = vmatpush3.xpose.msk.msra.mxu1 %vm805_vm1, %v5315_v57 }
0x26d4   : > { %8177 = vmatprep.subr.mxu1 %v8802_v15  ;;  %v5313_v58 = vpop.permute.xlu1 %5312 }
0x26d7   : > { %8178 = vmatpush3.xpose.msk.msra.mxu1 %vm805_vm1, %v5313_v58 }
0x26d8   : > { %8196 = vmatprep.subr.mxu1 %v8802_v15 }
0x26e4   : > { %v5311_v59 = vpop.permute.xlu0 %5310 }
0x26e5   : > { %8180 = vmatmul.mubr.msk.f32.vlgmr.msra.gmra.mxu1 %vm805_vm1, %v5311_v59 }
0x26e6   : > { %8200 = vmatprep.mubr.msk.f32.mxu1 %vm8803_vm4, %v8802_v15 }
0x2732   : > { %v5214_v60 = vpop.f32.mrf.mxu1 }
0x2733   : > { %v5218_v62 = vmul.f32 0.35355338, %v5214_v60 }
0x2734   : > { %v8167_v33 = vpop.f32.mrf.mxu1 }
0x2735   : > { %v5219_v9 = vadd.f32 %v5218_v62, %v9111_v24 }
0x2737   : > { %v5220_v29 = vsel %vm899_vm2, %v5219_v9, -inf }
0x2738   : > { %5221 = vmax.xlane.f32.xlu1 %v5220_v29 }
0x2749   : > { %5231 = vrot.lane.b32.xlu1 %v9845_v55, %s10574_s2 }
0x274d   : > { %5407 = vrot.lane.b32.xlu1 %v9843_v53, %s10576_s7 }
0x2751   : > { %5488 = vrot.lane.b32.xlu1 %v9843_v53, %s10577_s24 }
0x27a5   : > { %v5388_v0 = vpop.f32.mrf.mxu1 }
0x27a6   : > { %v5392_v1 = vmul.f32 0.35355338, %v5388_v0 }
0x27a7   : > { %v8181_v4 = vpop.f32.mrf.mxu1 }
0x27a8   : > { %v5393_v10 = vadd.f32 %v5392_v1, %v9111_v24 }
0x27aa   : > { %v5394_v11 = vsel %vm899_vm2, %v5393_v10, -inf }
0x27ab   : > { %5395 = vmax.xlane.f32.xlu0 %v5394_v11 }
0x27c1   : > { %5233 = vrot.lane.b32.xlu0 %v9843_v53, %s10574_s2  ;;  %v5222_v30 = vpop.xlane.xlu1 %5221 }
0x27c2   : > { %v5223_v13 = vsub.f32 %v5219_v9, %v5222_v30 }
0x27c4   : > { %v5224_v16 = vmul.f32 1.442695, %v5223_v13 }
0x27c5   : > { %v5232_v63 = vpop.permute.xlu1 %5231 }
0x27c6   : > { %8483 = vpow2.f32 %v5224_v16 }
0x27c9   : > { %v5408_v32 = vpop.permute.xlu1 %5407 }
0x27cd   : > { %v5489_v36 = vpop.permute.xlu1 %5488 }
0x27d3   : > { %v8484_v17 = vpop.eup %8483 }
0x27d4   : > { %v5226_v18 = vsel %vm899_vm2, %v8484_v17, 0.0 }
0x27e0   : > { %5227 = vadd.xlane.f32.xlu0 %v5226_v18 }
0x27f6   : > { %5405 = vrot.lane.b32.xlu0 %v9845_v55, %s10576_s7 }
0x27fa   : > { %5486 = vrot.lane.b32.xlu0 %v9845_v55, %s10577_s24 }
0x2834   : > { %v5396_v19 = vpop.xlane.xlu0 %5395 }
0x2835   : > { %v5397_v20 = vsub.f32 %v5393_v10, %v5396_v19 }
0x2837   : > { %v5398_v39 = vmul.f32 1.442695, %v5397_v20 }
0x2838   : > { %v5234_v28 = vpop.permute.xlu0 %5233 }
0x2839   : > { %8485 = vpow2.f32 %v5398_v39  ;;  %8169 = vmatpush3.msra.mxu0 %v5234_v28 }
0x283a   : > { %8170 = vmatprep.subr.mxu0 %v8802_v15 }
0x283b   : > { %8171 = vmatpush3.msra.mxu0 %v5232_v63 }
0x283c   : > { %8182 = vmatprep.subr.mxu0 %v8802_v15 }
0x2846   : > { %v8486_v34 = vpop.eup %8485 }
0x2847   : > { %v5400_v2 = vsel %vm899_vm2, %v8486_v34, 0.0 }
0x2848   : > { %5401 = vadd.xlane.f32.xlu1 %v5400_v2 }
0x2859   : > { %5484 = vrot.lane.b32.xlu1 %v9857_v50, %s10577_s24  ;;  %s8805_s24 = smov 32  }
0x285d   : > { %5579 = vrot.lane.b32.xlu1 %v9845_v55, %s10565_s28 }
0x2869   : > { %v5228_v12 = vpop.xlane.xlu0 %5227 }
0x286a   : > { %8487 = vrcp.f32 %v5228_v12 }
0x286d   : > { %v5406_v14 = vpop.permute.xlu0 %5405 }
0x2871   : > { %v5487_v42 = vpop.permute.xlu0 %5486 }
0x2877   : > { %v8488_v23 = vpop.eup %8487 }
0x2878   : > { %v5230_v25 = vmul.f32 %v8488_v23, %v8484_v17 }
0x287a   : > { %8173 = vmatmul.mubr.msk.f32.vlgmr.msra.gmra.mxu0 %vm899_vm2, %v5230_v25  ;;  %v7527_v25 = vld [vmem:[%s10480_s11 + $0x30] sm:$0xff] }
0x287b   : > { %8183 = vmatpush3.msra.mxu0 %v5408_v32  ;;  %8186 = vmatprep.mubr.msk.f32.mxu0 %vm8803_vm4, %v8802_v15  ;;  %v7526_v32 = vld [vmem:[%s10480_s11 + $0x28] sm:$0xff] }
0x287c   : > { %8184 = vmatprep.subr.mxu0 %v8802_v15 }
0x287d   : > { %8185 = vmatpush3.msra.mxu0 %v5406_v14  ;;  %v7525_v14 = vld [vmem:[%s10480_s11 + $0x20] sm:$0xff] }
0x287e   : > { %8189 = vmatprep.subr.mxu0 %v8802_v15 }
0x28d1   : > { %v5402_v37 = vpop.xlane.xlu1 %5401 }
0x28d2   : > { %8489 = vrcp.f32 %v5402_v37 }
0x28d5   : > { %v5485_v43 = vpop.permute.xlu1 %5484 }
0x28d9   : > { %v5580_v62 = vpop.permute.xlu1 %5579 }
0x28df   : > { %v8490_v52 = vpop.eup %8489 }
0x28e0   : > { %v5404_v41 = vmul.f32 %v8490_v52, %v8486_v34 }
0x28e2   : > { %8187 = vmatmul.mubr.msk.f32.vlgmr.msra.gmra.mxu0 %vm899_vm2, %v5404_v41 }
0x28e3   : > { %8190 = vmatpush3.xpose.msk.msra.mxu0 %vm805_vm1, %v5489_v36  ;;  %8193 = vmatprep.mubr.msk.f32.mxu0 %vm8803_vm4, %v8802_v15 }
0x28e4   : > { %8191 = vmatprep.subr.mxu0 %v8802_v15 }
0x28e7   : > { %8192 = vmatpush3.xpose.msk.msra.mxu0 %vm805_vm1, %v5487_v42 }
0x28e8   : > { %8210 = vmatprep.subr.mxu0 %v8802_v15 }
0x28ea   : > { %8194 = vmatmul.mubr.msk.f32.vlgmr.msra.gmra.mxu0 %vm805_vm1, %v5485_v43 }
0x28eb   : > { %8214 = vmatprep.mubr.msk.f32.mxu0 %vm8803_vm4, %v8802_v15 }
0x293a   : > { %v9911_v44 = vpop.f32.mrf.mxu0 }
0x293c   : > { %v8174_v35 = vpop.f32.mrf.mxu0 }
0x29a2   : > { %v5480_v45 = vpop.f32.mrf.mxu0 }
0x29a4   : > { %v8188_v47 = vpop.f32.mrf.mxu0 }
0x29a5   : > { %v5850_v47 = vrot.slane %v9703_v31, %v9411_v49  ;;  %v5950_v49 = vld [vmem:[#allocation7 + $0x28] sm:$0xff] }
0x29aa   : > { %v5562_v3 = vpop.f32.mrf.mxu0 }
0x29ab   : > { %v5566_v26 = vmul.f32 0.35355338, %v5562_v3 }
0x29ac   : > { %v8195_v54 = vpop.f32.mrf.mxu0 }
0x29ad   : > { %v5567_v5 = vadd.f32 %v5566_v26, %v9111_v24 }
0x29af   : > { %v5568_v56 = vsel %vm899_vm2, %v5567_v5, -inf }
0x29b0   : > { %5569 = vmax.xlane.f32.xlu0 %v5568_v56 }
0x29c6   : > { %5581 = vrot.lane.b32.xlu0 %v9843_v53, %s10565_s28 }
0x29ca   : > { %5662 = vrot.lane.b32.xlu0 %v9843_v53, %s10564_s22 }
0x29ce   : > { %5658 = vrot.lane.b32.xlu0 %v9857_v50, %s10564_s22 }
0x2a39   : > { %v5570_v57 = vpop.xlane.xlu0 %5569 }
0x2a3a   : > { %v5571_v58 = vsub.f32 %v5567_v5, %v5570_v57 }
0x2a3c   : > { %v5572_v59 = vmul.f32 1.442695, %v5571_v58 }
0x2a3d   : > { %v5582_v60 = vpop.permute.xlu0 %5581 }
0x2a3e   : > { %8491 = vpow2.f32 %v5572_v59  ;;  %8197 = vmatpush3.msra.mxu1 %v5582_v60 }
0x2a3f   : > { %8198 = vmatprep.subr.mxu1 %v8802_v15 }
0x2a40   : > { %8199 = vmatpush3.msra.mxu1 %v5580_v62  ;;  %v5952_v62 = vld [vmem:[#allocation7 + $0x38] sm:$0xff] }
0x2a41   : > { %8203 = vmatprep.subr.mxu1 %v8802_v15  ;;  %v5663_v1 = vpop.permute.xlu0 %5662 }
0x2a45   : > { %v5659_v10 = vpop.permute.xlu0 %5658 }
0x2a4b   : > { %v8492_v33 = vpop.eup %8491 }
0x2a4c   : > { %v5574_v9 = vsel %vm899_vm2, %v8492_v33, 0.0 }
0x2a4d   : > { %5575 = vadd.xlane.f32.xlu1 %v5574_v9 }
0x2a5e   : > { %5660 = vrot.lane.b32.xlu1 %v9845_v55, %s10564_s22 }
0x2ad6   : > { %v5576_v50 = vpop.xlane.xlu1 %5575 }
0x2ad7   : > { %8493 = vrcp.f32 %v5576_v50 }
0x2ada   : > { %v5661_v4 = vpop.permute.xlu1 %5660 }
0x2ae4   : > { %v8494_v29 = vpop.eup %8493 }
0x2ae5   : > { %v5578_v0 = vmul.f32 %v8494_v29, %v8492_v33  ;;  %v5951_v33 = vld [vmem:[#allocation7 + $0x30] sm:$0xff] }
0x2ae7   : > { %8201 = vmatmul.mubr.msk.f32.vlgmr.msra.gmra.mxu1 %vm899_vm2, %v5578_v0  ;;  %v5941_v0 = vrot.slane %v9703_v31, %v9458_v38  ;;  %v7553_v38 = vld [vmem:[%s10482_s13 + $0x70] sm:$0xff] }
0x2ae8   : > { %8204 = vmatpush3.xpose.msk.msra.mxu1 %vm805_vm1, %v5663_v1  ;;  %8207 = vmatprep.mubr.msk.f32.mxu1 %vm8803_vm4, %v8802_v15 }
0x2ae9   : > { %8205 = vmatprep.subr.mxu1 %v8802_v15 }
0x2aec   : > { %8206 = vmatpush3.xpose.msk.msra.mxu1 %vm805_vm1, %v5661_v4 }
0x2aed   : > { %8228 = vmatprep.subr.mxu1 %v8802_v15 }
0x2aef   : > { %8208 = vmatmul.mubr.msk.f32.vlgmr.msra.gmra.mxu1 %vm805_vm1, %v5659_v10  ;;  %v5946_v10 = vrot.slane %v9703_v31, %v9461_v40  ;;  %v7552_v40 = vld [vmem:[%s10482_s13 + $0x68] sm:$0xff]  ;;  %v7551_v31 = vld [vmem:[%s10482_s13 + $0x60] sm:$0xff] }
0x2af0   : > { %8236 = vmatprep.mubr.msk.f32.mxu1 %vm8803_vm4, %v8802_v15  ;;  %8229 = vmatpush3.msra.mxu1 %v5952_v62 }
0x2af1   : > { %8230 = vmatprep.subr.mxu1 %v8802_v15 }
0x2af2   : > { %8231 = vmatpush3.msra.mxu1 %v5951_v33 }
0x2af3   : > { %8232 = vmatprep.subr.mxu1 %v8802_v15 }
0x2af4   : > { %8233 = vmatpush3.msra.mxu1 %v5950_v49 }
0x2af5   : > { %8234 = vmatprep.subr.mxu1 %v8802_v15 }
0x2ba7   : > { %v5654_v11 = vpop.f32.mrf.mxu1 }
0x2ba9   : > { %v8202_v30 = vpop.f32.mrf.mxu1 }
0x2baf   : > { %v5736_v13 = vpop.f32.mrf.mxu1 }
0x2bb0   : > { %v5740_v16 = vmul.f32 0.35355338, %v5736_v13  ;;  %v7554_v13 = vld [vmem:[%s10482_s13 + $0x78] sm:$0xff] }
0x2bb1   : > { %v8209_v17 = vpop.f32.mrf.mxu1 }
0x2bb2   : > { %v5741_v18 = vadd.f32 %v5740_v16, %v9111_v24  ;;  %v7550_v16 = vld [vmem:[%s10482_s13 + $0x58] sm:$0xff]  ;;  %v7549_v17 = vld [vmem:[%s10482_s13 + $0x50] sm:$0xff] }
0x2bb4   : > { %v5742_v19 = vsel %vm899_vm2, %v5741_v18, -inf }
0x2bb5   : > { %5743 = vmax.xlane.f32.xlu1 %v5742_v19  ;;  %v7547_v19 = vld [vmem:[%s10482_s13 + $0x40] sm:$0xff] }
0x2bc6   : > { %5753 = vrot.lane.b32.xlu1 %v9845_v55, %s10566_s21 }
0x2bca   : > { %5833 = vrot.lane.b32.xlu1 %v5480_v45, %s10571_s0 }
0x2c3e   : > { %v5744_v20 = vpop.xlane.xlu1 %5743 }
0x2c3f   : > { %v5745_v39 = vsub.f32 %v5741_v18, %v5744_v20  ;;  %v7548_v18 = vld [vmem:[%s10482_s13 + $0x48] sm:$0xff] }
0x2c40   : > { %v4086_v20 = vld [vmem:[#allocation9 + $0x18] sm:$0xf] }
0x2c41   : > { %v5746_v28 = vmul.f32 1.442695, %v5745_v39  ;;  %v5956_v39 = vrot.slane %v4086_v20, %v9067_v8 }
0x2c42   : > { %v5754_v55 = vpop.permute.xlu1 %5753 }
0x2c43   : > { %8495 = vpow2.f32 %v5746_v28 }
0x2c46   : > { %v5834_v52 = vpop.permute.xlu1 %5833 }
0x2c47   : > { %v5844_v42 = vsel %vm805_vm1, %v9911_v44, %v5834_v52  ;;  %vm7255_vm1 = vcmask 392192  }
0x2c50   : > { %v8496_v63 = vpop.eup %8495 }
0x2c51   : > { %v5748_v34 = vsel %vm899_vm2, %v8496_v63, 0.0 }
0x2c52   : > { %5749 = vadd.xlane.f32.xlu0 %v5748_v34 }
0x2c68   : > { %5755 = vrot.lane.b32.xlu0 %v9843_v53, %s10566_s21  ;;  %v7528_v53 = vld [vmem:[%s10480_s11 + $0x38] sm:$0xff] }
0x2c6c   : > { %5837 = vrot.lane.b32.xlu0 %v5654_v11, %s10572_s5 }
0x2cdb   : > { %v5750_v24 = vpop.xlane.xlu0 %5749 }
0x2cdc   : > { %8497 = vrcp.f32 %v5750_v24 }
0x2cdf   : > { %v5756_v2 = vpop.permute.xlu0 %5755 }
0x2ce0   : > { %8211 = vmatpush3.msra.mxu0 %v5756_v2 }
0x2ce1   : > { %8212 = vmatprep.subr.mxu0 %v8802_v15 }
0x2ce2   : > { %8213 = vmatpush3.msra.mxu0 %v5754_v55 }
0x2ce3   : > { %8217 = vmatprep.subr.mxu0 %v8802_v15  ;;  %v5838_v41 = vpop.permute.xlu0 %5837 }
0x2ce4   : > { %v5845_v43 = vsel %vm899_vm2, %v5844_v42, %v5838_v41 }
0x2ce9   : > { %v8498_v12 = vpop.eup %8497 }
0x2cea   : > { %v5752_v23 = vmul.f32 %v8498_v12, %v8496_v63 }
0x2cec   : > { %8215 = vmatmul.mubr.msk.f32.vlgmr.msra.gmra.mxu0 %vm899_vm2, %v5752_v23 }
0x2ced   : > { %8225 = vmatprep.mubr.msk.f32.mxu0 %vm8803_vm4, %v8802_v15  ;;  %8218 = vmatpush3.msra.mxu0 %v7528_v53 }
0x2cee   : > { %8219 = vmatprep.subr.mxu0 %v8802_v15 }
0x2cef   : > { %8220 = vmatpush3.msra.mxu0 %v7527_v25 }
0x2cf0   : > { %8221 = vmatprep.subr.mxu0 %v8802_v15 }
0x2cf1   : > { %8222 = vmatpush3.msra.mxu0 %v7526_v32 }
0x2cf2   : > { %8223 = vmatprep.subr.mxu0 %v8802_v15 }
0x2cf3   : > { %8224 = vmatpush3.msra.mxu0 %v7525_v14  ;;  %v6051_v14 = vrot.slane %v4086_v20, %v9228_v27 }
0x2cf4   : > { %8239 = vmatprep.subr.mxu0 %v8802_v15 }
0x2dac   : > { %v5828_v36 = vpop.f32.mrf.mxu0 }
0x2dad   : > { %5841 = vrot.lane.b32.xlu1 %v5828_v36, %s10573_s20 }
0x2dae   : > { %v8216_v37 = vpop.f32.mrf.mxu0 }
0x2e1f   : > { %v5842_v35 = vpop.permute.xlu1 %5841 }
0x2e20   : > { %v5846_v45 = vsel %vm1649_vm3, %v5845_v43, %v5842_v35  ;;  %vm7258_vm3 = vcmask 564224  }
0x2e21   : > { %8226 = vmatmul.mubr.msk.f32.vlgmr.msra.gmra.mxu0 %vm713_vm0, %v5846_v45 }
0x2e22   : > { %8255 = vmatprep.mubr.msk.f32.mxu0 %vm8803_vm4, %v8802_v15  ;;  %8240 = vmatpush3.msra.mxu0 %v7554_v13  ;;  %vm7260_vm4 = vcmask 785408  }
0x2e23   : > { %8241 = vmatprep.subr.mxu0 %v8802_v15 }
0x2e24   : > { %8242 = vmatpush3.msra.mxu0 %v7553_v38 }
0x2e25   : > { %8243 = vmatprep.subr.mxu0 %v8802_v15 }
0x2e26   : > { %8244 = vmatpush3.msra.mxu0 %v7552_v40 }
0x2e27   : > { %8245 = vmatprep.subr.mxu0 %v8802_v15 }
0x2e28   : > { %8246 = vmatpush3.msra.mxu0 %v7551_v31 }
0x2e29   : > { %8247 = vmatprep.subr.mxu0 %v8802_v15 }
0x2e2a   : > { %8248 = vmatpush3.msra.mxu0 %v7550_v16 }
0x2e2b   : > { %8249 = vmatprep.subr.mxu0 %v8802_v15 }
0x2e2c   : > { %8250 = vmatpush3.msra.mxu0 %v7549_v17 }
0x2e2d   : > { %8251 = vmatprep.subr.mxu0 %v8802_v15 }
0x2e2e   : > { %8252 = vmatpush3.msra.mxu0 %v7548_v18 }
0x2e2f   : > { %8253 = vmatprep.subr.mxu0 %v8802_v15 }
0x2e30   : > { %8254 = vmatpush3.msra.mxu0 %v7547_v19 }
0x2ee1   : > { %v5920_v3 = vpop.f32.mrf.mxu0 }
0x2ee2   : > { %v5921_v26 = vadd.f32 %v5920_v3, %v5850_v47 }
0x2ee3   : > { %v8227_v54 = vpop.f32.mrf.mxu0 }
0x2ee4   : > { %v5924_v5 = vadd.f32 %v5921_v26, %v9837_v51  ;;  %v5949_v51 = vld [vmem:[#allocation7 + $0x20] sm:$0xff]  ;;  %v6157_v26 = vld [vmem:[#allocation10 + $0x38] sm:$0xff]  ;;  %v6156_v54 = vld [vmem:[#allocation10 + $0x30] sm:$0xff] }
0x2ee5   : > { %8235 = vmatpush3.msra.mxu1 %v5949_v51  ;;  %v6142_v51 = vrot.slane %v4086_v20, %v9240_v21 }
0x2ee6   : > { %v5925_v44 = vsel %vm713_vm0, %v5924_v5, 0.0  ;;  %6204 = vmatprep.subr.mxu1 %v6157_v26 }
0x2ee7   : > { %5926 = vadd.xlane.f32.xlu0 %v5925_v44  ;;  %v6154_v44 = vld [vmem:[#allocation10 + $0x20] sm:$0xff] }
0x2f70   : > { %v5927_v56 = vpop.xlane.xlu0 %5926 }
0x2f71   : > { %v5928_v57 = vmul.f32 0.03125, %v5927_v56  ;;  %v6153_v56 = vld [vmem:[#allocation10 + $0x18] sm:$0xff] }
0x2f73   : > { %v5929_v58 = vsub.f32 %v5924_v5, %v5928_v57  ;;  %v6155_v5 = vld [vmem:[#allocation10 + $0x28] sm:$0xff]  ;;  %v6152_v57 = vld [vmem:[#allocation10 + $0x10] sm:$0xff] }
0x2f75   : > { %v5930_v59 = vmul.f32 %v5929_v58, %v5929_v58 }
0x2f77   : > { %v5931_v60 = vsel %vm713_vm0, %v5930_v59, 0.0  ;;  %v6150_v59 = vld [vmem:[#allocation10] sm:$0xff] }
0x2f78   : > { %5932 = vadd.xlane.f32.xlu1 %v5931_v60  ;;  %v6254_v60 = vld [vmem:[#allocation12 + $0x18] sm:$0xff] }
0x3001   : > { %v5933_v9 = vpop.xlane.xlu1 %5932 }
0x3002   : > { %v5934_v50 = vmul.f32 0.03125, %v5933_v9 }
0x3004   : > { %v5935_v29 = vadd.f32 1e-12, %v5934_v50  ;;  %v6147_v50 = vrot.slane %v4086_v20, %v9243_v22  ;;  %v6149_v22 = vld [vmem:[#allocation13] sm:$0x77] }
0x3005   : > { %v6162_v38 = vrot.slane %v6149_v22, %v9067_v8 }
0x3006   : > { %8499 = vrsqrt.f32 %v5935_v29 }
0x3007   : > { %v6172_v31 = vrot.slane %v6162_v38, %v9067_v8 }
0x3013   : > { %v8500_v1 = vpop.eup %8499 }
0x3014   : > { %v5937_v4 = vmul.f32 %v8500_v1, %v5929_v58  ;;  %v6151_v58 = vld [vmem:[#allocation10 + $0x8] sm:$0xff] }
0x3016   : > { %v5942_v11 = vmul.f32 %v5941_v0, %v5937_v4  ;;  %v6253_v4 = vld [vmem:[#allocation12 + $0x10] sm:$0xff] }
0x3018   : > { %v5947_v30 = vadd.f32 %v5946_v10, %v5942_v11  ;;  %v6252_v10 = vld [vmem:[#allocation12 + $0x8] sm:$0xff]  ;;  %v6251_v11 = vld [vmem:[#allocation12] sm:$0xff] }
0x301a   : > { %8237 = vmatmul.mubr.msk.f32.vlgmr.msra.gmra.mxu1 %vm713_vm0, %v5947_v30 }
0x301b   : > { %6244 = vmatprep.mubr.f32.mxu1 %v8802_v15  ;;  %6205 = vmatpush1.msra.mxu1 %v6156_v54 }
0x301c   : > { %6206 = vmatprep.subr.mxu1 %v6155_v5 }
0x301d   : > { %6207 = vmatpush1.msra.mxu1 %v6154_v44 }
0x301e   : > { %6208 = vmatprep.subr.mxu1 %v6153_v56 }
0x301f   : > { %6209 = vmatpush1.msra.mxu1 %v6152_v57 }
0x3020   : > { %6210 = vmatprep.subr.mxu1 %v6151_v58 }
0x3021   : > { %6211 = vmatpush1.msra.mxu1 %v6150_v59 }
0x3022   : > { %8258 = vmatprep.subr.mxu1 %v6254_v60 }
0x30da   : > { %v6026_v28 = vpop.f32.mrf.mxu1 }
0x30db   : > { %v6027_v63 = vadd.f32 %v6026_v28, %v5956_v39 }
0x30dc   : > { %v8238_v34 = vpop.f32.mrf.mxu1 }
0x30dd   : > { %v6030_v24 = vmul.f32 %v6027_v63, %v6027_v63 }
0x30df   : > { %v6031_v2 = vmul.f32 %v6030_v24, %v6027_v63 }
0x30e1   : > { %v6032_v55 = vmul.f32 0.044715, %v6031_v2 }
0x30e3   : > { %v6033_v12 = vadd.f32 %v6032_v55, %v6027_v63 }
0x30e5   : > { %v6034_v23 = vmul.f32 0.7978846, %v6033_v12 }
0x30e7   : > { %8501 = vtanh.f32 %v6034_v23 }
0x30f4   : > { %v8502_v53 = vpop.eup %8501 }
0x30f5   : > { %v6036_v25 = vadd.f32 1.0, %v8502_v53 }
0x30f7   : > { %v6037_v15 = vmul.f32 0.5, %v6036_v25 }
0x30f9   : > { %v6038_v32 = vmul.f32 %v6037_v15, %v6027_v63 }
0x30fb   : > { %8256 = vmatmul.mubr.msk.f32.vlgmr.msra.gmra.mxu0 %vm1897_vm5, %v6038_v32 }
0x31bb   : > { %v6121_v36 = vpop.f32.mrf.mxu0 }
0x31bc   : > { %v6122_v37 = vadd.f32 %v6121_v36, %v6051_v14 }
0x31bd   : > { %v8257_v52 = vpop.f32.mrf.mxu0 }
0x31be   : > { %v6125_v41 = vadd.f32 %v6122_v37, %v5947_v30  ;;  %v8804_v30 = vmov 1966171168  }
0x31bf   : > { %v6337_v13 = vunpack.c.l.s4 %v8804_v30 }
0x31c0   : > { %v6126_v42 = vsel %vm713_vm0, %v6125_v41, 0.0 }
0x31c1   : > { %6127 = vadd.xlane.f32.xlu0 %v6126_v42  ;;  %v6338_v40 = vunpack.c.0.s8 %v6337_v13 }
0x324a   : > { %v6128_v43 = vpop.xlane.xlu0 %6127 }
0x324b   : > { %v6129_v35 = vmul.f32 0.03125, %v6128_v43 }
0x324d   : > { %v6130_v45 = vsub.f32 %v6125_v41, %v6129_v35 }
0x324f   : > { %v6131_v47 = vmul.f32 %v6130_v45, %v6130_v45 }
0x3251   : > { %v6132_v3 = vsel %vm713_vm0, %v6131_v47, 0.0 }
0x3252   : > { %6133 = vadd.xlane.f32.xlu0 %v6132_v3 }
0x32db   : > { %v6134_v62 = vpop.xlane.xlu0 %6133 }
0x32dc   : > { %v6135_v33 = vmul.f32 0.03125, %v6134_v62 }
0x32de   : > { %v6136_v49 = vadd.f32 1e-12, %v6135_v33 }
0x32e0   : > { %8503 = vrsqrt.f32 %v6136_v49 }
0x32ed   : > { %v8504_v9 = vpop.eup %8503 }
0x32ee   : > { %v6138_v29 = vmul.f32 %v8504_v9, %v6130_v45 }
0x32f0   : > { %v6143_v0 = vmul.f32 %v6142_v51, %v6138_v29  ;;  %v6459_v51 = vrot.slane %v6149_v22, %v9240_v21 }
0x32f2   : > { %v10026_v1 = vadd.f32 %v6147_v50, %v6143_v0 }
0x32f4   : > { %7556 = vmatmul.mubr.msk.f32.vlgmr.msra.gmra.mxu1 %vm713_vm0, %v10026_v1 }
0x32f5   : > { %8259 = vmatpush3.msra.mxu1 %v6254_v60  ;;  %8266 = vmatprep.mubr.msk.f32.mxu1 %vm713_vm0, %v9467_v46  ;;  %v6341_v46 = vsub.s32 %v6338_v40, %v9064_v7 }
0x32f6   : > { %8260 = vmatprep.subr.mxu1 %v6253_v4 }
0x32f7   : > { %8261 = vmatpush3.msra.mxu1 %v6253_v4 }
0x32f8   : > { %8262 = vmatprep.subr.mxu1 %v6252_v10 }
0x32f9   : > { %8263 = vmatpush3.msra.mxu1 %v6252_v10 }
0x32fa   : > { %8264 = vmatprep.subr.mxu1 %v6251_v11 }
0x32fb   : > { %8265 = vmatpush3.msra.mxu1 %v6251_v11 }
0x32fc   : > { %8267 = vmatmul.mubr.msk.f32.vlgmr.msra.gmra.mxu1 %vm713_vm0, %v9476_v61  ;;  %v6258_v61 = vrot.slane %v6149_v22, %v9228_v27 }
0x33b4   : > { %v6246_v16 = vpop.f32.mrf.mxu1 }
0x33b5   : > { %v6247_v17 = vadd.f32 %v6246_v16, %v6172_v31 }
0x33b6   : > { %v10037_v63 = vpop.f32.mrf.mxu1 }
0x33b7   : > { %v6335_v18 = vcombine.high %v6247_v17, %v6247_v17  ;;  %v6342_v19 = vrot.slane %v6247_v17, %v6341_v46 }
0x33b9   : > { %v6349_v20 = vrot.slane %v6335_v18, %v6341_v46  ;;  %v6350_v39 = vcombine.high %v6342_v19, %v6342_v19  ;;  %v6358_v28 = vrot.slane %v6342_v19, %v6341_v46 }
0x33bb   : > { %v6351_v34 = vcombine.high %v6349_v20, %v6349_v20  ;;  %v6365_v24 = vrot.slane %v6349_v20, %v6341_v46  ;;  %v6372_v2 = vrot.slane %v6350_v39, %v6341_v46  ;;  %v6380_v55 = vcombine.high %v6358_v28, %v6358_v28 }
0x33bc   : > { %v10041_v12 = vrot.slane %v6358_v28, %v9067_v8  ;;  %v8268_v23 = vpop.f32.mrf.mxu1 }
0x33bd   : > { %v6379_v53 = vrot.slane %v6351_v34, %v6341_v46  ;;  %v6381_v25 = vcombine.high %v6365_v24, %v6365_v24  ;;  %v6382_v15 = vcombine.high %v6372_v2, %v6372_v2  ;;  %v10044_v32 = vrot.slane %v6372_v2, %v9067_v8 }
0x33be   : > { %v6395_v14 = vrot.slane %v6380_v55, %v9067_v8  ;;  %v6331_v36 = vadd.f32 %v8268_v23, %v6258_v61  ;;  %v6325_v37 = vpop.f32.mrf.mxu1  ;;  %v6403_v41 = vrot.slane %v6365_v24, %v9067_v8 }
0x33bf   : > { %v6383_v52 = vcombine.high %v6379_v53, %v6379_v53  ;;  %v6399_v27 = vrot.slane %v6382_v15, %v9067_v8  ;;  %v6407_v42 = vrot.slane %v6379_v53, %v9067_v8  ;;  %v6411_v43 = vrot.slane %v6381_v25, %v9067_v8 }
0x33c0   : > { %v10051_v35 = vadd.f32 %v6325_v37, %v6258_v61  ;;  %v6425_v45 = vadd.f32 %v10041_v12, %v6331_v36  ;;  %v6427_v47 = vadd.f32 %v10044_v32, %v6331_v36  ;;  %v6429_v26 = vadd.f32 %v6395_v14, %v6331_v36 }
0x33c1   : > { %v6415_v3 = vrot.slane %v6383_v52, %v9067_v8  ;;  %v6431_v54 = vadd.f32 %v6399_v27, %v6331_v36  ;;  %v6435_v5 = vadd.f32 %v6407_v42, %v6331_v36  ;;  %v6433_v44 = vadd.f32 %v6403_v41, %v6331_v36 }
0x33c2   : > { %8505 = vtanh.f32 %v6425_v45  ;;  %v6434_v56 = vadd.f32 %v6407_v42, %v10051_v35  ;;  %v6428_v57 = vadd.f32 %v6395_v14, %v10051_v35  ;;  %v6436_v58 = vadd.f32 %v6411_v43, %v10051_v35 }
0x33c3   : > { %8507 = vtanh.f32 %v6427_v47  ;;  %v6437_v59 = vadd.f32 %v6411_v43, %v6331_v36  ;;  %v6438_v60 = vadd.f32 %v6415_v3, %v10051_v35  ;;  %v6432_v62 = vadd.f32 %v6403_v41, %v10051_v35 }
0x33c4   : > { %8509 = vtanh.f32 %v6429_v26  ;;  %v6439_v33 = vadd.f32 %v6415_v3, %v6331_v36  ;;  %v6430_v49 = vadd.f32 %v6399_v27, %v10051_v35  ;;  %v6424_v53 = vadd.f32 %v10041_v12, %v10051_v35 }
0x33c5   : > { %8511 = vtanh.f32 %v6433_v44  ;;  %v6426_v25 = vadd.f32 %v10044_v32, %v10051_v35 }
0x33c6   : > { %8513 = vtanh.f32 %v6428_v57 }
0x33c7   : > { %8515 = vtanh.f32 %v6432_v62 }
0x33c8   : > { %8517 = vtanh.f32 %v6430_v49 }
0x33c9   : > { %8519 = vtanh.f32 %v6434_v56 }
0x33ca   : > { %8521 = vtanh.f32 %v6436_v58 }
0x33cb   : > { %8523 = vtanh.f32 %v6431_v54 }
0x33cc   : > { %8525 = vtanh.f32 %v6435_v5 }
0x33cd   : > { %8527 = vtanh.f32 %v6437_v59 }
0x33ce   : > { %8529 = vtanh.f32 %v6438_v60 }
0x33cf   : > { %v8506_v9 = vpop.eup %8505  ;;  %8531 = vtanh.f32 %v6439_v33 }
0x33d0   : > { %v8508_v50 = vpop.eup %8507  ;;  %v6461_v29 = vmul.f32 %v8506_v9, %v6459_v51  ;;  %8533 = vtanh.f32 %v6424_v53 }
0x33d1   : > { %v6463_v0 = vmul.f32 %v8508_v50, %v6459_v51  ;;  %v8510_v4 = vpop.eup %8509  ;;  %8535 = vtanh.f32 %v6426_v25 }
0x33d2   : > { %6657 = vrot.lane.b32.xlu0 %v6461_v29, %s10574_s2  ;;  %v8512_v10 = vpop.eup %8511  ;;  %v6465_v30 = vmul.f32 %v8510_v4, %v6459_v51  ;;  %v6479_v12 = vsel %vm713_vm0, %v6461_v29, 0.0 }
0x33d3   : > { %6661 = vrot.lane.b32.xlu1 %v6463_v0, %s10574_s2  ;;  %v8514_v11 = vpop.eup %8513  ;;  %v6469_v16 = vmul.f32 %v8512_v10, %v6459_v51  ;;  %v6485_v32 = vsel %vm713_vm0, %v6463_v0, 0.0 }
0x33d4   : > { %v8516_v13 = vpop.eup %8515  ;;  %v6464_v21 = vmul.f32 %v8514_v11, %v6459_v51  ;;  %v6491_v52 = vsel %vm713_vm0, %v6465_v30, 0.0 }
0x33d5   : > { %v8518_v22 = vpop.eup %8517  ;;  %v6468_v38 = vmul.f32 %v8516_v13, %v6459_v51  ;;  %v6503_v27 = vsel %vm713_vm0, %v6469_v16, 0.0 }
0x33d6   : > { %6850 = vrot.lane.b32.xlu0 %v6461_v29, %s10568_s26  ;;  %v8520_v40 = vpop.eup %8519  ;;  %v10067_v31 = vmul.f32 %v8518_v22, %v6459_v51  ;;  %v6488_v43 = vsel %vm713_vm0, %v6464_v21, 0.0 }
0x33d7   : > { %6665 = vrot.lane.b32.xlu1 %v6465_v30, %s10574_s2  ;;  %v8522_v46 = vpop.eup %8521  ;;  %v10069_v17 = vmul.f32 %v8520_v40, %v6459_v51  ;;  %v6500_v35 = vsel %vm713_vm0, %v6468_v38, 0.0  ;;  %v6548_v40 = vand.u32 127, %v709_v6 }
0x33d8   : > { %v8524_v18 = vpop.eup %8523  ;;  %v10072_v19 = vmul.f32 %v8522_v46, %v6459_v51  ;;  %v6494_v33 = vsel %vm713_vm0, %v10067_v31, 0.0 }
0x33d9   : > { %v8526_v20 = vpop.eup %8525  ;;  %v10075_v39 = vmul.f32 %v8524_v18, %v6459_v51  ;;  %v6506_v9 = vsel %vm713_vm0, %v10069_v17, 0.0  ;;  %v6553_v46 = vadd.s32 4294967288, %v6548_v40  ;;  %v10217_v18 = vsub.s32 %v6548_v40, %v9064_v7 }
0x33da   : > { %7043 = vrot.lane.b32.xlu0 %v6461_v29, %s8805_s24  ;;  %v8528_v28 = vpop.eup %8527  ;;  %v10077_v61 = vmul.f32 %v8526_v20, %v6459_v51 }
0x33db   : > { %6673 = vrot.lane.b32.xlu1 %v6469_v16, %s10574_s2  ;;  %v8530_v34 = vpop.eup %8529  ;;  %v10079_v24 = vmul.f32 %v8528_v28, %v6459_v51  ;;  %v6497_v26 = vsel %vm713_vm0, %v10075_v39, 0.0  ;;  %v10220_v20 = vsub.s32 %v6553_v46, %v9064_v7 }
0x33dc   : > { %v8532_v2 = vpop.eup %8531  ;;  %v10081_v55 = vmul.f32 %v8530_v34, %v6459_v51  ;;  %v6509_v5 = vsel %vm713_vm0, %v10077_v61, 0.0 }
0x33dd   : > { %v10084_v23 = vmul.f32 %v8532_v2, %v6459_v51  ;;  %v8534_v15 = vpop.eup %8533  ;;  %v6515_v56 = vsel %vm713_vm0, %v10079_v24, 0.0 }
0x33de   : > { %v6460_v14 = vmul.f32 %v8534_v15, %v6459_v51  ;;  %v8536_v36 = vpop.eup %8535 }
0x33df   : > { %6854 = vrot.lane.b32.xlu1 %v6463_v0, %s10568_s26  ;;  %v6462_v37 = vmul.f32 %v8536_v36, %v6459_v51 }
0x33e0   : > { %v6476_v41 = vsel %vm713_vm0, %v6460_v14, 0.0 }
0x33e1   : > { %v6482_v42 = vsel %vm713_vm0, %v6462_v37, 0.0 }
0x33e3   : > { %6858 = vrot.lane.b32.xlu1 %v6465_v30, %s10568_s26 }
0x33e7   : > { %6866 = vrot.lane.b32.xlu1 %v6469_v16, %s10568_s26 }
0x33eb   : > { %7047 = vrot.lane.b32.xlu1 %v6463_v0, %s8805_s24  ;;  %v6512_v0 = vsel %vm713_vm0, %v10072_v19, 0.0 }
0x33ef   : > { %7051 = vrot.lane.b32.xlu1 %v6465_v30, %s8805_s24 }
0x33f3   : > { %7059 = vrot.lane.b32.xlu1 %v6469_v16, %s8805_s24 }
0x33f7   : > { %6655 = vrot.lane.b32.xlu1 %v6460_v14, %s10574_s2 }
0x33f9   : > { %6480 = vadd.xlane.f32.xlu0 %v6479_v12 }
0x33fb   : > { %6659 = vrot.lane.b32.xlu1 %v6462_v37, %s10574_s2 }
0x33fd   : > { %6486 = vadd.xlane.f32.xlu0 %v6485_v32 }
0x33ff   : > { %6848 = vrot.lane.b32.xlu1 %v6460_v14, %s10568_s26 }
0x3401   : > { %6492 = vadd.xlane.f32.xlu0 %v6491_v52 }
0x3403   : > { %6852 = vrot.lane.b32.xlu1 %v6462_v37, %s10568_s26 }
0x3405   : > { %6504 = vadd.xlane.f32.xlu0 %v6503_v27 }
0x3407   : > { %7041 = vrot.lane.b32.xlu1 %v6460_v14, %s8805_s24 }
0x340b   : > { %7045 = vrot.lane.b32.xlu1 %v6462_v37, %s8805_s24 }
0x341b   : > { %6663 = vrot.lane.b32.xlu0 %v6464_v21, %s10574_s2 }
0x341f   : > { %6671 = vrot.lane.b32.xlu0 %v6468_v38, %s10574_s2 }
0x3423   : > { %6856 = vrot.lane.b32.xlu0 %v6464_v21, %s10568_s26 }
0x3427   : > { %6864 = vrot.lane.b32.xlu0 %v6468_v38, %s10568_s26 }
0x342b   : > { %7049 = vrot.lane.b32.xlu0 %v6464_v21, %s8805_s24 }
0x342f   : > { %6477 = vadd.xlane.f32.xlu1 %v6476_v41  ;;  %7057 = vrot.lane.b32.xlu0 %v6468_v38, %s8805_s24 }
0x3433   : > { %6483 = vadd.xlane.f32.xlu1 %v6482_v42  ;;  %6667 = vrot.lane.b32.xlu0 %v10067_v31, %s10574_s2 }
0x3437   : > { %6489 = vadd.xlane.f32.xlu1 %v6488_v43  ;;  %6675 = vrot.lane.b32.xlu0 %v10069_v17, %s10574_s2 }
0x343b   : > { %6501 = vadd.xlane.f32.xlu1 %v6500_v35  ;;  %6679 = vrot.lane.b32.xlu0 %v10072_v19, %s10574_s2 }
0x343f   : > { %6860 = vrot.lane.b32.xlu0 %v10067_v31, %s10568_s26 }
0x3443   : > { %6868 = vrot.lane.b32.xlu0 %v10069_v17, %s10568_s26 }
0x3444   : > { %v10167_v59 = vpop.permute.xlu0 %6657 }
0x3445   : > { %v6662_v45 = vpop.permute.xlu1 %6661 }
0x3446   : > { %v6712_v6 = vsel %vm713_vm0, %v6662_v45, 0.0 }
0x3447   : > { %6872 = vrot.lane.b32.xlu0 %v10072_v19, %s10568_s26 }
0x3448   : > { %v10171_v62 = vpop.permute.xlu0 %6850 }
0x3449   : > { %v6666_v47 = vpop.permute.xlu1 %6665 }
0x344b   : > { %7053 = vrot.lane.b32.xlu0 %v10067_v31, %s8805_s24 }
0x344c   : > { %6669 = vrot.lane.b32.xlu1 %v10075_v39, %s10574_s2  ;;  %v10179_v51 = vpop.permute.xlu0 %7043 }
0x344d   : > { %v10149_v3 = vpop.permute.xlu1 %6673 }
0x344e   : > { %v6730_v37 = vsel %vm713_vm0, %v10149_v3, 0.0  ;;  %v6518_v3 = vsel %vm713_vm0, %v10081_v55, 0.0 }
0x344f   : > { %7061 = vrot.lane.b32.xlu0 %v10069_v17, %s8805_s24  ;;  %v6521_v17 = vsel %vm713_vm0, %v10084_v23, 0.0 }
0x3450   : > { %6677 = vrot.lane.b32.xlu1 %v10077_v61, %s10574_s2 }
0x3451   : > { %v10155_v54 = vpop.permute.xlu1 %6854 }
0x3452   : > { %v6905_v27 = vsel %vm713_vm0, %v10155_v54, 0.0  ;;  %v6706_v54 = vsel %vm713_vm0, %v10167_v59, 0.0  ;;  %v7092_v59 = vsel %vm713_vm0, %v10179_v51, 0.0 }
0x3453   : > { %7065 = vrot.lane.b32.xlu0 %v10072_v19, %s8805_s24 }
0x3454   : > { %6681 = vrot.lane.b32.xlu1 %v10079_v24, %s10574_s2 }
0x3455   : > { %v10159_v44 = vpop.permute.xlu1 %6858 }
0x3456   : > { %v6911_v42 = vsel %vm713_vm0, %v10159_v44, 0.0 }
0x3458   : > { %6862 = vrot.lane.b32.xlu1 %v10075_v39, %s10568_s26 }
0x3459   : > { %v10163_v57 = vpop.permute.xlu1 %6866 }
0x345a   : > { %v6923_v35 = vsel %vm713_vm0, %v10163_v57, 0.0 }
0x345c   : > { %6870 = vrot.lane.b32.xlu1 %v10077_v61, %s10568_s26 }
0x345d   : > { %v10165_v58 = vpop.permute.xlu1 %7047 }
0x345e   : > { %v7098_v45 = vsel %vm713_vm0, %v10165_v58, 0.0 }
0x3460   : > { %6874 = vrot.lane.b32.xlu1 %v10079_v24, %s10568_s26 }
0x3461   : > { %v10169_v60 = vpop.permute.xlu1 %7051 }
0x3464   : > { %7055 = vrot.lane.b32.xlu1 %v10075_v39, %s8805_s24 }
0x3465   : > { %v10175_v49 = vpop.permute.xlu1 %7059 }
0x3466   : > { %v7116_v44 = vsel %vm713_vm0, %v10175_v49, 0.0 }
0x3468   : > { %7063 = vrot.lane.b32.xlu1 %v10077_v61, %s8805_s24 }
0x3469   : > { %v10185_v50 = vpop.permute.xlu1 %6655 }
0x346c   : > { %7067 = vrot.lane.b32.xlu1 %v10079_v24, %s8805_s24 }
0x346d   : > { %v10191_v4 = vpop.permute.xlu1 %6659 }
0x3471   : > { %v10193_v11 = vpop.permute.xlu1 %6848 }
0x3472   : > { %6498 = vadd.xlane.f32.xlu0 %v6497_v26  ;;  %v7104_v26 = vsel %vm713_vm0, %v10169_v60, 0.0  ;;  %v6709_v60 = vsel %vm713_vm0, %v10191_v4, 0.0 }
0x3475   : > { %v10195_v13 = vpop.permute.xlu1 %6852 }
0x3476   : > { %6510 = vadd.xlane.f32.xlu0 %v6509_v5  ;;  %v6902_v51 = vsel %vm713_vm0, %v10195_v13, 0.0 }
0x3479   : > { %v10203_v22 = vpop.permute.xlu1 %7041 }
0x347a   : > { %6516 = vadd.xlane.f32.xlu0 %v6515_v56  ;;  %v6899_v56 = vsel %vm713_vm0, %v10171_v62, 0.0 }
0x347d   : > { %v10210_v31 = vpop.permute.xlu1 %7045 }
0x347e   : > { %v7095_v40 = vsel %vm713_vm0, %v10210_v31, 0.0 }
0x3482   : > { %v6481_v29 = vpop.xlane.xlu0 %6480 }
0x3483   : > { %v6557_v34 = vrot.slane %v6481_v29, %v10220_v20 }
0x3486   : > { %v6487_v10 = vpop.xlane.xlu0 %6486 }
0x3487   : > { %v6567_v24 = vrot.slane %v6487_v10, %v10220_v20  ;;  %v7089_v10 = vsel %vm713_vm0, %v10203_v22, 0.0 }
0x348a   : > { %v6493_v30 = vpop.xlane.xlu0 %6492 }
0x348b   : > { %v6576_v14 = vrot.slane %v6493_v30, %v10220_v20 }
0x348e   : > { %v10197_v21 = vpop.xlane.xlu0 %6504 }
0x3490   : > { %6495 = vadd.xlane.f32.xlu1 %v6494_v33  ;;  %6683 = vrot.lane.b32.xlu0 %v10081_v55, %s10574_s2 }
0x3492   : > { %v10205_v38 = vpop.permute.xlu0 %6663 }
0x3493   : > { %v6715_v62 = vsel %vm713_vm0, %v10205_v38, 0.0 }
0x3494   : > { %6507 = vadd.xlane.f32.xlu1 %v6506_v9  ;;  %6876 = vrot.lane.b32.xlu0 %v10081_v55, %s10568_s26  ;;  %v6896_v9 = vsel %vm713_vm0, %v10193_v11, 0.0 }
0x3496   : > { %v10212_v16 = vpop.permute.xlu0 %6671 }
0x3498   : > { %6513 = vadd.xlane.f32.xlu1 %v6512_v0  ;;  %7069 = vrot.lane.b32.xlu0 %v10081_v55, %s8805_s24  ;;  %v6703_v55 = vsel %vm713_vm0, %v10185_v50, 0.0  ;;  %v6727_v50 = vsel %vm713_vm0, %v10212_v16, 0.0 }
0x349a   : > { %v10223_v39 = vpop.permute.xlu0 %6856 }
0x349b   : > { %v6908_v4 = vsel %vm713_vm0, %v10223_v39, 0.0 }
0x349e   : > { %v6865_v36 = vpop.permute.xlu0 %6864 }
0x349f   : > { %v6920_v11 = vsel %vm713_vm0, %v6865_v36, 0.0 }
0x34a2   : > { %v7050_v41 = vpop.permute.xlu0 %7049 }
0x34a3   : > { %v7101_v13 = vsel %vm713_vm0, %v7050_v41, 0.0 }
0x34a6   : > { %v7058_v43 = vpop.permute.xlu0 %7057 }
0x34a7   : > { %v7113_v22 = vsel %vm713_vm0, %v7058_v43, 0.0 }
0x34a9   : > { %6685 = vrot.lane.b32.xlu1 %v10084_v23, %s10574_s2 }
0x34ad   : > { %6878 = vrot.lane.b32.xlu1 %v10084_v23, %s10568_s26 }
0x34b1   : > { %7071 = vrot.lane.b32.xlu1 %v10084_v23, %s8805_s24  ;;  %v6718_v23 = vsel %vm713_vm0, %v6666_v47, 0.0  ;;  %v6668_v47 = vpop.permute.xlu0 %6667 }
0x34b2   : > { %v6721_v39 = vsel %vm713_vm0, %v6668_v47, 0.0 }
0x34b5   : > { %v6676_v5 = vpop.permute.xlu0 %6675 }
0x34b7   : > { %6522 = vadd.xlane.f32.xlu0 %v6521_v17 }
0x34b8   : > { %v6478_v19 = vpop.xlane.xlu1 %6477 }
0x34b9   : > { %v6552_v28 = vrot.slane %v6478_v19, %v10217_v18  ;;  %v6680_v58 = vpop.permute.xlu0 %6679 }
0x34bb   : > { %6713 = vadd.xlane.f32.xlu0 %v6712_v6  ;;  %v6559_v7 = vsel %vm6558_vm6, %v6557_v34, %v6552_v28 }
0x34bc   : > { %v6484_v61 = vpop.xlane.xlu1 %6483 }
0x34bd   : > { %v6563_v2 = vrot.slane %v6484_v61, %v10217_v18  ;;  %v6861_v49 = vpop.permute.xlu0 %6860  ;;  %v6733_v61 = vsel %vm713_vm0, %v6676_v5, 0.0 }
0x34bf   : > { %v6568_v53 = vsel %vm6558_vm6, %v6567_v24, %v6563_v2  ;;  %6719 = vadd.xlane.f32.xlu0 %v6718_v23  ;;  %v6739_v23 = vsel %vm713_vm0, %v6680_v58, 0.0 }
0x34c0   : > { %v6624_v25 = vsel %vm6623_vm7, %v6568_v53, %v6559_v7  ;;  %v6490_v15 = vpop.xlane.xlu1 %6489 }
0x34c1   : > { %v6572_v12 = vrot.slane %v6490_v15, %v10217_v18  ;;  %v6869_v0 = vpop.permute.xlu0 %6868  ;;  %v6914_v15 = vsel %vm713_vm0, %v6861_v49, 0.0 }
0x34c2   : > { %v6926_v36 = vsel %vm713_vm0, %v6869_v0, 0.0 }
0x34c3   : > { %v6577_v32 = vsel %vm6558_vm6, %v6576_v14, %v6572_v12  ;;  %6731 = vadd.xlane.f32.xlu0 %v6730_v37 }
0x34c4   : > { %v10239_v52 = vsel %vm6625_vm8, %v6577_v32, %v6624_v25  ;;  %v10259_v57 = vpop.xlane.xlu1 %6501 }
0x34c5   : > { %v6873_v38 = vpop.permute.xlu0 %6872 }
0x34c7   : > { %6906 = vadd.xlane.f32.xlu0 %v6905_v27  ;;  %v6932_v27 = vsel %vm713_vm0, %v6873_v38, 0.0 }
0x34c8   : > { %v6670_v33 = vpop.permute.xlu1 %6669 }
0x34c9   : > { %v6724_v16 = vsel %vm713_vm0, %v6670_v33, 0.0  ;;  %v7054_v17 = vpop.permute.xlu0 %7053 }
0x34cb   : > { %6912 = vadd.xlane.f32.xlu0 %v6911_v42 }
0x34cc   : > { %v6678_v29 = vpop.permute.xlu1 %6677 }
0x34cd   : > { %v6736_v19 = vsel %vm713_vm0, %v6678_v29, 0.0  ;;  %v7062_v28 = vpop.permute.xlu0 %7061 }
0x34ce   : > { %v7119_v47 = vsel %vm713_vm0, %v7062_v28, 0.0 }
0x34cf   : > { %6924 = vadd.xlane.f32.xlu0 %v6923_v35  ;;  %v7107_v35 = vsel %vm713_vm0, %v7054_v17, 0.0 }
0x34d0   : > { %v6682_v30 = vpop.permute.xlu1 %6681 }
0x34d1   : > { %v6742_v31 = vsel %vm713_vm0, %v6682_v30, 0.0  ;;  %v7066_v2 = vpop.permute.xlu0 %7065 }
0x34d3   : > { %7099 = vadd.xlane.f32.xlu0 %v7098_v45 }
0x34d4   : > { %v6863_v46 = vpop.permute.xlu1 %6862 }
0x34d5   : > { %6519 = vadd.xlane.f32.xlu1 %v6518_v3  ;;  %v6917_v24 = vsel %vm713_vm0, %v6863_v46, 0.0  ;;  %v6590_v3 = vrot.slane %v10259_v57, %v10217_v18 }
0x34d7   : > { %7105 = vadd.xlane.f32.xlu0 %v7104_v26 }
0x34d8   : > { %v6871_v6 = vpop.permute.xlu1 %6870 }
0x34d9   : > { %6707 = vadd.xlane.f32.xlu1 %v6706_v54  ;;  %v6929_v7 = vsel %vm713_vm0, %v6871_v6, 0.0 }
0x34db   : > { %7117 = vadd.xlane.f32.xlu0 %v7116_v44 }
0x34dc   : > { %v6875_v34 = vpop.permute.xlu1 %6874 }
0x34dd   : > { %6900 = vadd.xlane.f32.xlu1 %v6899_v56  ;;  %v6935_v14 = vsel %vm713_vm0, %v6875_v34, 0.0  ;;  %v6594_v56 = vrot.slane %v10197_v21, %v10220_v20 }
0x34df   : > { %6704 = vadd.xlane.f32.xlu0 %v6703_v55  ;;  %v7125_v55 = vsel %vm713_vm0, %v7066_v2, 0.0 }
0x34e0   : > { %v7056_v53 = vpop.permute.xlu1 %7055 }
0x34e1   : > { %7093 = vadd.xlane.f32.xlu1 %v7092_v59  ;;  %v7110_v32 = vsel %vm713_vm0, %v7056_v53, 0.0  ;;  %v6595_v59 = vsel %vm6558_vm6, %v6594_v56, %v6590_v3 }
0x34e3   : > { %6710 = vadd.xlane.f32.xlu0 %v6709_v60 }
0x34e4   : > { %v7064_v12 = vpop.permute.xlu1 %7063 }
0x34e5   : > { %6716 = vadd.xlane.f32.xlu1 %v6715_v62  ;;  %v7122_v41 = vsel %vm713_vm0, %v7064_v12, 0.0 }
0x34e7   : > { %6897 = vadd.xlane.f32.xlu0 %v6896_v9 }
0x34e8   : > { %v7068_v42 = vpop.permute.xlu1 %7067 }
0x34e9   : > { %6728 = vadd.xlane.f32.xlu1 %v6727_v50  ;;  %v7128_v45 = vsel %vm713_vm0, %v7068_v42, 0.0 }
0x34eb   : > { %6903 = vadd.xlane.f32.xlu0 %v6902_v51 }
0x34ed   : > { %6909 = vadd.xlane.f32.xlu1 %v6908_v4 }
0x34ef   : > { %7090 = vadd.xlane.f32.xlu0 %v7089_v10 }
0x34f1   : > { %6921 = vadd.xlane.f32.xlu1 %v6920_v11 }
0x34f3   : > { %7096 = vadd.xlane.f32.xlu0 %v7095_v40 }
0x34f5   : > { %7102 = vadd.xlane.f32.xlu1 %v7101_v13 }
0x34f7   : > { %6725 = vadd.xlane.f32.xlu0 %v6724_v16 }
0x34f9   : > { %7114 = vadd.xlane.f32.xlu1 %v7113_v22 }
0x34fb   : > { %6737 = vadd.xlane.f32.xlu0 %v6736_v19  ;;  %v6499_v25 = vpop.xlane.xlu0 %6498 }
0x34fc   : > { %v6585_v5 = vrot.slane %v6499_v25, %v10220_v20 }
0x34fd   : > { %6722 = vadd.xlane.f32.xlu1 %v6721_v39 }
0x34ff   : > { %6743 = vadd.xlane.f32.xlu0 %v6742_v31  ;;  %v6511_v37 = vpop.xlane.xlu0 %6510 }
0x3500   : > { %v6603_v33 = vrot.slane %v6511_v37, %v10220_v20 }
0x3501   : > { %6734 = vadd.xlane.f32.xlu1 %v6733_v61 }
0x3503   : > { %6918 = vadd.xlane.f32.xlu0 %v6917_v24  ;;  %v6517_v43 = vpop.xlane.xlu0 %6516 }
0x3505   : > { %6740 = vadd.xlane.f32.xlu1 %v6739_v23 }
0x3507   : > { %6930 = vadd.xlane.f32.xlu0 %v6929_v7  ;;  %v6684_v26 = vpop.permute.xlu0 %6683 }
0x3508   : > { %v6745_v9 = vsel %vm713_vm0, %v6684_v26, 0.0 }
0x3509   : > { %6915 = vadd.xlane.f32.xlu1 %v6914_v15 }
0x350b   : > { %6936 = vadd.xlane.f32.xlu0 %v6935_v14  ;;  %v6877_v21 = vpop.permute.xlu0 %6876 }
0x350c   : > { %v6938_v4 = vsel %vm713_vm0, %v6877_v21, 0.0 }
0x350d   : > { %6927 = vadd.xlane.f32.xlu1 %v6926_v36 }
0x350f   : > { %7111 = vadd.xlane.f32.xlu0 %v7110_v32  ;;  %v7070_v30 = vpop.permute.xlu0 %7069 }
0x3510   : > { %v7131_v13 = vsel %vm713_vm0, %v7070_v30, 0.0 }
0x3511   : > { %6933 = vadd.xlane.f32.xlu1 %v6932_v27 }
0x3513   : > { %7123 = vadd.xlane.f32.xlu0 %v7122_v41 }
0x3515   : > { %7108 = vadd.xlane.f32.xlu1 %v7107_v35 }
0x3517   : > { %7129 = vadd.xlane.f32.xlu0 %v7128_v45 }
0x3519   : > { %v6496_v54 = vpop.xlane.xlu1 %6495  ;;  %7120 = vadd.xlane.f32.xlu1 %v7119_v47 }
0x351a   : > { %v6581_v44 = vrot.slane %v6496_v54, %v10217_v18 }
0x351c   : > { %v6586_v58 = vsel %vm6558_vm6, %v6585_v5, %v6581_v44 }
0x351d   : > { %v6628_v57 = vsel %vm6627_vm9, %v6586_v58, %v10239_v52  ;;  %v6508_v60 = vpop.xlane.xlu1 %6507  ;;  %7126 = vadd.xlane.f32.xlu1 %v7125_v55  ;;  %v6612_v52 = vrot.slane %v6517_v43, %v10220_v20 }
0x351e   : > { %v6630_v62 = vsel %vm6629_vm10, %v6595_v59, %v6628_v57  ;;  %v6599_v49 = vrot.slane %v6508_v60, %v10217_v18 }
0x3520   : > { %v6604_v50 = vsel %vm6558_vm6, %v6603_v33, %v6599_v49 }
0x3521   : > { %v6632_v29 = vsel %vm6631_vm11, %v6604_v50, %v6630_v62  ;;  %v6514_v51 = vpop.xlane.xlu1 %6513  ;;  %6746 = vadd.xlane.f32.xlu1 %v6745_v9 }
0x3522   : > { %v6608_v0 = vrot.slane %v6514_v51, %v10217_v18 }
0x3524   : > { %v6613_v10 = vsel %vm6558_vm6, %v6612_v52, %v6608_v0 }
0x3525   : > { %v6686_v11 = vpop.permute.xlu1 %6685  ;;  %6939 = vadd.xlane.f32.xlu1 %v6938_v4  ;;  %v6634_v38 = vsel %vm6633_vm12, %v6613_v10, %v6632_v29 }
0x3526   : > { %v6748_v40 = vsel %vm713_vm0, %v6686_v11, 0.0 }
0x3527   : > { %6749 = vadd.xlane.f32.xlu0 %v6748_v40 }
0x3529   : > { %v6879_v46 = vpop.permute.xlu1 %6878  ;;  %7132 = vadd.xlane.f32.xlu1 %v7131_v13 }
0x352a   : > { %v6941_v16 = vsel %vm713_vm0, %v6879_v46, 0.0 }
0x352b   : > { %6942 = vadd.xlane.f32.xlu0 %v6941_v16 }
0x352d   : > { %v7072_v17 = vpop.permute.xlu1 %7071 }
0x352e   : > { %v7134_v22 = vsel %vm713_vm0, %v7072_v17, 0.0 }
0x352f   : > { %7135 = vadd.xlane.f32.xlu0 %v7134_v22 }
0x3540   : > { %v6523_v19 = vpop.xlane.xlu0 %6522 }
0x3541   : > { %v6621_v23 = vrot.slane %v6523_v19, %v10220_v20 }
0x3544   : > { %v6714_v6 = vpop.xlane.xlu0 %6713 }
0x3545   : > { %v6783_v42 = vrot.slane %v6714_v6, %v10220_v20 }
0x3548   : > { %v6720_v39 = vpop.xlane.xlu0 %6719 }
0x3549   : > { %v6792_v47 = vrot.slane %v6720_v39, %v10220_v20 }
0x354c   : > { %v10327_v28 = vpop.xlane.xlu0 %6731 }
0x3550   : > { %v6907_v31 = vpop.xlane.xlu0 %6906 }
0x3551   : > { %v6976_v60 = vrot.slane %v6907_v31, %v10220_v20 }
0x3554   : > { %v6913_v61 = vpop.xlane.xlu0 %6912 }
0x3555   : > { %v6985_v21 = vrot.slane %v6913_v61, %v10220_v20 }
0x3558   : > { %v10329_v34 = vpop.xlane.xlu0 %6924 }
0x355c   : > { %v7100_v24 = vpop.xlane.xlu0 %7099 }
0x355e   : > { %v6520_v2 = vpop.xlane.xlu1 %6519 }
0x355f   : > { %v6617_v7 = vrot.slane %v6520_v2, %v10217_v18 }
0x3560   : > { %v7106_v53 = vpop.xlane.xlu0 %7105 }
0x3561   : > { %v6622_v25 = vsel %vm6558_vm6, %v6621_v23, %v6617_v7  ;;  %v7178_v16 = vrot.slane %v7106_v53, %v10220_v20 }
0x3562   : > { %v6708_v15 = vpop.xlane.xlu1 %6707  ;;  %v10335_v14 = vsel %vm6635_vm13, %v6622_v25, %v6634_v38  ;;  %v7169_v38 = vrot.slane %v7100_v24, %v10220_v20 }
0x3563   : > { %v6774_v43 = vrot.slane %v6708_v15, %v10220_v20  ;;  %v6810_v15 = vrot.slane %v10327_v28, %v10220_v20 }
0x3564   : > { %v10337_v36 = vpop.xlane.xlu0 %7117 }
0x3566   : > { %v6901_v12 = vpop.xlane.xlu1 %6900 }
0x3567   : > { %v6967_v33 = vrot.slane %v6901_v12, %v10220_v20 }
0x3568   : > { %v6705_v37 = vpop.xlane.xlu0 %6704 }
0x3569   : > { %v6770_v27 = vrot.slane %v6705_v37, %v10217_v18 }
0x356a   : > { %v7094_v32 = vpop.xlane.xlu1 %7093 }
0x356b   : > { %v6775_v3 = vsel %vm6558_vm6, %v6774_v43, %v6770_v27  ;;  %v7160_v40 = vrot.slane %v7094_v32, %v10220_v20 }
0x356c   : > { %v6711_v41 = vpop.xlane.xlu0 %6710 }
0x356d   : > { %v6779_v35 = vrot.slane %v6711_v41, %v10217_v18 }
0x356e   : > { %v6717_v45 = vpop.xlane.xlu1 %6716 }
0x356f   : > { %v6784_v26 = vsel %vm6558_vm6, %v6783_v42, %v6779_v35  ;;  %v6788_v54 = vrot.slane %v6717_v45, %v10217_v18 }
0x3570   : > { %v6839_v5 = vsel %vm6623_vm7, %v6784_v26, %v6775_v3  ;;  %v6898_v44 = vpop.xlane.xlu0 %6897 }
0x3571   : > { %v6793_v56 = vsel %vm6558_vm6, %v6792_v47, %v6788_v54  ;;  %v6963_v59 = vrot.slane %v6898_v44, %v10217_v18  ;;  %v7003_v54 = vrot.slane %v10329_v34, %v10220_v20 }
0x3572   : > { %v6840_v55 = vsel %vm6625_vm8, %v6793_v56, %v6839_v5  ;;  %v6729_v58 = vpop.xlane.xlu1 %6728 }
0x3573   : > { %v6968_v9 = vsel %vm6558_vm6, %v6967_v33, %v6963_v59  ;;  %v6806_v23 = vrot.slane %v6729_v58, %v10217_v18 }
0x3574   : > { %v6904_v57 = vpop.xlane.xlu0 %6903 }
0x3575   : > { %v6972_v62 = vrot.slane %v6904_v57, %v10217_v18  ;;  %v6811_v32 = vsel %vm6558_vm6, %v6810_v15, %v6806_v23 }
0x3576   : > { %v6910_v49 = vpop.xlane.xlu1 %6909 }
0x3577   : > { %v6977_v50 = vsel %vm6558_vm6, %v6976_v60, %v6972_v62  ;;  %v6981_v29 = vrot.slane %v6910_v49, %v10217_v18 }
0x3578   : > { %v7032_v51 = vsel %vm6623_vm7, %v6977_v50, %v6968_v9  ;;  %v7091_v52 = vpop.xlane.xlu0 %7090 }
0x3579   : > { %v6986_v0 = vsel %vm6558_vm6, %v6985_v21, %v6981_v29  ;;  %v7156_v30 = vrot.slane %v7091_v52, %v10217_v18  ;;  %v7196_v21 = vrot.slane %v10337_v36, %v10220_v20 }
0x357a   : > { %v7033_v4 = vsel %vm6625_vm8, %v6986_v0, %v7032_v51  ;;  %v6922_v10 = vpop.xlane.xlu1 %6921 }
0x357b   : > { %v7161_v17 = vsel %vm6558_vm6, %v7160_v40, %v7156_v30  ;;  %v6999_v47 = vrot.slane %v6922_v10, %v10217_v18  ;;  %v8538_v30 = vld [vmem:[%s9107_s1] sm:$0x1] }
0x357c   : > { %v7097_v11 = vpop.xlane.xlu0 %7096  ;;  %vm6524_vm14 = vcmp.eq.f32.partialorder %v8538_v30, 0.0 }
0x357d   : > { %v7165_v13 = vrot.slane %v7097_v11, %v10217_v18  ;;  %v7004_v44 = vsel %vm6558_vm6, %v7003_v54, %v6999_v47 }
0x357e   : > { %v7103_v46 = vpop.xlane.xlu1 %7102 }
0x357f   : > { %v7170_v22 = vsel %vm6558_vm6, %v7169_v38, %v7165_v13  ;;  %v7174_v19 = vrot.slane %v7103_v46, %v10217_v18  ;;  %v8806_v13 = vmov 0  }
0x3580   : > { %v7225_v6 = vsel %vm6623_vm7, %v7170_v22, %v7161_v17  ;;  %v6726_v39 = vpop.xlane.xlu0 %6725  ;;  %v6525_v46 = vsel %vm6524_vm14, 1, %v8806_v13 }
0x3581   : > { %v7179_v31 = vsel %vm6558_vm6, %v7178_v16, %v7174_v19  ;;  %v6801_v53 = vrot.slane %v6726_v39, %v10220_v20 }
0x3582   : > { %v7226_v61 = vsel %vm6625_vm8, %v7179_v31, %v7225_v6  ;;  %v7115_v24 = vpop.xlane.xlu1 %7114 }
0x3583   : > { %v7192_v33 = vrot.slane %v7115_v24, %v10217_v18 }
0x3584   : > { %v6738_v2 = vpop.xlane.xlu0 %6737 }
0x3585   : > { %v7197_v50 = vsel %vm6558_vm6, %v7196_v21, %v7192_v33  ;;  %v6819_v36 = vrot.slane %v6738_v2, %v10220_v20 }
0x3586   : > { %v6723_v7 = vpop.xlane.xlu1 %6722 }
0x3587   : > { %v6797_v25 = vrot.slane %v6723_v7, %v10217_v18 }
0x3588   : > { %v6744_v12 = vpop.xlane.xlu0 %6743 }
0x3589   : > { %v6802_v37 = vsel %vm6558_vm6, %v6801_v53, %v6797_v25  ;;  %v6828_v16 = vrot.slane %v6744_v12, %v10220_v20 }
0x358a   : > { %v6841_v27 = vsel %vm6627_vm9, %v6802_v37, %v6840_v55  ;;  %v6735_v41 = vpop.xlane.xlu1 %6734 }
0x358b   : > { %v6842_v42 = vsel %vm6629_vm10, %v6811_v32, %v6841_v27  ;;  %v6815_v11 = vrot.slane %v6735_v41, %v10217_v18 }
0x358c   : > { %v6919_v43 = vpop.xlane.xlu0 %6918 }
0x358d   : > { %v6994_v26 = vrot.slane %v6919_v43, %v10220_v20  ;;  %v6820_v17 = vsel %vm6558_vm6, %v6819_v36, %v6815_v11 }
0x358e   : > { %v6741_v35 = vpop.xlane.xlu1 %6740  ;;  %v6843_v7 = vsel %vm6631_vm11, %v6820_v17, %v6842_v42 }
0x358f   : > { %v6824_v38 = vrot.slane %v6741_v35, %v10217_v18 }
0x3590   : > { %v6931_v45 = vpop.xlane.xlu0 %6930 }
0x3591   : > { %v6829_v19 = vsel %vm6558_vm6, %v6828_v16, %v6824_v38  ;;  %v7012_v24 = vrot.slane %v6931_v45, %v10220_v20 }
0x3592   : > { %v6916_v3 = vpop.xlane.xlu1 %6915  ;;  %v6844_v37 = vsel %vm6633_vm12, %v6829_v19, %v6843_v7 }
0x3593   : > { %v6990_v28 = vrot.slane %v6916_v3, %v10217_v18 }
0x3594   : > { %v6937_v55 = vpop.xlane.xlu0 %6936 }
0x3595   : > { %v6995_v5 = vsel %vm6558_vm6, %v6994_v26, %v6990_v28  ;;  %v7021_v53 = vrot.slane %v6937_v55, %v10220_v20  ;;  %v8539_v55 = vld [vmem:[#allocation13] sm:$0x77] }
0x3596   : > { %v7034_v56 = vsel %vm6627_vm9, %v6995_v5, %v7033_v4  ;;  %v6928_v58 = vpop.xlane.xlu1 %6927 }
0x3597   : > { %v7035_v59 = vsel %vm6629_vm10, %v7004_v44, %v7034_v56  ;;  %v7008_v22 = vrot.slane %v6928_v58, %v10217_v18  ;;  %v6166_v58 = vrot.slane %v8539_v55, %v9307_v48 }
0x3598   : > { %v7112_v60 = vpop.xlane.xlu0 %7111 }
0x3599   : > { %v7187_v49 = vrot.slane %v7112_v60, %v10220_v20  ;;  %v7013_v25 = vsel %vm6558_vm6, %v7012_v24, %v7008_v22 }
0x359a   : > { %v6934_v57 = vpop.xlane.xlu1 %6933  ;;  %v7036_v26 = vsel %vm6631_vm11, %v7013_v25, %v7035_v59 }
0x359b   : > { %v7017_v6 = vrot.slane %v6934_v57, %v10217_v18 }
0x359c   : > { %v7124_v0 = vpop.xlane.xlu0 %7123 }
0x359d   : > { %v7022_v32 = vsel %vm6558_vm6, %v7021_v53, %v7017_v6  ;;  %v7205_v35 = vrot.slane %v7124_v0, %v10220_v20 }
0x359e   : > { %v7109_v62 = vpop.xlane.xlu1 %7108  ;;  %v7037_v56 = vsel %vm6633_vm12, %v7022_v32, %v7036_v26 }
0x359f   : > { %v7183_v34 = vrot.slane %v7109_v62, %v10217_v18 }
0x35a0   : > { %v7130_v40 = vpop.xlane.xlu0 %7129 }
0x35a1   : > { %v7188_v9 = vsel %vm6558_vm6, %v7187_v49, %v7183_v34  ;;  %v7214_v28 = vrot.slane %v7130_v40, %v10220_v20 }
0x35a2   : > { %v7227_v29 = vsel %vm6627_vm9, %v7188_v9, %v7226_v61  ;;  %v7121_v51 = vpop.xlane.xlu1 %7120  ;;  %v6529_v61 = vrot.slane %v6525_v46, %v9067_v8  ;;  %v6176_v9 = vrot.slane %v6166_v58, %v9067_v8 }
0x35a3   : > { %v7228_v52 = vsel %vm6629_vm10, %v7197_v50, %v7227_v29  ;;  %v7201_v15 = vrot.slane %v7121_v51, %v10217_v18 }
0x35a4   : > { %vm10420_vm15 = vcmp.eq.s32.totalorder %v6529_v61, 1 }
0x35a5   : > { %v7206_v5 = vsel %vm6558_vm6, %v7205_v35, %v7201_v15  ;;  %v6638_v8 = vsel %vm10420_vm15, -10000.0, %v10335_v14 }
0x35a6   : > { %v7127_v4 = vpop.xlane.xlu1 %7126  ;;  %v7229_v34 = vsel %vm6631_vm11, %v7206_v5, %v7228_v52 }
0x35a7   : > { %v7210_v27 = vrot.slane %v7127_v4, %v10217_v18 }
0x35a9   : > { %v7215_v57 = vsel %vm6558_vm6, %v7214_v28, %v7210_v27 }
0x35aa   : > { %v6747_v10 = vpop.xlane.xlu1 %6746  ;;  %v7230_v48 = vsel %vm6633_vm12, %v7215_v57, %v7229_v34 }
0x35ab   : > { %v6833_v2 = vrot.slane %v6747_v10, %v10217_v18 }
0x35ae   : > { %v6940_v39 = vpop.xlane.xlu1 %6939 }
0x35af   : > { %v7026_v45 = vrot.slane %v6940_v39, %v10217_v18 }
0x35b0   : > { %v6750_v31 = vpop.xlane.xlu0 %6749 }
0x35b1   : > { %v6837_v23 = vrot.slane %v6750_v31, %v10220_v20 }
0x35b2   : > { %v7133_v54 = vpop.xlane.xlu1 %7132 }
0x35b3   : > { %v6838_v12 = vsel %vm6558_vm6, %v6837_v23, %v6833_v2  ;;  %v7219_v59 = vrot.slane %v7133_v54, %v10217_v18 }
0x35b4   : > { %v6943_v41 = vpop.xlane.xlu0 %6942  ;;  %v6845_v42 = vsel %vm6635_vm13, %v6838_v12, %v6844_v37 }
0x35b5   : > { %v7030_v47 = vrot.slane %v6943_v41, %v10220_v20  ;;  %v6847_v3 = vsel %vm10420_vm15, -10000.0, %v6845_v42 }
0x35b6   : > { %7235 = vrot.lane.b32.xlu1 %v6847_v3, %s10572_s5  ;;  %s7427_s5 = sshll.u32 %s10581_s30, 3 }
0x35b7   : > { %v7031_v44 = vsel %vm6558_vm6, %v7030_v47, %v7026_v45 }
0x35b8   : > { %v7136_v60 = vpop.xlane.xlu0 %7135  ;;  %v7038_v33 = vsel %vm6635_vm13, %v7031_v44, %v7037_v56 }
0x35b9   : > { %v7223_v62 = vrot.slane %v7136_v60, %v10220_v20  ;;  %v7040_v49 = vsel %vm10420_vm15, -10000.0, %v7038_v33  ;;  %v6249_v20 = vadd.f32 %v10037_v63, %v6176_v9 }
0x35ba   : > { %7239 = vrot.lane.b32.xlu0 %v7040_v49, %s8805_s24 }
0x35bb   : > { %v7224_v21 = vsel %vm6558_vm6, %v7223_v62, %v7219_v59 }
0x35bc   : > { %v7231_v50 = vsel %vm6635_vm13, %v7224_v21, %v7230_v48 }
0x35bd   : > { %v7233_v18 = vsel %vm10420_vm15, -10000.0, %v7231_v50 }
0x35be   : > { %7250 = vrot.lane.b32.xlu0 %v10026_v1, %s10574_s2  ;;  %7243 = vrot.lane.b32.xlu1 %v7233_v18, %s10569_s25 }
0x35c2   : > { %7247 = vrot.lane.b32.xlu1 %v6249_v20, %s10568_s26  ;;  %s698_s26 = scalar_lea.vmem %s10487_s18, %s7427_s5 }
0x3628   : > { %v7236_v29 = vpop.permute.xlu1 %7235 }
0x3629   : > { %v7253_v0 = vsel %vm899_vm2, %v6638_v8, %v7236_v29 }
0x362c   : > { %v7240_v51 = vpop.permute.xlu0 %7239 }
0x362d   : > { %v7254_v4 = vsel %vm713_vm0, %v7253_v0, %v7240_v51 }
0x3630   : > { %v7244_v52 = vpop.permute.xlu1 %7243  ;;  %v7251_v30 = vpop.permute.xlu0 %7250 }
0x3631   : > { %v7256_v1 = vsel %vm7255_vm1, %v7254_v4, %v7244_v52 }
0x3634   : > { %v7248_v10 = vpop.permute.xlu1 %7247 }
0x3635   : > { %v7257_v63 = vsel %vm1897_vm5, %v7256_v1, %v7248_v10 }
0x3636   : > { %v7259_v11 = vsel %vm7258_vm3, %v7257_v63, 0.0 }
0x3637   : > { %v7261_v38 = vsel %vm7260_vm4, %v7259_v11, %v7251_v30 }
0x3638   : > { %7262 = vst [vmem:[%s698_s26] sm:$0xff] %v7261_v38 }
0x3639 PF: > { %s33_s27 = sadd.s32 1, %s8774_s27  }
0x363a   : > { %p30_p1 = scmp.ge.s32.totalorder %s33_s27, 4  }
0x363c   :  { %32 = sbr.rel (!%p30_p1) target bundleno = 19 (0x13), region = 165 }
0x3641   :  { %7282 = vsyncpa [#allocation3], 1 }
0x3642   :  { %7284 = vsyncpa [#allocation3 + $0x1], 1 }
0x3643   :  { %7285 = vsyncpa [#allocation5], 1 }
0x3644   :  { %7286 = vsyncpa [#allocation8], 1 }
0x3645   :  { %7287 = vsyncpa [#allocation11], 1 }
0x3646   :  { %7288 = vsyncpa [#allocation14], 1 }

</bundles_post_ra>
